<compile_context>
chip_gen: v6e
topology: v6e:2x2x1
jax: 0.10.0
libtpu: 0.0.40
codegen_flags: <defaults>
</compile_context>

<pallas_src>
import functools

import jax
import jax.numpy as jnp
from jax import lax
from jax.experimental import pallas as pl
from jax.experimental.pallas import tpu as pltpu

EPS = 1e-3  # BatchNorm2d(out_ch, 0.001, 0.03) -> eps = 0.001


def _cdiv(a, b):
    return (a + b - 1) // b


def _round_up(x, m):
    return _cdiv(x, m) * m


# ----------------------------------------------------------------------------
# Pallas kernels
# ----------------------------------------------------------------------------
def _matmul_bn_kernel(a_ref, b_ref, s_ref, sh_ref, o_ref, *, apply_relu):
    """(tm, K) @ (K, N) on the MXU (bf16 in, f32 acc) + BN scale/shift epilogue."""
    acc = jnp.dot(a_ref[...], b_ref[...], preferred_element_type=jnp.float32)
    y = acc * s_ref[...] + sh_ref[...]
    if apply_relu:
        y = jnp.maximum(y, 0.0)
    o_ref[...] = y.astype(o_ref.dtype)


def _conv3x3s1_bn_kernel(xa_ref, xb_ref, w_ref, s_ref, sh_ref, *rest,
                         taps, cin, apply_relu, has_residual):
    """Direct 3x3 / stride-1 / pad-1 conv over flattened padded image rows.

    xa_ref: (tm, C)  rows [i*tm, (i+1)*tm) of the flattened padded image.
    xb_ref: (Dp, C)  rows [(i+1)*tm, (i+1)*tm + Dp) -- overlap needed by taps.
    w_ref : (9*C, N) tap-major weights; tap t uses rows [t*C, (t+1)*C).
    taps  : static row shifts kh*Wp + kw for the nine taps.
    """
    if has_residual:
        r_ref, o_ref = rest
    else:
        (o_ref,) = rest
    tm = xa_ref.shape[0]
    win = jnp.concatenate([xa_ref[...], xb_ref[...]], axis=0)   # (tm + Dp, C)

    d0 = taps[0]
    acc = jnp.dot(win[d0:d0 + tm, :], w_ref[0:cin, :],
                  preferred_element_type=jnp.float32)
    for t in range(1, 9):                                       # 9 MXU matmuls
        d = taps[t]
        acc = acc + jnp.dot(win[d:d + tm, :],
                            w_ref[t * cin:(t + 1) * cin, :],
                            preferred_element_type=jnp.float32)

    y = acc * s_ref[...] + sh_ref[...]
    if has_residual:
        y = y + r_ref[...]
    if apply_relu:
        y = jnp.maximum(y, 0.0)
    o_ref[...] = y.astype(o_ref.dtype)


# ----------------------------------------------------------------------------
# Pallas wrappers
# ----------------------------------------------------------------------------
def matmul_bn(a, b, scale, shift, *, relu, out_dtype=jnp.float32, tm_max=1024):
    """(M,K)@(K,N) with fused per-column BN scale/shift and optional ReLU."""
    M, K = a.shape
    Kb, N = b.shape
    assert K == Kb

    # Lane-dense output: pad N up to a multiple of 128 with zero weights/BN.
    n_pad = _round_up(N, 128)
    if n_pad != N:
        b = jnp.pad(b, ((0, 0), (0, n_pad - N)))
        scale = jnp.pad(scale, ((0, 0), (0, n_pad - N)))
        shift = jnp.pad(shift, ((0, 0), (0, n_pad - N)))

    # Large M tile (multiple of 8 sublanes) to amortize per-step overhead.
    tm = min(tm_max, _round_up(M, 8))
    m_pad = _round_up(M, tm)
    if m_pad != M:
        a = jnp.pad(a, ((0, m_pad - M), (0, 0)))

    a = a.astype(jnp.bfloat16)          # bf16 MXU inputs, f32 accumulate
    b = b.astype(jnp.bfloat16)
    scale = scale.astype(jnp.float32)
    shift = shift.astype(jnp.float32)

    out = pl.pallas_call(
        functools.partial(_matmul_bn_kernel, apply_relu=relu),
        out_shape=jax.ShapeDtypeStruct((m_pad, n_pad), out_dtype),
        grid=(m_pad // tm,),
        in_specs=[
            pl.BlockSpec((tm, K), lambda i: (i, 0)),
            pl.BlockSpec((K, n_pad), lambda i: (0, 0)),
            pl.BlockSpec((1, n_pad), lambda i: (0, 0)),
            pl.BlockSpec((1, n_pad), lambda i: (0, 0)),
        ],
        out_specs=pl.BlockSpec((tm, n_pad), lambda i: (i, 0)),
        compiler_params=pltpu.CompilerParams(
            dimension_semantics=("parallel",)),
    )(a, b, scale, shift)

    if m_pad != M or n_pad != N:
        out = out[:M, :N]
    return out


def conv3x3_s1_bn(x, p, *, relu, residual=None, out_dtype=jnp.float32,
                  tm_target=1024):
    """3x3 / stride-1 / pad-1 Conv + BN (+ residual add) (+ ReLU), NHWC.

    One Pallas kernel over the padded image flattened to rows:
        y_flat[r] = sum_{kh,kw} X_flat[r + kh*Wp + kw] @ W[kh, kw]
    Valid outputs are re-sliced from the (B, Hp, Wp) row layout afterwards.
    """
    B, H, W, C = x.shape
    cout = p["w"].shape[-1]
    Hp, Wp = H + 2, W + 2
    Mp = B * Hp * Wp                      # output rows in padded-row layout
    D = 2 * Wp + 2                        # largest tap row-shift
    Dp = _round_up(D, 8)

    # Row tile: a multiple of Dp so the overlap block lands on an aligned
    # block index ((i+1)*tm is then a multiple of Dp).
    tm = Dp * max(1, min(_cdiv(tm_target, Dp), _cdiv(Mp, Dp)))
    grid_m = _cdiv(Mp, tm)
    kfac = tm // Dp
    rows = (grid_m + 1) * tm              # room for the trailing overlap block

    x_pad = jnp.pad(x, ((0, 0), (1, 1), (1, 1), (0, 0))).astype(jnp.bfloat16)
    xf = jnp.pad(x_pad.reshape(Mp, C), ((0, rows - Mp), (0, 0)))

    n_pad = _round_up(cout, 128)
    w2d = p["w"].reshape(9 * C, cout).astype(jnp.bfloat16)
    scale = p["scale"].astype(jnp.float32)
    shift = p["shift"].astype(jnp.float32)
    if n_pad != cout:
        w2d = jnp.pad(w2d, ((0, 0), (0, n_pad - cout)))
        scale = jnp.pad(scale, ((0, 0), (0, n_pad - cout)))
        shift = jnp.pad(shift, ((0, 0), (0, n_pad - cout)))

    args = [xf, xf, w2d, scale, shift]
    in_specs = [
        pl.BlockSpec((tm, C), lambda i: (i, 0)),
        pl.BlockSpec((Dp, C), lambda i: ((i + 1) * kfac, 0)),
        pl.BlockSpec((9 * C, n_pad), lambda i: (0, 0)),
        pl.BlockSpec((1, n_pad), lambda i: (0, 0)),
        pl.BlockSpec((1, n_pad), lambda i: (0, 0)),
    ]

    has_res = residual is not None
    if has_res:
        # Residual is in output coords (B, H, W, cout); lift it into the same
        # padded-row layout (rows at padded positions are discarded later).
        assert residual.shape == (B, H, W, cout)
        r = jnp.pad(residual.astype(jnp.float32),
                    ((0, 0), (0, 2), (0, 2), (0, 0))).reshape(Mp, cout)
        r = jnp.pad(r, ((0, grid_m * tm - Mp), (0, n_pad - cout)))
        args.append(r)
        in_specs.append(pl.BlockSpec((tm, n_pad), lambda i: (i, 0)))

    taps = tuple(kh * Wp + kw for kh in range(3) for kw in range(3))
    kernel = functools.partial(_conv3x3s1_bn_kernel, taps=taps, cin=C,
                               apply_relu=relu, has_residual=has_res)

    out = pl.pallas_call(
        kernel,
        out_shape=jax.ShapeDtypeStruct((grid_m * tm, n_pad), out_dtype),
        grid=(grid_m,),
        in_specs=in_specs,
        out_specs=pl.BlockSpec((tm, n_pad), lambda i: (i, 0)),
        compiler_params=pltpu.CompilerParams(
            dimension_semantics=("parallel",)),
    )(*args)

    out = out[:Mp, :cout].reshape(B, Hp, Wp, cout)[:, :H, :W, :]
    return out


# ----------------------------------------------------------------------------
# Glue for the strided cases: im2col (static strides/slices) + conv-as-matmul
# ----------------------------------------------------------------------------
def im2col(x, k, stride, padding):
    """NHWC -> (B*Ho*Wo, k*k*C) patches; (kh, kw, ci) ordering matches the
    (k,k,cin,cout) -> (k*k*cin, cout) weight reshape."""
    B, H, W, C = x.shape
    if padding:
        x = jnp.pad(x, ((0, 0), (padding, padding), (padding, padding), (0, 0)))
    Ho = (H + 2 * padding - k) // stride + 1
    Wo = (W + 2 * padding - k) // stride + 1
    cols = []
    for kh in range(k):
        for kw in range(k):
            cols.append(x[:, kh:kh + stride * (Ho - 1) + 1:stride,
                             kw:kw + stride * (Wo - 1) + 1:stride, :])
    patches = jnp.concatenate(cols, axis=-1)
    return patches.reshape(B * Ho * Wo, k * k * C), Ho, Wo


def conv_bn_im2col(x, p, *, k, stride, padding, relu, out_dtype=jnp.float32):
    B, H, W, C = x.shape
    patches, Ho, Wo = im2col(x, k, stride, padding)
    cout = p["w"].shape[-1]
    w2d = p["w"].reshape(k * k * C, cout)
    y = matmul_bn(patches, w2d, p["scale"], p["shift"], relu=relu,
                  out_dtype=out_dtype)
    return y.reshape(B, Ho, Wo, cout)


# ----------------------------------------------------------------------------
# Residual module: params + forward (Pallas) + plain-JAX reference
# ----------------------------------------------------------------------------
def init_conv_bn(key, cin, cout, k):
    kw, kg, kb, km, kv = jax.random.split(key, 5)
    w = jax.random.normal(kw, (k, k, cin, cout), jnp.float32) / (k * k * cin) ** 0.5
    gamma = 1.0 + 0.1 * jax.random.normal(kg, (cout,), jnp.float32)
    beta = 0.1 * jax.random.normal(kb, (cout,), jnp.float32)
    mean = 0.1 * jax.random.normal(km, (cout,), jnp.float32)
    var = 1.0 + 0.1 * jnp.abs(jax.random.normal(kv, (cout,), jnp.float32))
    scale = gamma * lax.rsqrt(var + EPS)      # eval-mode BN (running stats)
    shift = beta - mean * scale
    return {"w": w, "scale": scale.reshape(1, cout), "shift": shift.reshape(1, cout)}


def init_residual(key, in_ch, out_ch, s=1):
    k1, k2, k3 = jax.random.split(key, 3)
    add = (s != 1) or (in_ch != out_ch)
    params = {"conv1": init_conv_bn(k1, in_ch, out_ch, 3),
              "conv2": init_conv_bn(k2, out_ch, out_ch, 3)}
    if add:
        params["conv3"] = init_conv_bn(k3, in_ch, out_ch, 1)
    cfg = {"stride": s, "add": add}           # static Python config (NOT jit args)
    return params, cfg


def residual_forward(params, cfg, x_nchw):
    s = cfg["stride"]
    x = jnp.transpose(x_nchw, (0, 2, 3, 1)).astype(jnp.float32)   # NCHW -> NHWC

    # conv1: 3x3, stride s, pad 1, BN + ReLU.  bf16 output (only feeds conv2).
    if s == 1:
        y = conv3x3_s1_bn(x, params["conv1"], relu=True, out_dtype=jnp.bfloat16)
    else:
        y = conv_bn_im2col(x, params["conv1"], k=3, stride=s, padding=1,
                           relu=True, out_dtype=jnp.bfloat16)

    # Shortcut branch.
    if cfg["add"]:
        sc = conv_bn_im2col(x, params["conv3"], k=1, stride=s, padding=0,
                            relu=False)
    else:
        sc = x

    # conv2: 3x3, stride 1, pad 1, BN, + shortcut add, final ReLU -- all fused.
    out = conv3x3_s1_bn(y, params["conv2"], relu=True, residual=sc)
    return jnp.transpose(out, (0, 3, 1, 2))                       # NHWC -> NCHW


def _conv_bn_ref(x, p, *, stride, padding, relu):
    y = lax.conv_general_dilated(
        x, p["w"], window_strides=(stride, stride),
        padding=((padding, padding), (padding, padding)),
        dimension_numbers=("NHWC", "HWIO", "NHWC"))
    y = y * p["scale"].reshape(1, 1, 1, -1) + p["shift"].reshape(1, 1, 1, -1)
    return jnp.maximum(y, 0.0) if relu else y


def residual_reference(params, cfg, x_nchw):
    s = cfg["stride"]
    x = jnp.transpose(x_nchw, (0, 2, 3, 1)).astype(jnp.float32)
    y = _conv_bn_ref(x, params["conv1"], stride=s, padding=1, relu=True)
    y = _conv_bn_ref(y, params["conv2"], stride=1, padding=1, relu=False)
    sc = (_conv_bn_ref(x, params["conv3"], stride=s, padding=0, relu=False)
          if cfg["add"] else x)
    out = jnp.maximum(y + sc, 0.0)
    return jnp.transpose(out, (0, 3, 1, 2))


# ----------------------------------------------------------------------------
if __name__ == "__main__":
    key = jax.random.PRNGKey(0)
    kp1, kp2, kx1, kx2 = jax.random.split(key, 4)

    # Case A: downsampling residual (in_ch != out_ch, stride 2) -> 1x1 shortcut.
    params_a, cfg_a = init_residual(kp1, in_ch=64, out_ch=128, s=2)
    x_a = jax.random.normal(kx1, (2, 64, 16, 16), jnp.float32)
    fwd_a = jax.jit(lambda p, x: residual_forward(p, cfg_a, x))
    out_a = jax.block_until_ready(fwd_a(params_a, x_a))
    assert out_a.shape == (2, 128, 8, 8) and out_a.dtype == jnp.float32
    ref_a = residual_reference(params_a, cfg_a, x_a)
    err_a = jnp.max(jnp.abs(out_a - ref_a)) / (jnp.max(jnp.abs(ref_a)) + 1e-6)

    # Case B: identity residual (in_ch == out_ch, stride 1).
    params_b, cfg_b = init_residual(kp2, in_ch=128, out_ch=128, s=1)
    x_b = jax.random.normal(kx2, (2, 128, 16, 16), jnp.float32)
    fwd_b = jax.jit(lambda p, x: residual_forward(p, cfg_b, x))
    out_b = jax.block_until_ready(fwd_b(params_b, x_b))
    assert out_b.shape == (2, 128, 16, 16) and out_b.dtype == jnp.float32
    ref_b = residual_reference(params_b, cfg_b, x_b)
    err_b = jnp.max(jnp.abs(out_b - ref_b)) / (jnp.max(jnp.abs(ref_b)) + 1e-6)

    # bf16-matmul vs f32 reference: expect <1% normalized error; allow slack.
    assert bool(err_a < 0.05) and bool(err_b < 0.05), (float(err_a), float(err_b))
    print("KERNEL_OK")
</pallas_src>

<mosaic_0001>
module attributes {stable_mosaic.version = 11 : i64} {
  func.func @_matmul_bn_kernel(%arg0: i32, %arg1: memref<128x576xbf16, #tpu.memory_space<vmem>>, %arg2: memref<576x128xbf16, #tpu.memory_space<vmem>>, %arg3: memref<1x128xf32, #tpu.memory_space<vmem>>, %arg4: memref<1x128xf32, #tpu.memory_space<vmem>>, %arg5: memref<128x128xbf16, #tpu.memory_space<vmem>>) attributes {dimension_semantics = [#tpu.dimension_semantics<parallel>], iteration_bounds = array<i64: 1>, scalar_prefetch = 0 : i64, scratch_operands = 0 : i64, tpu.core_type = #tpu.core_type<tc>, window_params = [{transform_indices = @transform_0, window_bounds = array<i64: 128, 576>}, {pipeline_mode = #tpu.pipeline_mode<synchronous>, transform_indices = @transform_1, window_bounds = array<i64: 576, 128>}, {pipeline_mode = #tpu.pipeline_mode<synchronous>, transform_indices = @transform_2, window_bounds = array<i64: 1, 128>}, {pipeline_mode = #tpu.pipeline_mode<synchronous>, transform_indices = @transform_3, window_bounds = array<i64: 1, 128>}, {transform_indices = @transform_4, window_bounds = array<i64: 128, 128>}]} {
    %c0 = arith.constant 0 : index
    %c0_0 = arith.constant 0 : index
    %0 = vector.load %arg1[%c0, %c0_0] : memref<128x576xbf16, #tpu.memory_space<vmem>>, vector<128x576xbf16>
    %c0_1 = arith.constant 0 : index
    %c0_2 = arith.constant 0 : index
    %1 = vector.load %arg2[%c0_1, %c0_2] : memref<576x128xbf16, #tpu.memory_space<vmem>>, vector<576x128xbf16>
    %cst = arith.constant dense<0.000000e+00> : vector<128x128xf32>
    %2 = tpu.matmul %0, %1, %cst {dimension_numbers = #tpu.dot_dimension_numbers<[1], [0], [0], [1], [0, 0, 1, 1], [], []>} : vector<128x576xbf16>, vector<576x128xbf16>, vector<128x128xf32> -> vector<128x128xf32>
    %c0_3 = arith.constant 0 : index
    %c0_4 = arith.constant 0 : index
    %3 = vector.load %arg3[%c0_3, %c0_4] : memref<1x128xf32, #tpu.memory_space<vmem>>, vector<1x128xf32>
    %4 = vector.broadcast %3 : vector<1x128xf32> to vector<128x128xf32>
    %5 = arith.mulf %2, %4 : vector<128x128xf32>
    %c0_5 = arith.constant 0 : index
    %c0_6 = arith.constant 0 : index
    %6 = vector.load %arg4[%c0_5, %c0_6] : memref<1x128xf32, #tpu.memory_space<vmem>>, vector<1x128xf32>
    %7 = vector.broadcast %6 : vector<1x128xf32> to vector<128x128xf32>
    %8 = arith.addf %5, %7 : vector<128x128xf32>
    %cst_7 = arith.constant 0.000000e+00 : f32
    %9 = vector.broadcast %cst_7 : f32 to vector<128x128xf32>
    %10 = arith.maximumf %8, %9 : vector<128x128xf32>
    %11 = arith.truncf %10 : vector<128x128xf32> to vector<128x128xbf16>
    %c0_8 = arith.constant 0 : index
    %c0_9 = arith.constant 0 : index
    %12 = vector.load %arg5[%c0_8, %c0_9] : memref<128x128xbf16, #tpu.memory_space<vmem>>, vector<128x128xbf16>
    tpu.vector_store %arg5[%c0_8, %c0_9], %11 {strides = array<i32>} : memref<128x128xbf16, #tpu.memory_space<vmem>>, vector<128x128xbf16>,
    return
  }
  func.func @transform_0(%arg0: i32) -> (i32, i32) {
    %c0_i32 = arith.constant 0 : i32
    %c0_i32_0 = arith.constant 0 : i32
    return %arg0, %c0_i32 : i32, i32
  }
  func.func @transform_1(%arg0: i32) -> (i32, i32) {
    %c0_i32 = arith.constant 0 : i32
    %c0_i32_0 = arith.constant 0 : i32
    %c0_i32_1 = arith.constant 0 : i32
    return %c0_i32, %c0_i32_0 : i32, i32
  }
  func.func @transform_2(%arg0: i32) -> (i32, i32) {
    %c0_i32 = arith.constant 0 : i32
    %c0_i32_0 = arith.constant 0 : i32
    %c0_i32_1 = arith.constant 0 : i32
    return %c0_i32, %c0_i32_0 : i32, i32
  }
  func.func @transform_3(%arg0: i32) -> (i32, i32) {
    %c0_i32 = arith.constant 0 : i32
    %c0_i32_0 = arith.constant 0 : i32
    %c0_i32_1 = arith.constant 0 : i32
    return %c0_i32, %c0_i32_0 : i32, i32
  }
  func.func @transform_4(%arg0: i32) -> (i32, i32) {
    %c0_i32 = arith.constant 0 : i32
    %c0_i32_0 = arith.constant 0 : i32
    return %arg0, %c0_i32 : i32, i32
  }
}

module attributes {stable_mosaic.version = 11 : i64} {
  func.func @_matmul_bn_kernel(%arg0: i32, %arg1: memref<128x64xbf16, #tpu.memory_space<vmem>>, %arg2: memref<64x128xbf16, #tpu.memory_space<vmem>>, %arg3: memref<1x128xf32, #tpu.memory_space<vmem>>, %arg4: memref<1x128xf32, #tpu.memory_space<vmem>>, %arg5: memref<128x128xf32, #tpu.memory_space<vmem>>) attributes {dimension_semantics = [#tpu.dimension_semantics<parallel>], iteration_bounds = array<i64: 1>, scalar_prefetch = 0 : i64, scratch_operands = 0 : i64, tpu.core_type = #tpu.core_type<tc>, window_params = [{transform_indices = @transform_0, window_bounds = array<i64: 128, 64>}, {pipeline_mode = #tpu.pipeline_mode<synchronous>, transform_indices = @transform_1, window_bounds = array<i64: 64, 128>}, {pipeline_mode = #tpu.pipeline_mode<synchronous>, transform_indices = @transform_2, window_bounds = array<i64: 1, 128>}, {pipeline_mode = #tpu.pipeline_mode<synchronous>, transform_indices = @transform_3, window_bounds = array<i64: 1, 128>}, {transform_indices = @transform_4, window_bounds = array<i64: 128, 128>}]} {
    %c0 = arith.constant 0 : index
    %c0_0 = arith.constant 0 : index
    %0 = vector.load %arg1[%c0, %c0_0] : memref<128x64xbf16, #tpu.memory_space<vmem>>, vector<128x64xbf16>
    %c0_1 = arith.constant 0 : index
    %c0_2 = arith.constant 0 : index
    %1 = vector.load %arg2[%c0_1, %c0_2] : memref<64x128xbf16, #tpu.memory_space<vmem>>, vector<64x128xbf16>
    %cst = arith.constant dense<0.000000e+00> : vector<128x128xf32>
    %2 = tpu.matmul %0, %1, %cst {dimension_numbers = #tpu.dot_dimension_numbers<[1], [0], [0], [1], [0, 0, 1, 1], [], []>} : vector<128x64xbf16>, vector<64x128xbf16>, vector<128x128xf32> -> vector<128x128xf32>
    %c0_3 = arith.constant 0 : index
    %c0_4 = arith.constant 0 : index
    %3 = vector.load %arg3[%c0_3, %c0_4] : memref<1x128xf32, #tpu.memory_space<vmem>>, vector<1x128xf32>
    %4 = vector.broadcast %3 : vector<1x128xf32> to vector<128x128xf32>
    %5 = arith.mulf %2, %4 : vector<128x128xf32>
    %c0_5 = arith.constant 0 : index
    %c0_6 = arith.constant 0 : index
    %6 = vector.load %arg4[%c0_5, %c0_6] : memref<1x128xf32, #tpu.memory_space<vmem>>, vector<1x128xf32>
    %7 = vector.broadcast %6 : vector<1x128xf32> to vector<128x128xf32>
    %8 = arith.addf %5, %7 : vector<128x128xf32>
    %c0_7 = arith.constant 0 : index
    %c0_8 = arith.constant 0 : index
    %9 = vector.load %arg5[%c0_7, %c0_8] : memref<128x128xf32, #tpu.memory_space<vmem>>, vector<128x128xf32>
    tpu.vector_store %arg5[%c0_7, %c0_8], %8 {strides = array<i32>} : memref<128x128xf32, #tpu.memory_space<vmem>>, vector<128x128xf32>,
    return
  }
  func.func @transform_0(%arg0: i32) -> (i32, i32) {
    %c0_i32 = arith.constant 0 : i32
    %c0_i32_0 = arith.constant 0 : i32
    return %arg0, %c0_i32 : i32, i32
  }
  func.func @transform_1(%arg0: i32) -> (i32, i32) {
    %c0_i32 = arith.constant 0 : i32
    %c0_i32_0 = arith.constant 0 : i32
    %c0_i32_1 = arith.constant 0 : i32
    return %c0_i32, %c0_i32_0 : i32, i32
  }
  func.func @transform_2(%arg0: i32) -> (i32, i32) {
    %c0_i32 = arith.constant 0 : i32
    %c0_i32_0 = arith.constant 0 : i32
    %c0_i32_1 = arith.constant 0 : i32
    return %c0_i32, %c0_i32_0 : i32, i32
  }
  func.func @transform_3(%arg0: i32) -> (i32, i32) {
    %c0_i32 = arith.constant 0 : i32
    %c0_i32_0 = arith.constant 0 : i32
    %c0_i32_1 = arith.constant 0 : i32
    return %c0_i32, %c0_i32_0 : i32, i32
  }
  func.func @transform_4(%arg0: i32) -> (i32, i32) {
    %c0_i32 = arith.constant 0 : i32
    %c0_i32_0 = arith.constant 0 : i32
    return %arg0, %c0_i32 : i32, i32
  }
}

module attributes {stable_mosaic.version = 11 : i64} {
  func.func @_conv3x3s1_bn_kernel(%arg0: i32, %arg1: memref<216x128xbf16, #tpu.memory_space<vmem>>, %arg2: memref<24x128xbf16, #tpu.memory_space<vmem>>, %arg3: memref<1152x128xbf16, #tpu.memory_space<vmem>>, %arg4: memref<1x128xf32, #tpu.memory_space<vmem>>, %arg5: memref<1x128xf32, #tpu.memory_space<vmem>>, %arg6: memref<216x128xf32, #tpu.memory_space<vmem>>, %arg7: memref<216x128xf32, #tpu.memory_space<vmem>>) attributes {dimension_semantics = [#tpu.dimension_semantics<parallel>], iteration_bounds = array<i64: 1>, scalar_prefetch = 0 : i64, scratch_operands = 0 : i64, tpu.core_type = #tpu.core_type<tc>, window_params = [{transform_indices = @transform_0, window_bounds = array<i64: 216, 128>}, {transform_indices = @transform_1, window_bounds = array<i64: 24, 128>}, {pipeline_mode = #tpu.pipeline_mode<synchronous>, transform_indices = @transform_2, window_bounds = array<i64: 1152, 128>}, {pipeline_mode = #tpu.pipeline_mode<synchronous>, transform_indices = @transform_3, window_bounds = array<i64: 1, 128>}, {pipeline_mode = #tpu.pipeline_mode<synchronous>, transform_indices = @transform_4, window_bounds = array<i64: 1, 128>}, {transform_indices = @transform_5, window_bounds = array<i64: 216, 128>}, {transform_indices = @transform_6, window_bounds = array<i64: 216, 128>}]} {
    %c0 = arith.constant 0 : index
    %c0_0 = arith.constant 0 : index
    %0 = vector.load %arg1[%c0, %c0_0] : memref<216x128xbf16, #tpu.memory_space<vmem>>, vector<216x128xbf16>
    %c0_1 = arith.constant 0 : index
    %c0_2 = arith.constant 0 : index
    %1 = vector.load %arg2[%c0_1, %c0_2] : memref<24x128xbf16, #tpu.memory_space<vmem>>, vector<24x128xbf16>
    %2 = tpu.concatenate %0, %1 in 0 : vector<216x128xbf16>, vector<24x128xbf16> -> vector<240x128xbf16>
    %3 = vector.extract_strided_slice %2 {offsets = [0, 0], sizes = [216, 128], strides = [1, 1]} : vector<240x128xbf16> to vector<216x128xbf16>
    %c0_3 = arith.constant 0 : index
    %c0_4 = arith.constant 0 : index
    %4 = vector.load %arg3[%c0_3, %c0_4] : memref<1152x128xbf16, #tpu.memory_space<vmem>>, vector<128x128xbf16>
    %cst = arith.constant dense<0.000000e+00> : vector<216x128xf32>
    %5 = tpu.matmul %3, %4, %cst {dimension_numbers = #tpu.dot_dimension_numbers<[1], [0], [0], [1], [0, 0, 1, 1], [], []>} : vector<216x128xbf16>, vector<128x128xbf16>, vector<216x128xf32> -> vector<216x128xf32>
    %6 = vector.extract_strided_slice %2 {offsets = [1, 0], sizes = [216, 128], strides = [1, 1]} : vector<240x128xbf16> to vector<216x128xbf16>
    %c128 = arith.constant 128 : index
    %c0_5 = arith.constant 0 : index
    %7 = vector.load %arg3[%c128, %c0_5] : memref<1152x128xbf16, #tpu.memory_space<vmem>>, vector<128x128xbf16>
    %cst_6 = arith.constant dense<0.000000e+00> : vector<216x128xf32>
    %8 = tpu.matmul %6, %7, %cst_6 {dimension_numbers = #tpu.dot_dimension_numbers<[1], [0], [0], [1], [0, 0, 1, 1], [], []>} : vector<216x128xbf16>, vector<128x128xbf16>, vector<216x128xf32> -> vector<216x128xf32>
    %9 = arith.addf %5, %8 : vector<216x128xf32>
    %10 = vector.extract_strided_slice %2 {offsets = [2, 0], sizes = [216, 128], strides = [1, 1]} : vector<240x128xbf16> to vector<216x128xbf16>
    %c256 = arith.constant 256 : index
    %c0_7 = arith.constant 0 : index
    %11 = vector.load %arg3[%c256, %c0_7] : memref<1152x128xbf16, #tpu.memory_space<vmem>>, vector<128x128xbf16>
    %cst_8 = arith.constant dense<0.000000e+00> : vector<216x128xf32>
    %12 = tpu.matmul %10, %11, %cst_8 {dimension_numbers = #tpu.dot_dimension_numbers<[1], [0], [0], [1], [0, 0, 1, 1], [], []>} : vector<216x128xbf16>, vector<128x128xbf16>, vector<216x128xf32> -> vector<216x128xf32>
    %13 = arith.addf %9, %12 : vector<216x128xf32>
    %14 = vector.extract_strided_slice %2 {offsets = [10, 0], sizes = [216, 128], strides = [1, 1]} : vector<240x128xbf16> to vector<216x128xbf16>
    %c384 = arith.constant 384 : index
    %c0_9 = arith.constant 0 : index
    %15 = vector.load %arg3[%c384, %c0_9] : memref<1152x128xbf16, #tpu.memory_space<vmem>>, vector<128x128xbf16>
    %cst_10 = arith.constant dense<0.000000e+00> : vector<216x128xf32>
    %16 = tpu.matmul %14, %15, %cst_10 {dimension_numbers = #tpu.dot_dimension_numbers<[1], [0], [0], [1], [0, 0, 1, 1], [], []>} : vector<216x128xbf16>, vector<128x128xbf16>, vector<216x128xf32> -> vector<216x128xf32>
    %17 = arith.addf %13, %16 : vector<216x128xf32>
    %18 = vector.extract_strided_slice %2 {offsets = [11, 0], sizes = [216, 128], strides = [1, 1]} : vector<240x128xbf16> to vector<216x128xbf16>
    %c512 = arith.constant 512 : index
    %c0_11 = arith.constant 0 : index
    %19 = vector.load %arg3[%c512, %c0_11] : memref<1152x128xbf16, #tpu.memory_space<vmem>>, vector<128x128xbf16>
    %cst_12 = arith.constant dense<0.000000e+00> : vector<216x128xf32>
    %20 = tpu.matmul %18, %19, %cst_12 {dimension_numbers = #tpu.dot_dimension_numbers<[1], [0], [0], [1], [0, 0, 1, 1], [], []>} : vector<216x128xbf16>, vector<128x128xbf16>, vector<216x128xf32> -> vector<216x128xf32>
    %21 = arith.addf %17, %20 : vector<216x128xf32>
    %22 = vector.extract_strided_slice %2 {offsets = [12, 0], sizes = [216, 128], strides = [1, 1]} : vector<240x128xbf16> to vector<216x128xbf16>
    %c640 = arith.constant 640 : index
    %c0_13 = arith.constant 0 : index
    %23 = vector.load %arg3[%c640, %c0_13] : memref<1152x128xbf16, #tpu.memory_space<vmem>>, vector<128x128xbf16>
    %cst_14 = arith.constant dense<0.000000e+00> : vector<216x128xf32>
    %24 = tpu.matmul %22, %23, %cst_14 {dimension_numbers = #tpu.dot_dimension_numbers<[1], [0], [0], [1], [0, 0, 1, 1], [], []>} : vector<216x128xbf16>, vector<128x128xbf16>, vector<216x128xf32> -> vector<216x128xf32>
    %25 = arith.addf %21, %24 : vector<216x128xf32>
    %26 = vector.extract_strided_slice %2 {offsets = [20, 0], sizes = [216, 128], strides = [1, 1]} : vector<240x128xbf16> to vector<216x128xbf16>
    %c768 = arith.constant 768 : index
    %c0_15 = arith.constant 0 : index
    %27 = vector.load %arg3[%c768, %c0_15] : memref<1152x128xbf16, #tpu.memory_space<vmem>>, vector<128x128xbf16>
    %cst_16 = arith.constant dense<0.000000e+00> : vector<216x128xf32>
    %28 = tpu.matmul %26, %27, %cst_16 {dimension_numbers = #tpu.dot_dimension_numbers<[1], [0], [0], [1], [0, 0, 1, 1], [], []>} : vector<216x128xbf16>, vector<128x128xbf16>, vector<216x128xf32> -> vector<216x128xf32>
    %29 = arith.addf %25, %28 : vector<216x128xf32>
    %30 = vector.extract_strided_slice %2 {offsets = [21, 0], sizes = [216, 128], strides = [1, 1]} : vector<240x128xbf16> to vector<216x128xbf16>
    %c896 = arith.constant 896 : index
    %c0_17 = arith.constant 0 : index
    %31 = vector.load %arg3[%c896, %c0_17] : memref<1152x128xbf16, #tpu.memory_space<vmem>>, vector<128x128xbf16>
    %cst_18 = arith.constant dense<0.000000e+00> : vector<216x128xf32>
    %32 = tpu.matmul %30, %31, %cst_18 {dimension_numbers = #tpu.dot_dimension_numbers<[1], [0], [0], [1], [0, 0, 1, 1], [], []>} : vector<216x128xbf16>, vector<128x128xbf16>, vector<216x128xf32> -> vector<216x128xf32>
    %33 = arith.addf %29, %32 : vector<216x128xf32>
    %34 = vector.extract_strided_slice %2 {offsets = [22, 0], sizes = [216, 128], strides = [1, 1]} : vector<240x128xbf16> to vector<216x128xbf16>
    %c1024 = arith.constant 1024 : index
    %c0_19 = arith.constant 0 : index
    %35 = vector.load %arg3[%c1024, %c0_19] : memref<1152x128xbf16, #tpu.memory_space<vmem>>, vector<128x128xbf16>
    %cst_20 = arith.constant dense<0.000000e+00> : vector<216x128xf32>
    %36 = tpu.matmul %34, %35, %cst_20 {dimension_numbers = #tpu.dot_dimension_numbers<[1], [0], [0], [1], [0, 0, 1, 1], [], []>} : vector<216x128xbf16>, vector<128x128xbf16>, vector<216x128xf32> -> vector<216x128xf32>
    %37 = arith.addf %33, %36 : vector<216x128xf32>
    %c0_21 = arith.constant 0 : index
    %c0_22 = arith.constant 0 : index
    %38 = vector.load %arg4[%c0_21, %c0_22] : memref<1x128xf32, #tpu.memory_space<vmem>>, vector<1x128xf32>
    %39 = vector.broadcast %38 : vector<1x128xf32> to vector<216x128xf32>
    %40 = arith.mulf %37, %39 : vector<216x128xf32>
    %c0_23 = arith.constant 0 : index
    %c0_24 = arith.constant 0 : index
    %41 = vector.load %arg5[%c0_23, %c0_24] : memref<1x128xf32, #tpu.memory_space<vmem>>, vector<1x128xf32>
    %42 = vector.broadcast %41 : vector<1x128xf32> to vector<216x128xf32>
    %43 = arith.addf %40, %42 : vector<216x128xf32>
    %c0_25 = arith.constant 0 : index
    %c0_26 = arith.constant 0 : index
    %44 = vector.load %arg6[%c0_25, %c0_26] : memref<216x128xf32, #tpu.memory_space<vmem>>, vector<216x128xf32>
    %45 = arith.addf %43, %44 : vector<216x128xf32>
    %cst_27 = arith.constant 0.000000e+00 : f32
    %46 = vector.broadcast %cst_27 : f32 to vector<216x128xf32>
    %47 = arith.maximumf %45, %46 : vector<216x128xf32>
    %c0_28 = arith.constant 0 : index
    %c0_29 = arith.constant 0 : index
    %48 = vector.load %arg7[%c0_28, %c0_29] : memref<216x128xf32, #tpu.memory_space<vmem>>, vector<216x128xf32>
    tpu.vector_store %arg7[%c0_28, %c0_29], %47 {strides = array<i32>} : memref<216x128xf32, #tpu.memory_space<vmem>>, vector<216x128xf32>,
    return
  }
  func.func @transform_0(%arg0: i32) -> (i32, i32) {
    %c0_i32 = arith.constant 0 : i32
    %c0_i32_0 = arith.constant 0 : i32
    return %arg0, %c0_i32 : i32, i32
  }
  func.func @transform_1(%arg0: i32) -> (i32, i32) {
    %c1_i32 = arith.constant 1 : i32
    %0 = arith.addi %arg0, %c1_i32 : i32
    %c9_i32 = arith.constant 9 : i32
    %1 = arith.muli %0, %c9_i32 : i32
    %c0_i32 = arith.constant 0 : i32
    %c0_i32_0 = arith.constant 0 : i32
    return %1, %c0_i32 : i32, i32
  }
  func.func @transform_2(%arg0: i32) -> (i32, i32) {
    %c0_i32 = arith.constant 0 : i32
    %c0_i32_0 = arith.constant 0 : i32
    %c0_i32_1 = arith.constant 0 : i32
    return %c0_i32, %c0_i32_0 : i32, i32
  }
  func.func @transform_3(%arg0: i32) -> (i32, i32) {
    %c0_i32 = arith.constant 0 : i32
    %c0_i32_0 = arith.constant 0 : i32
    %c0_i32_1 = arith.constant 0 : i32
    return %c0_i32, %c0_i32_0 : i32, i32
  }
  func.func @transform_4(%arg0: i32) -> (i32, i32) {
    %c0_i32 = arith.constant 0 : i32
    %c0_i32_0 = arith.constant 0 : i32
    %c0_i32_1 = arith.constant 0 : i32
    return %c0_i32, %c0_i32_0 : i32, i32
  }
  func.func @transform_5(%arg0: i32) -> (i32, i32) {
    %c0_i32 = arith.constant 0 : i32
    %c0_i32_0 = arith.constant 0 : i32
    return %arg0, %c0_i32 : i32, i32
  }
  func.func @transform_6(%arg0: i32) -> (i32, i32) {
    %c0_i32 = arith.constant 0 : i32
    %c0_i32_0 = arith.constant 0 : i32
    return %arg0, %c0_i32 : i32, i32
  }
}

</mosaic_0001>

<bundles_post_ra>
// kernel: _lambda_.4
= control target key start
LH: loop header
LB: loop body
LE: loop exit
PB: predicated region body
PF: predicated region fallthrough
CT: control target
= control target key end

     0   :  { %vm106_vm0 = vcmask 523264   ;;  %s495_s1 = inlined_call_operand.vmem [shape: bf16[64,128], index: 1, kind: input, shape index: {}]   ;;  %s496_s0 = inlined_call_operand.vmem [shape: bf16[128,64], index: 0, kind: input, shape index: {}]   ;;  %s497_s2 = inlined_call_operand.vmem [shape: f32[1,128], index: 2, kind: input, shape index: {}]   ;;  %s498_s3 = inlined_call_operand.vmem [shape: f32[1,128], index: 3, kind: input, shape index: {}]   ;;  %s499_s4 = inlined_call_operand.vmem [shape: f32[128,128], index: 4, kind: output, shape index: {}]  }
   0x1   :  { %v360_v0 = vld [vmem:[%s495_s1 + $0x18] sm:$0xff]   ;;  %v361_v1 = vld [vmem:[%s495_s1 + $0x10] sm:$0xff]   ;;  %v362_v2 = vld [vmem:[%s495_s1 + $0x8] sm:$0xff]  }
   0x2   :  { %328 = vmatprep.subr.bf16.mxu0 %v360_v0  ;;  %352 = vmatprep.subr.bf16.mxu1 %v360_v0  ;;  %v364_v3 = vld [vmem:[%s496_s0] sm:$0xff]   ;;  %v366_v6 = vld [vmem:[%s496_s0 + $0x8] sm:$0xff]   ;;  %v368_v8 = vld [vmem:[%s496_s0 + $0x10] sm:$0xff]  }
   0x3   :  { %329 = vmatpush3.bf16.msra.mxu0 %v360_v0  ;;  %356 = vmatpush3.bf16.msra.mxu1 %v360_v0  ;;  %v365_v4 = vld [vmem:[%s496_s0 + $0x20] sm:$0xff]   ;;  %v367_v7 = vld [vmem:[%s496_s0 + $0x28] sm:$0xff]   ;;  %v369_v9 = vld [vmem:[%s496_s0 + $0x30] sm:$0xff]  }
   0x4   :  { %330 = vmatprep.subr.bf16.mxu0 %v361_v1  ;;  %353 = vmatprep.subr.bf16.mxu1 %v361_v1  ;;  %v363_v5 = vld [vmem:[%s495_s1] sm:$0xff]   ;;  %v370_v10 = vld [vmem:[%s496_s0 + $0x18] sm:$0xff]  }
   0x5   :  { %336 = vmatprep.mubr.msk.bf16.mxu0 %vm106_vm0, %v364_v3  ;;  %344 = vmatprep.mubr.msk.bf16.mxu1 %vm106_vm0, %v365_v4  ;;  %v371_v11 = vld [vmem:[%s496_s0 + $0x38] sm:$0xff]   ;;  %v314_v12 = vld [vmem:[%s497_s2] ss:$0 sm:$0xff] }
   0x6   :  { %v315_v14 = vld [vmem:[%s498_s3] ss:$0 sm:$0xff] }
   0x7   :  { %331 = vmatpush3.bf16.msra.mxu0 %v361_v1  ;;  %357 = vmatpush3.bf16.msra.mxu1 %v361_v1 }
   0x8   :  { %332 = vmatprep.subr.bf16.mxu0 %v362_v2  ;;  %354 = vmatprep.subr.bf16.mxu1 %v362_v2 }
   0xb   :  { %333 = vmatpush3.bf16.msra.mxu0 %v362_v2  ;;  %358 = vmatpush3.bf16.msra.mxu1 %v362_v2 }
   0xc   :  { %334 = vmatprep.subr.bf16.mxu0 %v363_v5  ;;  %355 = vmatprep.subr.bf16.mxu1 %v363_v5 }
   0xf   :  { %335 = vmatpush3.bf16.msra.mxu0 %v363_v5  ;;  %359 = vmatpush3.bf16.msra.mxu1 %v363_v5 }
  0x12   :  { %337 = vmatmul.mubr.msk.bf16.vlgmr.msra.gmra.mxu0 %vm106_vm0, %v366_v6  ;;  %345 = vmatmul.mubr.msk.bf16.vlgmr.msra.gmra.mxu1 %vm106_vm0, %v367_v7 }
  0x13   :  { %340 = vmatprep.mubr.msk.bf16.mxu0 %vm106_vm0, %v368_v8  ;;  %348 = vmatprep.mubr.msk.bf16.mxu1 %vm106_vm0, %v369_v9 }
  0x1a   :  { %341 = vmatmul.mubr.msk.bf16.gmra.mxu0 %vm106_vm0, %v370_v10  ;;  %349 = vmatmul.mubr.msk.bf16.gmra.mxu1 %vm106_vm0, %v371_v11 }
  0xd2   :  { %v338_v13 = vpop.f32.mrf.mxu0  ;;  %v346_v15 = vpop.f32.mrf.mxu1 }
  0xd3   :  { %v237_v16 = vmul.f32 %v338_v13, %v314_v12  ;;  %v245_v17 = vmul.f32 %v346_v15, %v314_v12 }
  0xd4   :  { %v165_v18 = vpop.f32.mrf.mxu0  ;;  %v197_v19 = vpop.f32.mrf.mxu1 }
  0xd5   :  { %v260_v20 = vadd.f32 %v315_v14, %v237_v16  ;;  %v268_v21 = vadd.f32 %v315_v14, %v245_v17  ;;  %v235_v22 = vmul.f32 %v314_v12, %v165_v18  ;;  %v243_v23 = vmul.f32 %v314_v12, %v197_v19 }
  0xd6   :  { %v339_v24 = vpop.f32.mrf.mxu0  ;;  %v347_v25 = vpop.f32.mrf.mxu1 }
  0xd7   :  { %276 = vst [vmem:[%s499_s4 + $0x10] sm:$0xff] %v260_v20  ;;  %284 = vst [vmem:[%s499_s4 + $0x50] sm:$0xff] %v268_v21  ;;  %v258_v26 = vadd.f32 %v315_v14, %v235_v22  ;;  %v266_v27 = vadd.f32 %v315_v14, %v243_v23  ;;  %v238_v28 = vmul.f32 %v339_v24, %v314_v12 }
  0xd8   :  { %v246_v29 = vmul.f32 %v347_v25, %v314_v12  ;;  %v168_v30 = vpop.f32.mrf.mxu0  ;;  %v200_v31 = vpop.f32.mrf.mxu1 }
  0xd9   :  { %274 = vst [vmem:[%s499_s4] sm:$0xff] %v258_v26  ;;  %282 = vst [vmem:[%s499_s4 + $0x40] sm:$0xff] %v266_v27  ;;  %v261_v32 = vadd.f32 %v315_v14, %v238_v28  ;;  %v236_v34 = vmul.f32 %v314_v12, %v168_v30  ;;  %v244_v35 = vmul.f32 %v314_v12, %v200_v31 }
  0xda   :  { %v269_v33 = vadd.f32 %v315_v14, %v246_v29  ;;  %v342_v36 = vpop.f32.mrf.mxu0  ;;  %v350_v37 = vpop.f32.mrf.mxu1 }
  0xdb   :  { %277 = vst [vmem:[%s499_s4 + $0x18] sm:$0xff] %v261_v32  ;;  %v259_v38 = vadd.f32 %v315_v14, %v236_v34  ;;  %v267_v39 = vadd.f32 %v315_v14, %v244_v35  ;;  %v241_v40 = vmul.f32 %v342_v36, %v314_v12  ;;  %v249_v41 = vmul.f32 %v350_v37, %v314_v12 }
  0xdc   :  { %285 = vst [vmem:[%s499_s4 + $0x58] sm:$0xff] %v269_v33  ;;  %v181_v42 = vpop.f32.mrf.mxu0  ;;  %v213_v43 = vpop.f32.mrf.mxu1 }
  0xdd   :  { %275 = vst [vmem:[%s499_s4 + $0x8] sm:$0xff] %v259_v38  ;;  %283 = vst [vmem:[%s499_s4 + $0x48] sm:$0xff] %v267_v39  ;;  %v264_v44 = vadd.f32 %v315_v14, %v241_v40  ;;  %v272_v45 = vadd.f32 %v315_v14, %v249_v41  ;;  %v239_v46 = vmul.f32 %v314_v12, %v181_v42 }
  0xde   :  { %v247_v47 = vmul.f32 %v314_v12, %v213_v43  ;;  %v343_v48 = vpop.f32.mrf.mxu0  ;;  %v351_v49 = vpop.f32.mrf.mxu1 }
  0xdf   :  { %280 = vst [vmem:[%s499_s4 + $0x30] sm:$0xff] %v264_v44  ;;  %288 = vst [vmem:[%s499_s4 + $0x70] sm:$0xff] %v272_v45  ;;  %v262_v50 = vadd.f32 %v315_v14, %v239_v46  ;;  %v242_v52 = vmul.f32 %v343_v48, %v314_v12  ;;  %v250_v53 = vmul.f32 %v351_v49, %v314_v12 }
  0xe0   :  { %v270_v51 = vadd.f32 %v315_v14, %v247_v47  ;;  %v184_v54 = vpop.f32.mrf.mxu0  ;;  %v216_v55 = vpop.f32.mrf.mxu1 }
  0xe1   :  { %278 = vst [vmem:[%s499_s4 + $0x20] sm:$0xff] %v262_v50  ;;  %v265_v56 = vadd.f32 %v315_v14, %v242_v52  ;;  %v273_v57 = vadd.f32 %v315_v14, %v250_v53  ;;  %v240_v58 = vmul.f32 %v314_v12, %v184_v54  ;;  %v248_v59 = vmul.f32 %v314_v12, %v216_v55 }
  0xe2   :  { %286 = vst [vmem:[%s499_s4 + $0x60] sm:$0xff] %v270_v51 }
  0xe3   :  { %281 = vst [vmem:[%s499_s4 + $0x38] sm:$0xff] %v265_v56  ;;  %289 = vst [vmem:[%s499_s4 + $0x78] sm:$0xff] %v273_v57  ;;  %v263_v60 = vadd.f32 %v315_v14, %v240_v58  ;;  %v271_v61 = vadd.f32 %v315_v14, %v248_v59 }
  0xe5   :  { %279 = vst [vmem:[%s499_s4 + $0x28] sm:$0xff] %v263_v60  ;;  %287 = vst [vmem:[%s499_s4 + $0x68] sm:$0xff] %v271_v61 }

// kernel: _lambda_.3
= control target key start
LH: loop header
LB: loop body
LE: loop exit
PB: predicated region body
PF: predicated region fallthrough
CT: control target
= control target key end

     0   :  { %vm554_vm0 = vcmask 523264   ;;  %s1793_s1 = inlined_call_operand.vmem [shape: bf16[576,128], index: 1, kind: input, shape index: {}]   ;;  %s1794_s0 = inlined_call_operand.vmem [shape: bf16[128,576], index: 0, kind: input, shape index: {}]   ;;  %s1795_s2 = inlined_call_operand.vmem [shape: f32[1,128], index: 2, kind: input, shape index: {}]   ;;  %s1796_s3 = inlined_call_operand.vmem [shape: f32[1,128], index: 3, kind: input, shape index: {}]   ;;  %s1797_s4 = inlined_call_operand.vmem [shape: bf16[128,128], index: 4, kind: output, shape index: {}]  }
   0x1   :  { %v1353_v0 = vld [vmem:[%s1793_s1 + $0x78] sm:$0xff]   ;;  %v1357_v4 = vld [vmem:[%s1793_s1 + $0x70] sm:$0xff]   ;;  %v1361_v8 = vld [vmem:[%s1793_s1 + $0x68] sm:$0xff]  }
   0x2   :  { %v1354_v1 = vld [vmem:[%s1793_s1 + $0xf8] sm:$0xff]   ;;  %1181 = vmatprep.subr.bf16.mxu0 %v1353_v0  ;;  %v1358_v5 = vld [vmem:[%s1793_s1 + $0xf0] sm:$0xff]   ;;  %v1362_v9 = vld [vmem:[%s1793_s1 + $0xe8] sm:$0xff]  }
   0x3   :  { %v1355_v2 = vld [vmem:[%s1793_s1 + $0x38] sm:$0xff]   ;;  %1245 = vmatprep.subr.bf16.mxu1 %v1354_v1  ;;  %v1359_v6 = vld [vmem:[%s1793_s1 + $0x30] sm:$0xff]   ;;  %v1363_v10 = vld [vmem:[%s1793_s1 + $0x28] sm:$0xff]  }
   0x4   :  { %v1356_v3 = vld [vmem:[%s1793_s1 + $0xb8] sm:$0xff]   ;;  %1182 = vmatpush3.bf16.msra.mxu0 %v1355_v2  ;;  %v1360_v7 = vld [vmem:[%s1793_s1 + $0xb0] sm:$0xff]   ;;  %v1364_v11 = vld [vmem:[%s1793_s1 + $0xa8] sm:$0xff]  }
   0x5   :  { %1246 = vmatpush3.bf16.msra.mxu1 %v1356_v3  ;;  %1183 = vmatprep.subr.bf16.mxu0 %v1357_v4  ;;  %v1365_v12 = vld [vmem:[%s1793_s1 + $0x60] sm:$0xff]   ;;  %v1369_v16 = vld [vmem:[%s1793_s1 + $0x58] sm:$0xff]   ;;  %v1373_v20 = vld [vmem:[%s1793_s1 + $0x50] sm:$0xff]  }
   0x6   :  { %1247 = vmatprep.subr.bf16.mxu1 %v1358_v5  ;;  %v1366_v13 = vld [vmem:[%s1793_s1 + $0xe0] sm:$0xff]   ;;  %v1370_v17 = vld [vmem:[%s1793_s1 + $0xd8] sm:$0xff]   ;;  %v1374_v21 = vld [vmem:[%s1793_s1 + $0xd0] sm:$0xff]  }
   0x7   :  { %v1367_v14 = vld [vmem:[%s1793_s1 + $0x20] sm:$0xff]   ;;  %v1371_v18 = vld [vmem:[%s1793_s1 + $0x18] sm:$0xff]   ;;  %v1375_v22 = vld [vmem:[%s1793_s1 + $0x10] sm:$0xff]  }
   0x8   :  { %1184 = vmatpush3.bf16.msra.mxu0 %v1359_v6  ;;  %v1368_v15 = vld [vmem:[%s1793_s1 + $0xa0] sm:$0xff]   ;;  %v1372_v19 = vld [vmem:[%s1793_s1 + $0x98] sm:$0xff]   ;;  %v1376_v23 = vld [vmem:[%s1793_s1 + $0x90] sm:$0xff]  }
   0x9   :  { %1248 = vmatpush3.bf16.msra.mxu1 %v1360_v7  ;;  %1185 = vmatprep.subr.bf16.mxu0 %v1361_v8  ;;  %v1377_v24 = vld [vmem:[%s1793_s1 + $0x48] sm:$0xff]   ;;  %v1381_v28 = vld [vmem:[%s1793_s1 + $0x40] sm:$0xff]   ;;  %v1391_v36 = vld [vmem:[%s1793_s1 + $0x118] sm:$0xff]  }
   0xa   :  { %1249 = vmatprep.subr.bf16.mxu1 %v1362_v9  ;;  %v1378_v25 = vld [vmem:[%s1793_s1 + $0xc8] sm:$0xff]   ;;  %v1382_v29 = vld [vmem:[%s1793_s1 + $0xc0] sm:$0xff]   ;;  %v1404_v42 = vld [vmem:[%s1793_s1 + $0x110] sm:$0xff]  }
   0xb   :  { %v1379_v26 = vld [vmem:[%s1793_s1 + $0x8] sm:$0xff]   ;;  %v1383_v30 = vld [vmem:[%s1793_s1] sm:$0xff]   ;;  %v1400_v43 = vld [vmem:[%s1794_s0 + $0x5c] ss:$20 sps:$4 sm:$0xff]  }
   0xc   :  { %1186 = vmatpush3.bf16.msra.mxu0 %v1363_v10  ;;  %v1380_v27 = vld [vmem:[%s1793_s1 + $0x88] sm:$0xff]   ;;  %v1384_v31 = vld [vmem:[%s1793_s1 + $0x80] sm:$0xff]   ;;  %v1405_v47 = vld [vmem:[%s1794_s0 + $0x7c] ss:$20 sps:$4 sm:$0xff]  }
   0xd   :  { %1250 = vmatpush3.bf16.msra.mxu1 %v1364_v11  ;;  %1187 = vmatprep.subr.bf16.mxu0 %v1365_v12  ;;  %v1385_v32 = vld [vmem:[%s1794_s0] ss:$20 sps:$4 sm:$0xff]   ;;  %v1387_v33 = vld [vmem:[%s1794_s0 + $0x4] ss:$20 sps:$4 sm:$0xff]   ;;  %v1388_v34 = vld [vmem:[%s1794_s0 + $0x8] ss:$20 sps:$4 sm:$0xff]  }
   0xe   :  { %1251 = vmatprep.subr.bf16.mxu1 %v1366_v13  ;;  %v1390_v35 = vld [vmem:[%s1794_s0 + $0xc] ss:$20 sps:$4 sm:$0xff]   ;;  %611 = vmatprep.mubr.bf16.mxu0 %v1387_v33  ;;  %v1394_v38 = vld [vmem:[%s1794_s0 + $0x34] ss:$20 sps:$4 sm:$0xff]   ;;  %v1397_v40 = vld [vmem:[%s1794_s0 + $0x30] ss:$20 sps:$4 sm:$0xff]  }
   0xf   :  { %708 = vmatprep.mubr.bf16.mxu1 %v1390_v35  ;;  %v1392_v37 = vld [vmem:[%s1794_s0 + $0x2c] ss:$20 sps:$4 sm:$0xff]   ;;  %v1396_v39 = vld [vmem:[%s1794_s0 + $0x28] ss:$20 sps:$4 sm:$0xff]   ;;  %v1402_v44 = vld [vmem:[%s1794_s0 + $0x50] ss:$20 sps:$4 sm:$0xff]  }
  0x10   :  { %1188 = vmatpush3.bf16.msra.mxu0 %v1367_v14  ;;  %v1398_v41 = vld [vmem:[%s1794_s0 + $0x54] ss:$20 sps:$4 sm:$0xff]   ;;  %v1403_v45 = vld [vmem:[%s1794_s0 + $0x58] ss:$20 sps:$4 sm:$0xff]   ;;  %v1430_v49 = vld [vmem:[%s1793_s1 + $0x100] sm:$0xff]  }
  0x11   :  { %1252 = vmatpush3.bf16.msra.mxu1 %v1368_v15  ;;  %1189 = vmatprep.subr.bf16.mxu0 %v1369_v16  ;;  %v1417_v46 = vld [vmem:[%s1793_s1 + $0x108] sm:$0xff]   ;;  %v1407_v48 = vld [vmem:[%s1794_s0 + $0x84] ss:$20 sps:$4 sm:$0xff]   ;;  %v1410_v51 = vld [vmem:[%s1794_s0 + $0x80] ss:$20 sps:$4 sm:$0xff]  }
  0x12   :  { %1253 = vmatprep.subr.bf16.mxu1 %v1370_v17  ;;  %v1409_v50 = vld [vmem:[%s1794_s0 + $0x78] ss:$20 sps:$4 sm:$0xff]   ;;  %v1415_v54 = vld [vmem:[%s1794_s0 + $0xa0] ss:$20 sps:$4 sm:$0xff]   ;;  %v1416_v55 = vld [vmem:[%s1794_s0 + $0xa8] ss:$20 sps:$4 sm:$0xff]  }
  0x13   :  { %v1411_v52 = vld [vmem:[%s1794_s0 + $0xa4] ss:$20 sps:$4 sm:$0xff]   ;;  %v1413_v53 = vld [vmem:[%s1794_s0 + $0xac] ss:$20 sps:$4 sm:$0xff]   ;;  %v1420_v57 = vld [vmem:[%s1794_s0 + $0xd4] ss:$20 sps:$4 sm:$0xff]  }
  0x14   :  { %1190 = vmatpush3.bf16.msra.mxu0 %v1371_v18  ;;  %v1418_v56 = vld [vmem:[%s1794_s0 + $0xcc] ss:$20 sps:$4 sm:$0xff]   ;;  %v1422_v58 = vld [vmem:[%s1794_s0 + $0xc8] ss:$20 sps:$4 sm:$0xff]   ;;  %v1423_v59 = vld [vmem:[%s1794_s0 + $0xd0] ss:$20 sps:$4 sm:$0xff]  }
  0x15   :  { %1254 = vmatpush3.bf16.msra.mxu1 %v1372_v19  ;;  %1191 = vmatprep.subr.bf16.mxu0 %v1373_v20  ;;  %v1424_v60 = vld [vmem:[%s1794_s0 + $0xf4] ss:$20 sps:$4 sm:$0xff]   ;;  %v1426_v61 = vld [vmem:[%s1794_s0 + $0xfc] ss:$20 sps:$4 sm:$0xff]   ;;  %v1429_v63 = vld [vmem:[%s1794_s0 + $0xf8] ss:$20 sps:$4 sm:$0xff]  }
  0x16   :  { %1255 = vmatprep.subr.bf16.mxu1 %v1374_v21  ;;  %v1428_v62 = vld [vmem:[%s1794_s0 + $0xf0] ss:$20 sps:$4 sm:$0xff]   ;;  %v1435_v2 = vld [vmem:[%s1794_s0 + $0x118] ss:$20 sps:$4 sm:$0xff]   ;;  %v1436_v3 = vld [vmem:[%s1794_s0 + $0x120] ss:$20 sps:$4 sm:$0xff]  }
  0x17   :  { %v1431_v0 = vld [vmem:[%s1794_s0 + $0x11c] ss:$20 sps:$4 sm:$0xff]   ;;  %v1433_v1 = vld [vmem:[%s1794_s0 + $0x124] ss:$20 sps:$4 sm:$0xff]   ;;  %v1441_v8 = vld [vmem:[%s1794_s0 + $0x60] ss:$20 sps:$4 sm:$0xff]  }
  0x18   :  { %1192 = vmatpush3.bf16.msra.mxu0 %v1375_v22  ;;  %v1437_v4 = vld [vmem:[%s1794_s0 + $0x10] ss:$20 sps:$4 sm:$0xff]   ;;  %v1439_v6 = vld [vmem:[%s1794_s0 + $0x38] ss:$20 sps:$4 sm:$0xff]   ;;  %v1442_v9 = vld [vmem:[%s1794_s0 + $0x100] ss:$20 sps:$4 sm:$0xff]  }
  0x19   :  { %1256 = vmatpush3.bf16.msra.mxu1 %v1376_v23  ;;  %1193 = vmatprep.subr.bf16.mxu0 %v1377_v24  ;;  %v1438_v5 = vld [vmem:[%s1794_s0 + $0xb0] ss:$20 sps:$4 sm:$0xff]   ;;  %v1440_v7 = vld [vmem:[%s1794_s0 + $0xd8] ss:$20 sps:$4 sm:$0xff]   ;;  %v1443_v10 = vld [vmem:[%s1794_s0 + $0x88] ss:$20 sps:$4 sm:$0xff]  }
  0x1a   :  { %1257 = vmatprep.subr.bf16.mxu1 %v1378_v25  ;;  %v1444_v11 = vld [vmem:[%s1794_s0 + $0x128] ss:$20 sps:$4 sm:$0xff]  }
  0x1c   :  { %1194 = vmatpush3.bf16.msra.mxu0 %v1379_v26 }
  0x1d   :  { %1258 = vmatpush3.bf16.msra.mxu1 %v1380_v27  ;;  %1195 = vmatprep.subr.bf16.mxu0 %v1381_v28 }
  0x1e   :  { %1259 = vmatprep.subr.bf16.mxu1 %v1382_v29 }
  0x20   :  { %1196 = vmatpush3.bf16.msra.mxu0 %v1383_v30 }
  0x21   :  { %1260 = vmatpush3.bf16.msra.mxu1 %v1384_v31  ;;  %1321 = vmatprep.subr.bf16.mxu0 %v1391_v36 }
  0x22   :  { %1345 = vmatprep.subr.bf16.mxu1 %v1391_v36 }
  0x23   :  { %612 = vmatmul.mubr.bf16.vlgmr.msra.gmra.mxu0 %v1385_v32 }
  0x24   :  { %709 = vmatmul.mubr.bf16.vlgmr.msra.gmra.mxu1 %v1388_v34  ;;  %1322 = vmatpush3.bf16.msra.mxu0 %v1391_v36 }
  0x25   :  { %1349 = vmatpush3.bf16.msra.mxu1 %v1391_v36  ;;  %619 = vmatprep.mubr.bf16.mxu0 %v1392_v37 }
  0x26   :  { %716 = vmatprep.mubr.bf16.mxu1 %v1394_v38  ;;  %1323 = vmatprep.subr.bf16.mxu0 %v1404_v42 }
  0x27   :  { %1346 = vmatprep.subr.bf16.mxu1 %v1404_v42 }
  0x28   :  { %1324 = vmatpush3.bf16.msra.mxu0 %v1404_v42 }
  0x29   :  { %1350 = vmatpush3.bf16.msra.mxu1 %v1404_v42  ;;  %1325 = vmatprep.subr.bf16.mxu0 %v1417_v46 }
  0x2a   :  { %1347 = vmatprep.subr.bf16.mxu1 %v1417_v46 }
  0x2b   :  { %620 = vmatmul.mubr.bf16.gmra.mxu0 %v1396_v39 }
  0x2c   :  { %717 = vmatmul.mubr.bf16.gmra.mxu1 %v1397_v40  ;;  %627 = vmatprep.mubr.bf16.mxu0 %v1398_v41 }
  0x2d   :  { %724 = vmatprep.mubr.bf16.mxu1 %v1400_v43  ;;  %1326 = vmatpush3.bf16.msra.mxu0 %v1417_v46 }
  0x2e   :  { %1351 = vmatpush3.bf16.msra.mxu1 %v1417_v46  ;;  %1327 = vmatprep.subr.bf16.mxu0 %v1430_v49 }
  0x2f   :  { %1348 = vmatprep.subr.bf16.mxu1 %v1430_v49 }
  0x31   :  { %1328 = vmatpush3.bf16.msra.mxu0 %v1430_v49 }
  0x32   :  { %1352 = vmatpush3.bf16.msra.mxu1 %v1430_v49 }
  0x33   :  { %628 = vmatmul.mubr.bf16.gmra.mxu0 %v1402_v44 }
  0x34   :  { %725 = vmatmul.mubr.bf16.gmra.mxu1 %v1403_v45  ;;  %635 = vmatprep.mubr.bf16.mxu0 %v1405_v47 }
  0x35   :  { %732 = vmatprep.mubr.bf16.mxu1 %v1407_v48 }
  0x3b   :  { %636 = vmatmul.mubr.bf16.gmra.mxu0 %v1409_v50 }
  0x3c   :  { %733 = vmatmul.mubr.bf16.gmra.mxu1 %v1410_v51  ;;  %643 = vmatprep.mubr.bf16.mxu0 %v1411_v52 }
  0x3d   :  { %740 = vmatprep.mubr.bf16.mxu1 %v1413_v53 }
  0x43   :  { %644 = vmatmul.mubr.bf16.gmra.mxu0 %v1415_v54 }
  0x44   :  { %741 = vmatmul.mubr.bf16.gmra.mxu1 %v1416_v55  ;;  %651 = vmatprep.mubr.bf16.mxu0 %v1418_v56 }
  0x45   :  { %748 = vmatprep.mubr.bf16.mxu1 %v1420_v57 }
  0x4b   :  { %652 = vmatmul.mubr.bf16.gmra.mxu0 %v1422_v58 }
  0x4c   :  { %749 = vmatmul.mubr.bf16.gmra.mxu1 %v1423_v59  ;;  %659 = vmatprep.mubr.bf16.mxu0 %v1424_v60 }
  0x4d   :  { %756 = vmatprep.mubr.bf16.mxu1 %v1426_v61 }
  0x53   :  { %660 = vmatmul.mubr.bf16.gmra.mxu0 %v1428_v62 }
  0x54   :  { %757 = vmatmul.mubr.bf16.gmra.mxu1 %v1429_v63  ;;  %667 = vmatprep.mubr.bf16.mxu0 %v1431_v0 }
  0x55   :  { %764 = vmatprep.mubr.bf16.mxu1 %v1433_v1 }
  0x5b   :  { %668 = vmatmul.mubr.bf16.gmra.mxu0 %v1435_v2 }
  0x5c   :  { %765 = vmatmul.mubr.bf16.gmra.mxu1 %v1436_v3  ;;  %1329 = vmatprep.mubr.msk.bf16.mxu0 %vm554_vm0, %v1437_v4 }
  0x5d   :  { %1337 = vmatprep.mubr.msk.bf16.mxu1 %vm554_vm0, %v1438_v5 }
  0x63   :  { %1330 = vmatmul.mubr.msk.bf16.vlgmr.msra.gmra.mxu0 %vm554_vm0, %v1439_v6 }
  0x64   :  { %1338 = vmatmul.mubr.msk.bf16.vlgmr.msra.gmra.mxu1 %vm554_vm0, %v1440_v7  ;;  %1333 = vmatprep.mubr.msk.bf16.mxu0 %vm554_vm0, %v1441_v8 }
  0x65   :  { %1341 = vmatprep.mubr.msk.bf16.mxu1 %vm554_vm0, %v1442_v9 }
  0x6b   :  { %1334 = vmatmul.mubr.msk.bf16.gmra.mxu0 %vm554_vm0, %v1443_v10 }
  0x6c   :  { %1342 = vmatmul.mubr.msk.bf16.gmra.mxu1 %vm554_vm0, %v1444_v11 }
  0xe3   :  { %v1197_v12 = vpop.f32.mrf.mxu0 }
  0xe4   :  { %v1261_v13 = vpop.f32.mrf.mxu1 }
  0xe5   :  { %v1198_v14 = vpop.f32.mrf.mxu0 }
  0xe6   :  { %v1199_v15 = vadd.f32 %v1198_v14, %v1197_v12  ;;  %v1262_v16 = vpop.f32.mrf.mxu1 }
  0xe7   :  { %v1263_v17 = vadd.f32 %v1262_v16, %v1261_v13  ;;  %v1200_v18 = vpop.f32.mrf.mxu0 }
  0xe8   :  { %v1264_v19 = vpop.f32.mrf.mxu1 }
  0xe9   :  { %v1201_v20 = vpop.f32.mrf.mxu0  ;;  %v1706_v21 = vadd.f32 %v1263_v17, %v1199_v15 }
  0xea   :  { %v1265_v22 = vpop.f32.mrf.mxu1  ;;  %v1202_v8 = vadd.f32 %v1201_v20, %v1200_v18 }
  0xeb   :  { %1798 = vst [vmem:[#allocation2_spill] sm:$0xff] %v1706_v21  ;;  %v1203_v23 = vpop.f32.mrf.mxu0  ;;  %v1266_v9 = vadd.f32 %v1265_v22, %v1264_v19 }
  0xec   :  { %v1267_v24 = vpop.f32.mrf.mxu1 }
  0xed   :  { %v1204_v25 = vpop.f32.mrf.mxu0 }
  0xee   :  { %v1268_v26 = vpop.f32.mrf.mxu1  ;;  %v1205_v11 = vadd.f32 %v1204_v25, %v1203_v23 }
  0xef   :  { %v1206_v27 = vpop.f32.mrf.mxu0  ;;  %v1269_v12 = vadd.f32 %v1268_v26, %v1267_v24 }
  0xf0   :  { %v1270_v28 = vpop.f32.mrf.mxu1 }
  0xf1   :  { %v1207_v29 = vpop.f32.mrf.mxu0 }
  0xf2   :  { %v1271_v30 = vpop.f32.mrf.mxu1  ;;  %v1208_v13 = vadd.f32 %v1207_v29, %v1206_v27 }
  0xf3   :  { %v1209_v31 = vpop.f32.mrf.mxu0  ;;  %v1272_v14 = vadd.f32 %v1271_v30, %v1270_v28 }
  0xf4   :  { %v1273_v32 = vpop.f32.mrf.mxu1 }
  0xf5   :  { %v1210_v33 = vpop.f32.mrf.mxu0 }
  0xf6   :  { %v1274_v34 = vpop.f32.mrf.mxu1  ;;  %v1211_v16 = vadd.f32 %v1210_v33, %v1209_v31 }
  0xf7   :  { %v1212_v35 = vpop.f32.mrf.mxu0  ;;  %v1275_v17 = vadd.f32 %v1274_v34, %v1273_v32  ;;  %v719_v32 = vadd.f32 %v1269_v12, %v1205_v11  ;;  %v722_v34 = vadd.f32 %v1272_v14, %v1208_v13 }
  0xf8   :  { %v1276_v36 = vpop.f32.mrf.mxu1 }
  0xf9   :  { %v1213_v37 = vpop.f32.mrf.mxu0 }
  0xfa   :  { %v1277_v38 = vpop.f32.mrf.mxu1  ;;  %v1214_v21 = vadd.f32 %v1213_v37, %v1212_v35  ;;  %v714_v35 = vadd.f32 %v1266_v9, %v1202_v8  ;;  %v1719_v37 = vld [vmem:[%s1795_s2] ss:$0 sm:$0xff] }
  0xfb   :  { %v1215_v39 = vpop.f32.mrf.mxu0 }
  0xfc   :  { %v1279_v40 = vpop.f32.mrf.mxu1 }
  0xfd   :  { %v1216_v41 = vpop.f32.mrf.mxu0 }
  0xfe   :  { %v1280_v42 = vpop.f32.mrf.mxu1 }
  0xff   :  { %v1218_v43 = vpop.f32.mrf.mxu0 }
 0x100   :  { %v1282_v44 = vpop.f32.mrf.mxu1 }
 0x101   :  { %v1219_v45 = vpop.f32.mrf.mxu0 }
 0x102   :  { %v1283_v46 = vpop.f32.mrf.mxu1  ;;  %v1220_v22 = vadd.f32 %v1219_v45, %v1218_v43 }
 0x103   :  { %v1221_v47 = vpop.f32.mrf.mxu0  ;;  %v1284_v23 = vadd.f32 %v1283_v46, %v1282_v44 }
 0x104   :  { %v1285_v48 = vpop.f32.mrf.mxu1 }
 0x105   :  { %v1222_v49 = vpop.f32.mrf.mxu0  ;;  %v1723_v46 = vadd.f32 %v1284_v23, %v1220_v22 }
 0x106   :  { %v1286_v50 = vpop.f32.mrf.mxu1  ;;  %v1223_v25 = vadd.f32 %v1222_v49, %v1221_v47 }
 0x107   :  { %v1224_v51 = vpop.f32.mrf.mxu0  ;;  %v1287_v24 = vadd.f32 %v1286_v50, %v1285_v48 }
 0x108   :  { %v1288_v52 = vpop.f32.mrf.mxu1 }
 0x109   :  { %v1225_v53 = vpop.f32.mrf.mxu0  ;;  %v743_v49 = vadd.f32 %v1287_v24, %v1223_v25 }
 0x10a   :  { %v1289_v54 = vpop.f32.mrf.mxu1  ;;  %v1226_v27 = vadd.f32 %v1225_v53, %v1224_v51 }
 0x10b   :  { %v1227_v55 = vpop.f32.mrf.mxu0  ;;  %v1290_v29 = vadd.f32 %v1289_v54, %v1288_v52 }
 0x10c   :  { %v1291_v56 = vpop.f32.mrf.mxu1 }
 0x10d   :  { %v1228_v57 = vpop.f32.mrf.mxu0  ;;  %v746_v51 = vadd.f32 %v1290_v29, %v1226_v27 }
 0x10e   :  { %v1292_v58 = vpop.f32.mrf.mxu1  ;;  %v1229_v18 = vadd.f32 %v1228_v57, %v1227_v55  ;;  %v1803_v55 = vld [vmem:[#allocation2_spill] sm:$0xff] }
 0x10f   :  { %v1230_v59 = vpop.f32.mrf.mxu0  ;;  %v1293_v20 = vadd.f32 %v1292_v58, %v1291_v56 }
 0x110   :  { %v1294_v60 = vpop.f32.mrf.mxu1 }
 0x111   :  { %v1231_v61 = vpop.f32.mrf.mxu0 }
 0x112   :  { %v1295_v62 = vpop.f32.mrf.mxu1  ;;  %v1232_v28 = vadd.f32 %v1231_v61, %v1230_v59 }
 0x113   :  { %v1233_v63 = vpop.f32.mrf.mxu0  ;;  %v1296_v30 = vadd.f32 %v1295_v62, %v1294_v60 }
 0x114   :  { %v1297_v0 = vpop.f32.mrf.mxu1 }
 0x115   :  { %v1234_v1 = vpop.f32.mrf.mxu0  ;;  %v754_v50 = vadd.f32 %v1296_v30, %v1232_v28 }
 0x116   :  { %v1298_v2 = vpop.f32.mrf.mxu1 }
 0x117   :  { %v1708_v3 = vpop.f32.mrf.mxu0  ;;  %v1299_v43 = vadd.f32 %v1298_v2, %v1297_v0 }
 0x118   :  { %1799 = vst [vmem:[#allocation3_spill] sm:$0xff] %v1708_v3  ;;  %v1710_v4 = vpop.f32.mrf.mxu1  ;;  %v1278_v3 = vadd.f32 %v1277_v38, %v1276_v36  ;;  %v751_v38 = vadd.f32 %v1293_v20, %v1229_v18 }
 0x119   :  { %1800 = vst [vmem:[#allocation4_spill] sm:$0xff] %v1710_v4  ;;  %v1712_v5 = vpop.f32.mrf.mxu0 }
 0x11a   :  { %1801 = vst [vmem:[#allocation5_spill] sm:$0xff] %v1712_v5  ;;  %v1714_v6 = vpop.f32.mrf.mxu1  ;;  %v1217_v5 = vadd.f32 %v1216_v41, %v1215_v39  ;;  %v1721_v41 = vadd.f32 %v1278_v3, %v1214_v21  ;;  %v1729_v21 = vld [vmem:[%s1796_s3] ss:$0 sm:$0xff] }
 0x11b   :  { %1802 = vst [vmem:[#allocation6_spill] sm:$0xff] %v1714_v6  ;;  %v1239_v7 = vpop.f32.mrf.mxu0  ;;  %v1281_v6 = vadd.f32 %v1280_v42, %v1279_v40  ;;  %v727_v40 = vadd.f32 %v1275_v17, %v1211_v16  ;;  %v1235_v42 = vadd.f32 %v1234_v1, %v1233_v63 }
 0x11c   :  { %v1303_v10 = vpop.f32.mrf.mxu1 }
 0x11d   :  { %v1240_v15 = vpop.f32.mrf.mxu0  ;;  %v735_v39 = vadd.f32 %v1281_v6, %v1217_v5  ;;  %v759_v5 = vadd.f32 %v1299_v43, %v1235_v42 }
 0x11e   :  { %v1304_v4 = vpop.f32.mrf.mxu1  ;;  %v1241_v52 = vadd.f32 %v1240_v15, %v1239_v7 }
 0x11f   :  { %v1242_v19 = vpop.f32.mrf.mxu0  ;;  %v1305_v53 = vadd.f32 %v1304_v4, %v1303_v10  ;;  %v1804_v63 = vld [vmem:[#allocation3_spill] sm:$0xff] }
 0x120   :  { %v1306_v26 = vpop.f32.mrf.mxu1  ;;  %v1806_v6 = vld [vmem:[#allocation4_spill] sm:$0xff] }
 0x121   :  { %v1243_v31 = vpop.f32.mrf.mxu0  ;;  %v1805_v0 = vld [vmem:[#allocation5_spill] sm:$0xff]  ;;  %v767_v17 = vadd.f32 %v1305_v53, %v1241_v52 }
 0x122   :  { %v1307_v33 = vpop.f32.mrf.mxu1  ;;  %v1244_v58 = vadd.f32 %v1243_v31, %v1242_v19  ;;  %v1238_v1 = vadd.f32 %v1805_v0, %v1804_v63  ;;  %v1807_v7 = vld [vmem:[#allocation6_spill] sm:$0xff] }
 0x123   :  { %v1331_v36 = vpop.f32.mrf.mxu0  ;;  %v1308_v59 = vadd.f32 %v1307_v33, %v1306_v26  ;;  %v1302_v8 = vadd.f32 %v1807_v7, %v1806_v6 }
 0x124   :  { %v816_v44 = vadd.f32 %v1331_v36, %v719_v32  ;;  %v1339_v45 = vpop.f32.mrf.mxu1 }
 0x125   :  { %v848_v47 = vadd.f32 %v1339_v45, %v751_v38  ;;  %v807_v48 = vpop.f32.mrf.mxu0  ;;  %v770_v23 = vadd.f32 %v1308_v59, %v1244_v58 }
 0x126   :  { %v879_v54 = vmul.f32 %v1719_v37, %v816_v44  ;;  %v808_v56 = vadd.f32 %v807_v48, %v1803_v55  ;;  %v839_v57 = vpop.f32.mrf.mxu1 }
 0x127   :  { %v887_v60 = vmul.f32 %v1719_v37, %v848_v47  ;;  %v840_v61 = vadd.f32 %v839_v57, %v743_v49  ;;  %v1332_v62 = vpop.f32.mrf.mxu0 }
 0x128   :  { %v877_v2 = vmul.f32 %v1719_v37, %v808_v56  ;;  %v819_v3 = vadd.f32 %v1332_v62, %v722_v34  ;;  %v1340_v4 = vpop.f32.mrf.mxu1  ;;  %v902_v9 = vadd.f32 %v1729_v21, %v879_v54 }
 0x129   :  { %v885_v10 = vmul.f32 %v1719_v37, %v840_v61  ;;  %v851_v11 = vadd.f32 %v1340_v4, %v754_v50  ;;  %v810_v12 = vpop.f32.mrf.mxu0  ;;  %v910_v13 = vadd.f32 %v1729_v21, %v887_v60  ;;  %v762_v60 = vadd.f32 %v1302_v8, %v1238_v1 }
 0x12a   :  { %v880_v14 = vmul.f32 %v1719_v37, %v819_v3  ;;  %v811_v15 = vadd.f32 %v810_v12, %v714_v35  ;;  %v842_v16 = vpop.f32.mrf.mxu1  ;;  %v900_v18 = vadd.f32 %v1729_v21, %v877_v2  ;;  %v918_v28 = vmax.f32 %v902_v9, 0.0 }
 0x12b   :  { %v888_v20 = vmul.f32 %v1719_v37, %v851_v11  ;;  %v843_v19 = vadd.f32 %v842_v16, %v746_v51  ;;  %v1335_v22 = vpop.f32.mrf.mxu0  ;;  %v908_v25 = vadd.f32 %v1729_v21, %v885_v10  ;;  %v926_v34 = vmax.f32 %v910_v13, 0.0 }
 0x12c   :  { %v903_v24 = vadd.f32 %v1729_v21, %v880_v14  ;;  %v878_v26 = vmul.f32 %v1719_v37, %v811_v15  ;;  %v832_v27 = vadd.f32 %v1335_v22, %v735_v39  ;;  %v1343_v29 = vpop.f32.mrf.mxu1  ;;  %v916_v43 = vmax.f32 %v900_v18, 0.0 }
 0x12d   :  { %v911_v30 = vadd.f32 %v1729_v21, %v888_v20  ;;  %v886_v31 = vmul.f32 %v1719_v37, %v843_v19  ;;  %v864_v33 = vadd.f32 %v1343_v29, %v767_v17  ;;  %v823_v32 = vpop.f32.mrf.mxu0  ;;  %v924_v48 = vmax.f32 %v908_v25, 0.0 }
 0x12e   :  { %v919_v35 = vmax.f32 %v903_v24, 0.0  ;;  %v901_v36 = vadd.f32 %v1729_v21, %v878_v26  ;;  %v824_v38 = vadd.f32 %v823_v32, %v727_v40  ;;  %v855_v42 = vpop.f32.mrf.mxu1  ;;  %v883_v51 = vmul.f32 %v1719_v37, %v832_v27 }
 0x12f   :  { %v927_v44 = vmax.f32 %v911_v30, 0.0  ;;  %v909_v45 = vadd.f32 %v1729_v21, %v886_v31  ;;  %v856_v47 = vadd.f32 %v855_v42, %v759_v5  ;;  %v1336_v39 = vpop.f32.mrf.mxu0  ;;  %v891_v55 = vmul.f32 %v1719_v37, %v864_v33 }
 0x130   :  { %v1142_v49 = vpack.c.bf16 %v919_v35, %v918_v28  ;;  %v917_v50 = vmax.f32 %v901_v36, 0.0  ;;  %v1344_v52 = vpop.f32.mrf.mxu1  ;;  %v881_v56 = vmul.f32 %v1719_v37, %v824_v38  ;;  %v835_v59 = vadd.f32 %v1336_v39, %v1723_v46 }
 0x131   :  { %v1162_v53 = vpack.c.bf16 %v927_v44, %v926_v34  ;;  %v925_v54 = vmax.f32 %v909_v45, 0.0  ;;  %v826_v40 = vpop.f32.mrf.mxu0  ;;  %v889_v58 = vmul.f32 %v1719_v37, %v856_v47  ;;  %v867_v63 = vadd.f32 %v1344_v52, %v770_v23 }
 0x132   :  { %1174 = vst [vmem:[%s1797_s4 + $0x8] sm:$0xff] %v1142_v49   ;;  %v1137_v57 = vpack.c.bf16 %v917_v50, %v916_v43  ;;  %v858_v61 = vpop.f32.mrf.mxu1  ;;  %v906_v0 = vadd.f32 %v1729_v21, %v883_v51  ;;  %v884_v2 = vmul.f32 %v1719_v37, %v835_v59  ;;  %v827_v3 = vadd.f32 %v826_v40, %v1721_v41 }
 0x133   :  { %1178 = vst [vmem:[%s1797_s4 + $0x28] sm:$0xff] %v1162_v53   ;;  %v1157_v62 = vpack.c.bf16 %v925_v54, %v924_v48  ;;  %v859_v4 = vadd.f32 %v858_v61, %v762_v60  ;;  %v914_v46 = vadd.f32 %v1729_v21, %v891_v55  ;;  %v904_v1 = vadd.f32 %v1729_v21, %v881_v56 }
 0x134   :  { %1138 = vst [vmem:[%s1797_s4] sm:$0xff] %v1137_v57   ;;  %v892_v5 = vmul.f32 %v1719_v37, %v867_v63  ;;  %v912_v6 = vadd.f32 %v1729_v21, %v889_v58  ;;  %v907_v7 = vadd.f32 %v1729_v21, %v884_v2  ;;  %v882_v8 = vmul.f32 %v1719_v37, %v827_v3 }
 0x135   :  { %1177 = vst [vmem:[%s1797_s4 + $0x20] sm:$0xff] %v1157_v62   ;;  %v890_v9 = vmul.f32 %v1719_v37, %v859_v4  ;;  %v922_v10 = vmax.f32 %v906_v0, 0.0  ;;  %v930_v14 = vmax.f32 %v914_v46, 0.0  ;;  %v920_v15 = vmax.f32 %v904_v1, 0.0 }
 0x136   :  { %v915_v41 = vadd.f32 %v1729_v21, %v892_v5  ;;  %v923_v11 = vmax.f32 %v907_v7, 0.0  ;;  %v905_v12 = vadd.f32 %v1729_v21, %v882_v8  ;;  %v928_v17 = vmax.f32 %v912_v6, 0.0 }
 0x137   :  { %v913_v13 = vadd.f32 %v1729_v21, %v890_v9 }
 0x138   :  { %v931_v16 = vmax.f32 %v915_v41, 0.0  ;;  %v1152_v18 = vpack.c.bf16 %v923_v11, %v922_v10  ;;  %v921_v20 = vmax.f32 %v905_v12, 0.0 }
 0x139   :  { %v929_v19 = vmax.f32 %v913_v13, 0.0 }
 0x13a   :  { %v1172_v22 = vpack.c.bf16 %v931_v16, %v930_v14  ;;  %1176 = vst [vmem:[%s1797_s4 + $0x18] sm:$0xff] %v1152_v18   ;;  %v1147_v37 = vpack.c.bf16 %v921_v20, %v920_v15 }
 0x13b   :  { %v1167_v23 = vpack.c.bf16 %v929_v19, %v928_v17 }
 0x13c   :  { %1180 = vst [vmem:[%s1797_s4 + $0x38] sm:$0xff] %v1172_v22   ;;  %1175 = vst [vmem:[%s1797_s4 + $0x10] sm:$0xff] %v1147_v37  }
 0x13d   :  { %1179 = vst [vmem:[%s1797_s4 + $0x30] sm:$0xff] %v1167_v23  }

// kernel: _lambda_.5
= control target key start
LH: loop header
LB: loop body
LE: loop exit
PB: predicated region body
PF: predicated region fallthrough
CT: control target
= control target key end

     0   :  { %vm207_vm0 = vsmask.f32 7424  ;;  %vm170_vm1 = vcmask 1043456   ;;  %vm733_vm2 = vcmask 1046528   ;;  %vm1010_vm3 = vcmask 1042432   ;;  %s5104_s2 = inlined_call_operand.vmem [shape: bf16[1152,128], index: 2, kind: input, shape index: {}]   ;;  %s5105_s0 = inlined_call_operand.vmem [shape: bf16[432,128], index: 0, kind: input, shape index: {}, may-alias: {0,1}]   ;;  %s5106_s1 = inlined_call_operand.vmem [shape: bf16[432,128], index: 1, kind: input, shape index: {}, may-alias: {0,1}]   ;;  %s5107_s3 = inlined_call_operand.vmem [shape: f32[1,128], index: 3, kind: input, shape index: {}]   ;;  %s5108_s4 = inlined_call_operand.vmem [shape: f32[1,128], index: 4, kind: input, shape index: {}]   ;;  %s5109_s5 = inlined_call_operand.vmem [shape: f32[216,128], index: 5, kind: input, shape index: {}]   ;;  %s5110_s6 = inlined_call_operand.vmem [shape: f32[216,128], index: 6, kind: output, shape index: {}]  }
   0x1   :  { %v3614_v0 = vld [vmem:[%s5104_s2 + $0x78] sm:$0xff]   ;;  %v3615_v1 = vld [vmem:[%s5104_s2 + $0x70] sm:$0xff]   ;;  %v3616_v2 = vld [vmem:[%s5104_s2 + $0x68] sm:$0xff]   ;;  %vm1289_vm4 = vsmask.f32 2304  ;;  %vm1603_vm5 = vcmask 1041408  }
   0x2   :  { %3202 = vmatprep.subr.bf16.mxu0 %v3614_v0  ;;  %3598 = vmatprep.subr.bf16.mxu1 %v3614_v0  ;;  %v3617_v3 = vld [vmem:[%s5104_s2 + $0x60] sm:$0xff]   ;;  %v3770_v5 = vld [vmem:[%s5105_s0 + $0x8] sm:$0xff]   ;;  %v3618_v6 = vld [vmem:[%s5104_s2 + $0x58] sm:$0xff]   ;;  %vm1882_vm6 = vcmask 1045504   ;;  %vm2159_vm7 = vsmask.f32 5376 }
   0x3   :  { %3203 = vmatpush3.bf16.msra.mxu0 %v3614_v0  ;;  %3606 = vmatpush3.bf16.msra.mxu1 %v3614_v0  ;;  %v3765_v4 = vld [vmem:[%s5105_s0] sm:$0xff]   ;;  %v3778_v9 = vshll.u32 %v3770_v5, 16  ;;  %v3788_v11 = vld [vmem:[%s5105_s0 + $0x48] sm:$0xff]   ;;  %v3619_v19 = vld [vmem:[%s5104_s2 + $0x50] sm:$0xff]   ;;  %v3834_v29 = vshrl.u32 %v3770_v5, 16  ;;  %vm2464_vm8 = vcmask 1044480  }
   0x4   :  { %3204 = vmatprep.subr.bf16.mxu0 %v3615_v1  ;;  %3599 = vmatprep.subr.bf16.mxu1 %v3615_v1  ;;  %v209_v7 = vshrl.u32 %v3765_v4, 16  ;;  %v211_v8 = vshll.u32 %v3765_v4, 16  ;;  %v3783_v10 = vld [vmem:[%s5105_s0 + $0x40] sm:$0xff]   ;;  %v3800_v16 = vshll.u32 %v3788_v11, 16  ;;  %v3816_v23 = vld [vmem:[%s5105_s0 + $0x10] sm:$0xff]   ;;  %v3620_v26 = vld [vmem:[%s5104_s2 + $0x48] sm:$0xff]  }
   0x5   :  { %v218_v13 = vrot.slane %v3778_v9, 1  ;;  %v3794_v14 = vshll.u32 %v3783_v10, 16  ;;  %v3797_v15 = vshrl.u32 %v3783_v10, 16  ;;  %v3821_v24 = vld [vmem:[%s5105_s0 + $0x50] sm:$0xff]   ;;  %v3828_v27 = vshll.u32 %v3816_v23, 16  ;;  %v3621_v28 = vld [vmem:[%s5104_s2 + $0x40] sm:$0xff]  }
   0x6   :  { %v213_v12 = vrot.slane %v211_v8, 1  ;;  %v282_v20 = vrot.slane %v3800_v16, 1  ;;  %v3837_v30 = vshrl.u32 %v3788_v11, 16  ;;  %v3842_v31 = vld [vmem:[%s5105_s0 + $0x18] sm:$0xff]   ;;  %v3845_v32 = vshll.u32 %v3821_v24, 16  ;;  %v3855_v34 = vld [vmem:[%s5105_s0 + $0x20] sm:$0xff]  }
   0x7   :  { %3205 = vmatpush3.bf16.msra.mxu0 %v3615_v1  ;;  %3607 = vmatpush3.bf16.msra.mxu1 %v3615_v1  ;;  %v274_v18 = vrot.slane %v3794_v14, 1  ;;  %v3850_v33 = vld [vmem:[%s5105_s0 + $0x58] sm:$0xff]   ;;  %v226_v35 = vrot.slane %v3828_v27, 1  ;;  %v3859_v36 = vshrl.u32 %v3816_v23, 16  ;;  %v3862_v37 = vshrl.u32 %v3821_v24, 16  ;;  %v3879_v44 = vld [vmem:[%s5105_s0 + $0x60] sm:$0xff]  }
   0x8   :  { %3206 = vmatprep.subr.bf16.mxu0 %v3616_v2  ;;  %3600 = vmatprep.subr.bf16.mxu1 %v3616_v2  ;;  %v214_v17 = vor.u32 %v213_v12, %v209_v7  ;;  %v3628_v38 = vld [vmem:[%s5104_s2 + $0x38] sm:$0xff]   ;;  %v3868_v39 = vshll.u32 %v3842_v31, 16  ;;  %v3871_v40 = vshll.u32 %v3850_v33, 16  ;;  %v222_v41 = vor.u32 %v3834_v29, %v218_v13  ;;  %v3893_v48 = vld [vmem:[%s5105_s0 + $0x28] sm:$0xff]   ;;  %v3630_v49 = vld [vmem:[%s5104_s2 + $0x30] sm:$0xff]  }
   0x9   :  { %v278_v22 = vor.u32 %v3797_v15, %v274_v18  ;;  %v286_v42 = vor.u32 %v3837_v30, %v282_v20  ;;  %v290_v43 = vrot.slane %v3845_v32, 1  ;;  %v3629_v45 = vld [vmem:[%s5104_s2 + $0xb8] sm:$0xff]   ;;  %v3885_v46 = vshll.u32 %v3855_v34, 16  ;;  %v3631_v50 = vld [vmem:[%s5104_s2 + $0xb0] sm:$0xff]   ;;  %v3644_v62 = vld [vmem:[%s5105_s0 + $0x68] ss:$0 sps:$4 sm:$0xff]  }
   0xa   :  { %v219_v21 = vsel %vm207_vm0, %v214_v17, %v218_v13  ;;  %v3888_v47 = vshrl.u32 %v3842_v31, 16  ;;  %v230_v51 = vor.u32 %v3859_v36, %v226_v35  ;;  %v234_v52 = vrot.slane %v3868_v39, 1  ;;  %v3645_v63 = vld [vmem:[%s5106_s1 + $0x6c] ss:$0 sps:$4 sm:$0xff]   ;;  %v3937_v13 = vld [vmem:[%s5105_s0 + $0x30] sm:$0xff]  }
   0xb   :  { %3207 = vmatpush3.bf16.msra.mxu0 %v3616_v2  ;;  %3608 = vmatpush3.bf16.msra.mxu1 %v3616_v2  ;;  %v283_v25 = vsel %vm207_vm0, %v278_v22, %v282_v20  ;;  %v294_v53 = vor.u32 %v3862_v37, %v290_v43  ;;  %v298_v54 = vrot.slane %v3871_v40, 1  ;;  %v227_v55 = vsel %vm207_vm0, %v222_v41, %v226_v35  ;;  %v3635_v20 = vld [vmem:[%s5104_s2 + $0xa8] sm:$0xff]   ;;  %v3638_v22 = vld [vmem:[%s5104_s2 + $0x20] sm:$0xff]  }
   0xc   :  { %3208 = vmatprep.subr.bf16.mxu0 %v3617_v3  ;;  %3601 = vmatprep.subr.bf16.mxu1 %v3617_v3  ;;  %v291_v56 = vsel %vm207_vm0, %v286_v42, %v290_v43  ;;  %v3908_v57 = vshrl.u32 %v3850_v33, 16  ;;  %v3911_v58 = vshll.u32 %v3879_v44, 16  ;;  %v242_v59 = vrot.slane %v3885_v46, 1 }
   0xd   :  { %3218 = vmatprep.mubr.bf16.mxu0 %v219_v21  ;;  %3234 = vmatprep.mubr.bf16.mxu1 %v283_v25  ;;  %v3915_v60 = vshrl.u32 %v3855_v34, 16  ;;  %v3918_v61 = vshll.u32 %v3893_v48, 16  ;;  %v3927_v0 = vshrl.u32 %v3879_v44, 16  ;;  %v235_v1 = vsel %vm207_vm0, %v230_v51, %v234_v52  ;;  %v3639_v51 = vld [vmem:[%s5104_s2 + $0xa0] sm:$0xff]  }
   0xe   :  { %v299_v2 = vsel %vm207_vm0, %v294_v53, %v298_v54  ;;  %v306_v12 = vrot.slane %v3911_v58, 1  ;;  %v3940_v17 = vsel %vm170_vm1, %v3644_v62, %v3645_v63  ;;  %v3966_v43 = vshrl.u32 %v3893_v48, 16  ;;  %v3643_v62 = vld [vmem:[%s5104_s2 + $0x98] sm:$0xff]  }
   0xf   :  { %3209 = vmatpush3.bf16.msra.mxu0 %v3617_v3  ;;  %3609 = vmatpush3.bf16.msra.mxu1 %v3617_v3  ;;  %v238_v3 = vor.u32 %v3888_v47, %v234_v52  ;;  %v3949_v21 = vshll.u32 %v3940_v17, 16  ;;  %v246_v25 = vor.u32 %v3915_v60, %v242_v59  ;;  %v3975_v52 = vshrl.u32 %v3937_v13, 16 }
  0x10   :  { %3210 = vmatprep.subr.bf16.mxu0 %v3618_v6  ;;  %3602 = vmatprep.subr.bf16.mxu1 %v3618_v6  ;;  %v3980_v53 = vshrl.u32 %v3940_v17, 16 }
  0x11   :  { %v313_v35 = vrot.slane %v3949_v21, 1  ;;  %v243_v41 = vsel %vm207_vm0, %v238_v3, %v242_v59  ;;  %v3642_v59 = vld [vmem:[%s5104_s2 + $0x18] sm:$0xff]  }
  0x13   :  { %3211 = vmatpush3.bf16.msra.mxu0 %v3618_v6  ;;  %3610 = vmatpush3.bf16.msra.mxu1 %v3618_v6  ;;  %v302_v6 = vor.u32 %v3908_v57, %v298_v54  ;;  %v317_v63 = vor.u32 %v3980_v53, %v313_v35 }
  0x14   :  { %3212 = vmatprep.subr.bf16.mxu0 %v3619_v19  ;;  %3603 = vmatprep.subr.bf16.mxu1 %v3619_v19 }
  0x15   :  { %v307_v42 = vsel %vm207_vm0, %v302_v6, %v306_v12  ;;  %v3646_v6 = vld [vmem:[%s5104_s2 + $0x10] sm:$0xff]  }
  0x17   :  { %3213 = vmatpush3.bf16.msra.mxu0 %v3619_v19  ;;  %3611 = vmatpush3.bf16.msra.mxu1 %v3619_v19  ;;  %v3634_v19 = vld [vmem:[%s5104_s2 + $0x28] sm:$0xff]  }
  0x18   :  { %3214 = vmatprep.subr.bf16.mxu0 %v3620_v26  ;;  %3604 = vmatprep.subr.bf16.mxu1 %v3620_v26 }
  0x1b   :  { %3215 = vmatpush3.bf16.msra.mxu0 %v3620_v26  ;;  %3612 = vmatpush3.bf16.msra.mxu1 %v3620_v26  ;;  %v250_v26 = vrot.slane %v3918_v61, 1 }
  0x1c   :  { %3216 = vmatprep.subr.bf16.mxu0 %v3621_v28  ;;  %3605 = vmatprep.subr.bf16.mxu1 %v3621_v28 }
  0x1f   :  { %3217 = vmatpush3.bf16.msra.mxu0 %v3621_v28  ;;  %3613 = vmatpush3.bf16.msra.mxu1 %v3621_v28  ;;  %v310_v28 = vor.u32 %v3927_v0, %v306_v12 }
  0x20   :  { %3246 = vmatprep.subr.bf16.mxu1 %v3628_v38  ;;  %3290 = vmatprep.subr.bf16.mxu0 %v3629_v45 }
  0x22   :  { %3219 = vmatmul.mubr.bf16.vlgmr.msra.gmra.mxu0 %v227_v55  ;;  %3235 = vmatmul.mubr.bf16.vlgmr.msra.gmra.mxu1 %v291_v56  ;;  %v254_v55 = vor.u32 %v3966_v43, %v250_v26 }
  0x23   :  { %3247 = vmatpush3.bf16.msra.mxu1 %v3628_v38  ;;  %3291 = vmatpush3.bf16.msra.mxu0 %v3629_v45  ;;  %v3961_v38 = vld [vmem:[%s5105_s0 + $0x38] sm:$0xff]   ;;  %v3969_v45 = vshll.u32 %v3937_v13, 16 }
  0x24   :  { %3248 = vmatprep.subr.bf16.mxu1 %v3630_v49  ;;  %3292 = vmatprep.subr.bf16.mxu0 %v3631_v50  ;;  %v3983_v54 = vshll.u32 %v3961_v38, 16  ;;  %v4001_v12 = vshrl.u32 %v3961_v38, 16 }
  0x25   :  { %3222 = vmatprep.mubr.bf16.mxu0 %v235_v1  ;;  %3238 = vmatprep.mubr.bf16.mxu1 %v299_v2  ;;  %v258_v56 = vrot.slane %v3969_v45, 1 }
  0x26   :  { %v266_v2 = vrot.slane %v3983_v54, 1 }
  0x27   :  { %3249 = vmatpush3.bf16.msra.mxu1 %v3630_v49  ;;  %3293 = vmatpush3.bf16.msra.mxu0 %v3631_v50  ;;  %v251_v49 = vsel %vm207_vm0, %v246_v25, %v250_v26  ;;  %v314_v50 = vsel %vm207_vm0, %v310_v28, %v313_v35  ;;  %v262_v1 = vor.u32 %v3975_v52, %v258_v56  ;;  %v3649_v25 = vld [vmem:[%s5104_s2 + $0x8] sm:$0xff]   ;;  %v734_v28 = vrot.slane %v3765_v4, 1 }
  0x28   :  { %3250 = vmatprep.subr.bf16.mxu1 %v3634_v19  ;;  %3294 = vmatprep.subr.bf16.mxu0 %v3635_v20  ;;  %v259_v3 = vsel %vm207_vm0, %v254_v55, %v258_v56  ;;  %v3650_v26 = vld [vmem:[%s5104_s2 + $0x88] sm:$0xff]   ;;  %v735_v35 = vrot.slane %v3770_v5, 1  ;;  %v3653_v56 = vld [vmem:[%s5104_s2 + $0xf8] sm:$0xff]  }
  0x2a   :  { %3223 = vmatmul.mubr.bf16.gmra.mxu0 %v243_v41  ;;  %3239 = vmatmul.mubr.bf16.gmra.mxu1 %v307_v42  ;;  %v3651_v42 = vld [vmem:[%s5104_s2] sm:$0xff]  }
  0x2b   :  { %3251 = vmatpush3.bf16.msra.mxu1 %v3634_v19  ;;  %3295 = vmatpush3.bf16.msra.mxu0 %v3635_v20  ;;  %v3647_v19 = vld [vmem:[%s5104_s2 + $0x90] sm:$0xff]   ;;  %v267_v20 = vsel %vm207_vm0, %v262_v1, %v266_v2 }
  0x2c   :  { %3252 = vmatprep.subr.bf16.mxu1 %v3638_v22  ;;  %3296 = vmatprep.subr.bf16.mxu0 %v3639_v51 }
  0x2d   :  { %3226 = vmatprep.mubr.bf16.mxu0 %v251_v49  ;;  %3242 = vmatprep.mubr.bf16.mxu1 %v314_v50  ;;  %v3652_v49 = vld [vmem:[%s5104_s2 + $0x80] sm:$0xff]   ;;  %v4032_v50 = vrot.slane %v211_v8, 6  ;;  %v3654_v8 = vld [vmem:[%s5104_s2 + $0x138] sm:$0xff]  }
  0x2f   :  { %3253 = vmatpush3.bf16.msra.mxu1 %v3638_v22  ;;  %3297 = vmatpush3.bf16.msra.mxu0 %v3639_v51  ;;  %v270_v22 = vor.u32 %v4001_v12, %v266_v2  ;;  %v4025_v51 = vrot.slane %v209_v7, 5  ;;  %v737_v7 = vrot.slane %v3816_v23, 1  ;;  %v3656_v2 = vld [vmem:[%s5104_s2 + $0x130] sm:$0xff]  }
  0x30   :  { %3254 = vmatprep.subr.bf16.mxu1 %v3642_v59  ;;  %3298 = vmatprep.subr.bf16.mxu0 %v3643_v62 }
  0x31   :  { %v275_v41 = vsel %vm207_vm0, %v270_v22, %v274_v18  ;;  %v736_v18 = vsel %vm733_vm2, %v734_v28, %v735_v35  ;;  %v1292_v55 = vor.u32 %v4032_v50, %v4025_v51  ;;  %v3660_v28 = vld [vmem:[%s5104_s2 + $0x120] sm:$0xff]   ;;  %v1305_v50 = vrot.slane %v3915_v60, 5 }
  0x32   :  { %3227 = vmatmul.mubr.bf16.gmra.mxu0 %v259_v3  ;;  %3243 = vmatmul.mubr.bf16.gmra.mxu1 %v317_v63  ;;  %v3655_v63 = vld [vmem:[%s5104_s2 + $0xf0] sm:$0xff]   ;;  %v741_v3 = vrot.slane %v3855_v34, 1 }
  0x33   :  { %3255 = vmatpush3.bf16.msra.mxu1 %v3642_v59  ;;  %3299 = vmatpush3.bf16.msra.mxu0 %v3643_v62  ;;  %v739_v59 = vrot.slane %v3842_v31, 1  ;;  %v738_v62 = vsel %vm733_vm2, %v735_v35, %v737_v7  ;;  %v745_v35 = vrot.slane %v3937_v13, 1 }
  0x34   :  { %3256 = vmatprep.subr.bf16.mxu1 %v3646_v6  ;;  %3300 = vmatprep.subr.bf16.mxu0 %v3647_v19 }
  0x35   :  { %3230 = vmatprep.mubr.bf16.mxu0 %v267_v20  ;;  %3262 = vmatprep.mubr.bf16.mxu1 %v3765_v4  ;;  %v740_v1 = vsel %vm733_vm2, %v737_v7, %v739_v59  ;;  %v3658_v20 = vld [vmem:[%s5104_s2 + $0x128] sm:$0xff]   ;;  %v742_v22 = vsel %vm733_vm2, %v739_v59, %v741_v3  ;;  %v749_v59 = vrot.slane %v3783_v10, 1 }
  0x37   :  { %3257 = vmatpush3.bf16.msra.mxu1 %v3646_v6  ;;  %3301 = vmatpush3.bf16.msra.mxu0 %v3647_v19  ;;  %v3657_v6 = vld [vmem:[%s5104_s2 + $0xe8] sm:$0xff]   ;;  %v743_v19 = vrot.slane %v3893_v48, 1 }
  0x38   :  { %3258 = vmatprep.subr.bf16.mxu1 %v3649_v25  ;;  %3302 = vmatprep.subr.bf16.mxu0 %v3650_v26 }
  0x3a   :  { %3231 = vmatmul.mubr.bf16.gmra.mxu0 %v275_v41  ;;  %v747_v41 = vrot.slane %v3961_v38, 1 }
  0x3b   :  { %3259 = vmatpush3.bf16.msra.mxu1 %v3649_v25  ;;  %3303 = vmatpush3.bf16.msra.mxu0 %v3650_v26  ;;  %v744_v25 = vsel %vm733_vm2, %v741_v3, %v743_v19  ;;  %v3659_v26 = vld [vmem:[%s5104_s2 + $0xe0] sm:$0xff]  }
  0x3c   :  { %3260 = vmatprep.subr.bf16.mxu1 %v3651_v42  ;;  %3304 = vmatprep.subr.bf16.mxu0 %v3652_v49  ;;  %v748_v7 = vsel %vm733_vm2, %v745_v35, %v747_v41 }
  0x3d   :  { %3306 = vmatprep.mubr.bf16.mxu0 %v736_v18  ;;  %v746_v18 = vsel %vm733_vm2, %v743_v19, %v745_v35  ;;  %v3668_v19 = vld [vmem:[%s5104_s2 + $0x100] sm:$0xff]   ;;  %v757_v35 = vrot.slane %v3879_v44, 1 }
  0x3f   :  { %3261 = vmatpush3.bf16.msra.mxu1 %v3651_v42  ;;  %3305 = vmatpush3.bf16.msra.mxu0 %v3652_v49  ;;  %v3661_v42 = vld [vmem:[%s5104_s2 + $0xd8] sm:$0xff]  }
  0x40   :  { %3334 = vmatprep.subr.bf16.mxu1 %v3653_v56  ;;  %3378 = vmatprep.subr.bf16.mxu0 %v3654_v8  ;;  %v3662_v49 = vld [vmem:[%s5104_s2 + $0x118] sm:$0xff]  }
  0x42   :  { %3263 = vmatmul.mubr.bf16.vlgmr.msra.gmra.mxu1 %v3770_v5  ;;  %3307 = vmatmul.mubr.bf16.vlgmr.msra.gmra.mxu0 %v738_v62  ;;  %v751_v62 = vrot.slane %v3788_v11, 1 }
  0x43   :  { %3335 = vmatpush3.bf16.msra.mxu1 %v3653_v56  ;;  %3379 = vmatpush3.bf16.msra.mxu0 %v3654_v8  ;;  %v3663_v56 = vld [vmem:[%s5104_s2 + $0xd0] sm:$0xff]  }
  0x44   :  { %3266 = vmatprep.mubr.bf16.mxu1 %v3816_v23  ;;  %3310 = vmatprep.mubr.bf16.mxu0 %v740_v1  ;;  %v3664_v8 = vld [vmem:[%s5104_s2 + $0x110] sm:$0xff]   ;;  %v3666_v1 = vld [vmem:[%s5104_s2 + $0x108] sm:$0xff]   ;;  %v752_v3 = vsel %vm733_vm2, %v749_v59, %v751_v62 }
  0x45   :  { %3336 = vmatprep.subr.bf16.mxu1 %v3655_v63  ;;  %3380 = vmatprep.subr.bf16.mxu0 %v3656_v2 }
  0x47   :  { %3337 = vmatpush3.bf16.msra.mxu1 %v3655_v63  ;;  %3381 = vmatpush3.bf16.msra.mxu0 %v3656_v2  ;;  %v3665_v63 = vld [vmem:[%s5104_s2 + $0xc8] sm:$0xff]   ;;  %v750_v2 = vsel %vm733_vm2, %v747_v41, %v749_v59  ;;  %v759_v41 = vrot.slane %v3940_v17, 1  ;;  %v1298_v59 = vrot.slane %v3828_v27, 6 }
  0x48   :  { %3338 = vmatprep.subr.bf16.mxu1 %v3657_v6  ;;  %3382 = vmatprep.subr.bf16.mxu0 %v3658_v20 }
  0x4a   :  { %3267 = vmatmul.mubr.bf16.gmra.mxu1 %v3842_v31  ;;  %3311 = vmatmul.mubr.bf16.gmra.mxu0 %v742_v22  ;;  %v755_v22 = vrot.slane %v3850_v33, 1 }
  0x4b   :  { %3270 = vmatprep.mubr.bf16.mxu1 %v3855_v34  ;;  %3314 = vmatprep.mubr.bf16.mxu0 %v744_v25  ;;  %v3669_v25 = vld [vmem:[%s5104_s2 + $0x178] sm:$0xff]  }
  0x4c   :  { %3339 = vmatpush3.bf16.msra.mxu1 %v3657_v6  ;;  %3383 = vmatpush3.bf16.msra.mxu0 %v3658_v20  ;;  %v3667_v6 = vld [vmem:[%s5104_s2 + $0xc0] sm:$0xff]   ;;  %v753_v20 = vrot.slane %v3821_v24, 1 }
  0x4d   :  { %3340 = vmatprep.subr.bf16.mxu1 %v3659_v26  ;;  %3384 = vmatprep.subr.bf16.mxu0 %v3660_v28 }
  0x50   :  { %3341 = vmatpush3.bf16.msra.mxu1 %v3659_v26  ;;  %3385 = vmatpush3.bf16.msra.mxu0 %v3660_v28  ;;  %v3670_v26 = vld [vmem:[%s5104_s2 + $0x1b8] sm:$0xff]   ;;  %v754_v28 = vsel %vm733_vm2, %v751_v62, %v753_v20 }
  0x51   :  { %3342 = vmatprep.subr.bf16.mxu1 %v3661_v42  ;;  %3386 = vmatprep.subr.bf16.mxu0 %v3662_v49 }
  0x52   :  { %3271 = vmatmul.mubr.bf16.gmra.mxu1 %v3893_v48  ;;  %3315 = vmatmul.mubr.bf16.gmra.mxu0 %v746_v18  ;;  %v1293_v18 = vrot.slane %v3834_v29, 5 }
  0x53   :  { %3274 = vmatprep.mubr.bf16.mxu1 %v3937_v13  ;;  %3318 = vmatprep.mubr.bf16.mxu0 %v748_v7  ;;  %v1294_v7 = vrot.slane %v3778_v9, 6 }
  0x54   :  { %3343 = vmatpush3.bf16.msra.mxu1 %v3661_v42  ;;  %3387 = vmatpush3.bf16.msra.mxu0 %v3662_v49  ;;  %v758_v42 = vsel %vm733_vm2, %v755_v22, %v757_v35  ;;  %v760_v49 = vsel %vm733_vm2, %v757_v35, %v759_v41  ;;  %v1018_v35 = vrot.slane %v3855_v34, 5 }
  0x55   :  { %3344 = vmatprep.subr.bf16.mxu1 %v3663_v56  ;;  %3388 = vmatprep.subr.bf16.mxu0 %v3664_v8 }
  0x58   :  { %3345 = vmatpush3.bf16.msra.mxu1 %v3663_v56  ;;  %3389 = vmatpush3.bf16.msra.mxu0 %v3664_v8  ;;  %v1295_v56 = vor.u32 %v1294_v7, %v1293_v18  ;;  %v1297_v8 = vrot.slane %v3859_v36, 5  ;;  %v3674_v7 = vld [vmem:[%s5104_s2 + $0x1a8] sm:$0xff]  }
  0x59   :  { %3346 = vmatprep.subr.bf16.mxu1 %v3665_v63  ;;  %3390 = vmatprep.subr.bf16.mxu0 %v3666_v1 }
  0x5a   :  { %3275 = vmatmul.mubr.bf16.gmra.mxu1 %v3961_v38  ;;  %3319 = vmatmul.mubr.bf16.gmra.mxu0 %v750_v2  ;;  %v1299_v2 = vor.u32 %v1298_v59, %v1297_v8  ;;  %v1318_v8 = vrot.slane %v3983_v54, 6  ;;  %v3675_v59 = vld [vmem:[%s5104_s2 + $0x160] sm:$0xff]  }
  0x5b   :  { %3278 = vmatprep.mubr.bf16.mxu1 %v3783_v10  ;;  %3322 = vmatprep.mubr.bf16.mxu0 %v752_v3  ;;  %v756_v10 = vsel %vm733_vm2, %v753_v20, %v755_v22  ;;  %v1016_v3 = vrot.slane %v3842_v31, 5  ;;  %v1309_v20 = vrot.slane %v3966_v43, 5  ;;  %v1310_v22 = vrot.slane %v3918_v61, 6  ;;  %v3671_v31 = vld [vmem:[%s5104_s2 + $0x170] sm:$0xff]  }
  0x5c   :  { %3347 = vmatpush3.bf16.msra.mxu1 %v3665_v63  ;;  %3391 = vmatpush3.bf16.msra.mxu0 %v3666_v1  ;;  %v1296_v63 = vsel %vm1289_vm4, %v1292_v55, %v1295_v56  ;;  %v1301_v1 = vrot.slane %v3888_v47, 5  ;;  %v1300_v51 = vsel %vm1289_vm4, %v1295_v56, %v1299_v2  ;;  %v1306_v55 = vrot.slane %v3885_v46, 6 }
  0x5d   :  { %3348 = vmatprep.subr.bf16.mxu1 %v3667_v6  ;;  %3392 = vmatprep.subr.bf16.mxu0 %v3668_v19  ;;  %v1311_v18 = vor.u32 %v1310_v22, %v1309_v20  ;;  %v1317_v56 = vrot.slane %v4001_v12, 5  ;;  %v1325_v22 = vrot.slane %v3837_v30, 5 }
  0x60   :  { %3349 = vmatpush3.bf16.msra.mxu1 %v3667_v6  ;;  %3393 = vmatpush3.bf16.msra.mxu0 %v3668_v19 }
  0x61   :  { %3422 = vmatprep.subr.bf16.mxu1 %v3669_v25  ;;  %3466 = vmatprep.subr.bf16.mxu0 %v3670_v26 }
  0x62   :  { %3279 = vmatmul.mubr.bf16.gmra.mxu1 %v3788_v11  ;;  %3323 = vmatmul.mubr.bf16.gmra.mxu0 %v754_v28  ;;  %v1011_v11 = vrot.slane %v3765_v4, 5  ;;  %v1302_v4 = vrot.slane %v3868_v39, 6 }
  0x63   :  { %3282 = vmatprep.mubr.bf16.mxu1 %v3821_v24  ;;  %3326 = vmatprep.mubr.bf16.mxu0 %v756_v10  ;;  %v1012_v24 = vrot.slane %v3770_v5, 5  ;;  %v1014_v5 = vrot.slane %v3816_v23, 5  ;;  %v3672_v10 = vld [vmem:[%s5104_s2 + $0x1b0] sm:$0xff]  }
  0x64   :  { %v1303_v6 = vor.u32 %v1302_v4, %v1301_v1  ;;  %v1024_v4 = vrot.slane %v3961_v38, 5 }
  0x65   :  { %v1013_v62 = vsel %vm1010_vm3, %v1011_v11, %v1012_v24  ;;  %v1015_v19 = vsel %vm1010_vm3, %v1012_v24, %v1014_v5  ;;  %v1017_v28 = vsel %vm1010_vm3, %v1014_v5, %v1016_v3  ;;  %v1314_v11 = vrot.slane %v3969_v45, 6 }
  0x66   :  { %v1304_v23 = vsel %vm1289_vm4, %v1299_v2, %v1303_v6  ;;  %v1319_v5 = vor.u32 %v1318_v8, %v1317_v56  ;;  %v3677_v2 = vld [vmem:[%s5104_s2 + $0x158] sm:$0xff]   ;;  %v1333_v8 = vrot.slane %v3908_v57, 5 }
  0x6a   :  { %3283 = vmatmul.mubr.bf16.gmra.mxu1 %v3850_v33  ;;  %3327 = vmatmul.mubr.bf16.gmra.mxu0 %v758_v42  ;;  %v3673_v42 = vld [vmem:[%s5104_s2 + $0x168] sm:$0xff]  }
  0x6b   :  { %3286 = vmatprep.mubr.bf16.mxu1 %v3879_v44  ;;  %3330 = vmatprep.mubr.bf16.mxu0 %v760_v49  ;;  %v1020_v49 = vrot.slane %v3893_v48, 5 }
  0x6d   :  { %v1021_v48 = vsel %vm1010_vm3, %v1018_v35, %v1020_v49 }
  0x72   :  { %3287 = vmatmul.mubr.bf16.gmra.mxu1 %v3940_v17  ;;  %3331 = vmatmul.mubr.bf16.gmra.mxu0 %v759_v41  ;;  %v1307_v41 = vor.u32 %v1306_v55, %v1305_v50  ;;  %v1322_v50 = vrot.slane %v3794_v14, 6 }
  0x73   :  { %3350 = vmatprep.mubr.bf16.mxu1 %v1013_v62  ;;  %3394 = vmatprep.mubr.bf16.mxu0 %v1296_v63  ;;  %v3676_v62 = vld [vmem:[%s5104_s2 + $0x1a0] sm:$0xff]   ;;  %v1022_v63 = vrot.slane %v3937_v13, 5 }
  0x74   :  { %v1308_v34 = vsel %vm1289_vm4, %v1303_v6, %v1307_v41  ;;  %v1312_v24 = vsel %vm1289_vm4, %v1307_v41, %v1311_v18 }
  0x75   :  { %v1023_v6 = vsel %vm1010_vm3, %v1020_v49, %v1022_v63  ;;  %v1025_v55 = vsel %vm1010_vm3, %v1022_v63, %v1024_v4  ;;  %v3685_v63 = vld [vmem:[%s5104_s2 + $0x180] sm:$0xff]  }
  0x7a   :  { %3351 = vmatmul.mubr.bf16.vlgmr.msra.gmra.mxu1 %v1015_v19  ;;  %3395 = vmatmul.mubr.bf16.vlgmr.msra.gmra.mxu0 %v1300_v51  ;;  %v1321_v51 = vrot.slane %v3797_v15, 5 }
  0x7b   :  { %3423 = vmatpush3.bf16.msra.mxu1 %v3669_v25  ;;  %3467 = vmatpush3.bf16.msra.mxu0 %v3670_v26  ;;  %v1019_v25 = vsel %vm1010_vm3, %v1016_v3, %v1018_v35  ;;  %v1313_v26 = vrot.slane %v3975_v52, 5  ;;  %v3678_v3 = vld [vmem:[%s5104_s2 + $0x198] sm:$0xff]  }
  0x7c   :  { %3354 = vmatprep.mubr.bf16.mxu1 %v1017_v28  ;;  %3398 = vmatprep.mubr.bf16.mxu0 %v1304_v23  ;;  %v1326_v28 = vrot.slane %v3800_v16, 6  ;;  %v3679_v23 = vld [vmem:[%s5104_s2 + $0x150] sm:$0xff]   ;;  %v1323_v41 = vor.u32 %v1322_v50, %v1321_v51 }
  0x7d   :  { %3424 = vmatprep.subr.bf16.mxu1 %v3671_v31  ;;  %3468 = vmatprep.subr.bf16.mxu0 %v3672_v10  ;;  %v1315_v1 = vor.u32 %v1314_v11, %v1313_v26  ;;  %v1329_v11 = vrot.slane %v3862_v37, 5 }
  0x7e   :  { %v1324_v26 = vsel %vm1289_vm4, %v1319_v5, %v1323_v41 }
  0x7f   :  { %3425 = vmatpush3.bf16.msra.mxu1 %v3671_v31  ;;  %3469 = vmatpush3.bf16.msra.mxu0 %v3672_v10  ;;  %v1316_v19 = vsel %vm1289_vm4, %v1311_v18, %v1315_v1  ;;  %v1320_v20 = vsel %vm1289_vm4, %v1315_v1, %v1319_v5  ;;  %v3680_v31 = vld [vmem:[%s5104_s2 + $0x190] sm:$0xff]   ;;  %v4204_v10 = vld [vmem:[%s5105_s0 + $0x40] sm:$0xff]   ;;  %v1327_v18 = vor.u32 %v1326_v28, %v1325_v22 }
  0x80   :  { %3426 = vmatprep.subr.bf16.mxu1 %v3673_v42  ;;  %3470 = vmatprep.subr.bf16.mxu0 %v3674_v7  ;;  %v1026_v35 = vrot.slane %v4204_v10, 5  ;;  %v4236_v1 = vld [vmem:[%s5105_s0 + $0x50] sm:$0xff]  }
  0x81   :  { %v1328_v56 = vsel %vm1289_vm4, %v1323_v41, %v1327_v18 }
  0x82   :  { %3355 = vmatmul.mubr.bf16.gmra.mxu1 %v1019_v25  ;;  %3399 = vmatmul.mubr.bf16.gmra.mxu0 %v1308_v34  ;;  %v3682_v25 = vld [vmem:[%s5104_s2 + $0x188] sm:$0xff]   ;;  %v1027_v34 = vsel %vm1010_vm3, %v1024_v4, %v1026_v35  ;;  %v1030_v4 = vrot.slane %v4236_v1, 5 }
  0x83   :  { %3358 = vmatprep.mubr.bf16.mxu1 %v1021_v48  ;;  %3402 = vmatprep.mubr.bf16.mxu0 %v1312_v24  ;;  %v1330_v48 = vrot.slane %v3845_v32, 6 }
  0x84   :  { %3427 = vmatpush3.bf16.msra.mxu1 %v3673_v42  ;;  %3471 = vmatpush3.bf16.msra.mxu0 %v3674_v7  ;;  %v4210_v42 = vld [vmem:[%s5105_s0 + $0x48] sm:$0xff]  }
  0x85   :  { %3428 = vmatprep.subr.bf16.mxu1 %v3675_v59  ;;  %3472 = vmatprep.subr.bf16.mxu0 %v3676_v62  ;;  %v1028_v49 = vrot.slane %v4210_v42, 5  ;;  %v3681_v7 = vld [vmem:[%s5104_s2 + $0x148] sm:$0xff]   ;;  %v1331_v5 = vor.u32 %v1330_v48, %v1329_v11 }
  0x87   :  { %v1029_v24 = vsel %vm1010_vm3, %v1026_v35, %v1028_v49  ;;  %v1031_v51 = vsel %vm1010_vm3, %v1028_v49, %v1030_v4  ;;  %v1332_v50 = vsel %vm1289_vm4, %v1327_v18, %v1331_v5  ;;  %v1034_v35 = vrot.slane %v3879_v44, 5 }
  0x88   :  { %3429 = vmatpush3.bf16.msra.mxu1 %v3675_v59  ;;  %3473 = vmatpush3.bf16.msra.mxu0 %v3676_v62  ;;  %v1334_v59 = vrot.slane %v3871_v40, 6  ;;  %v3684_v62 = vld [vmem:[%s5104_s2 + $0x140] sm:$0xff]  }
  0x89   :  { %3430 = vmatprep.subr.bf16.mxu1 %v3677_v2  ;;  %3474 = vmatprep.subr.bf16.mxu0 %v3678_v3 }
  0x8a   :  { %3359 = vmatmul.mubr.bf16.gmra.mxu1 %v1023_v6  ;;  %3403 = vmatmul.mubr.bf16.gmra.mxu0 %v1316_v19  ;;  %v4243_v6 = vld [vmem:[%s5104_s2 + $0x1f8] sm:$0xff]  }
  0x8b   :  { %3362 = vmatprep.mubr.bf16.mxu1 %v1025_v55  ;;  %3406 = vmatprep.mubr.bf16.mxu0 %v1320_v20  ;;  %v4248_v19 = vld [vmem:[%s5104_s2 + $0x238] sm:$0xff]   ;;  %v1338_v55 = vrot.slane %v3911_v58, 6  ;;  %v4257_v20 = vld [vmem:[%s5106_s1 + $0x70] sm:$0xff]  }
  0x8c   :  { %3431 = vmatpush3.bf16.msra.mxu1 %v3677_v2  ;;  %3475 = vmatpush3.bf16.msra.mxu0 %v3678_v3  ;;  %v1032_v2 = vrot.slane %v3850_v33, 5  ;;  %v1335_v3 = vor.u32 %v1334_v59, %v1333_v8  ;;  %v1337_v33 = vrot.slane %v3927_v0, 5  ;;  %v1346_v49 = vshrl.u32 %v4257_v20, 16  ;;  %v3705_v59 = vld [vmem:[%s5105_s0] sm:$0xff]  }
  0x8d   :  { %3432 = vmatprep.subr.bf16.mxu1 %v3679_v23  ;;  %3476 = vmatprep.subr.bf16.mxu0 %v3680_v31  ;;  %v1349_v18 = vshll.u32 %v4257_v20, 16 }
  0x8e   :  { %v1033_v22 = vsel %vm1010_vm3, %v1030_v4, %v1032_v2  ;;  %v1336_v28 = vsel %vm1289_vm4, %v1331_v5, %v1335_v3  ;;  %v1339_v41 = vor.u32 %v1338_v55, %v1337_v33  ;;  %v1348_v11 = vrot.slane %v1346_v49, 5 }
  0x8f   :  { %v1351_v48 = vrot.slane %v1349_v18, 6 }
  0x90   :  { %3433 = vmatpush3.bf16.msra.mxu1 %v3679_v23  ;;  %3477 = vmatpush3.bf16.msra.mxu0 %v3680_v31  ;;  %v1341_v23 = vrot.slane %v3980_v53, 5  ;;  %v1342_v31 = vrot.slane %v3949_v21, 6 }
  0x91   :  { %3434 = vmatprep.subr.bf16.mxu1 %v3681_v7  ;;  %3478 = vmatprep.subr.bf16.mxu0 %v3682_v25  ;;  %v1352_v8 = vor.u32 %v1351_v48, %v1348_v11  ;;  %v3688_v11 = vld [vmem:[%s5104_s2 + $0x1f0] sm:$0xff]  }
  0x92   :  { %3363 = vmatmul.mubr.bf16.gmra.mxu1 %v1027_v34  ;;  %3407 = vmatmul.mubr.bf16.gmra.mxu0 %v1324_v26  ;;  %v1035_v34 = vsel %vm1010_vm3, %v1032_v2, %v1034_v35  ;;  %v1340_v26 = vsel %vm1289_vm4, %v1335_v3, %v1339_v41  ;;  %v4291_v2 = vld [vmem:[%s5105_s0 + $0x10] sm:$0xff]  }
  0x93   :  { %3366 = vmatprep.mubr.bf16.mxu1 %v1029_v24  ;;  %3410 = vmatprep.mubr.bf16.mxu0 %v1328_v56  ;;  %v1038_v56 = vrot.slane %v4257_v20, 5  ;;  %v1884_v3 = vrot.slane %v4291_v2, 2  ;;  %v3689_v48 = vld [vmem:[%s5104_s2 + $0x230] sm:$0xff]  }
  0x94   :  { %3435 = vmatpush3.bf16.msra.mxu1 %v3681_v7  ;;  %3479 = vmatpush3.bf16.msra.mxu0 %v3682_v25  ;;  %v1036_v7 = vrot.slane %v3940_v17, 5  ;;  %v1343_v25 = vor.u32 %v1342_v31, %v1341_v23 }
  0x95   :  { %3436 = vmatprep.subr.bf16.mxu1 %v3684_v62  ;;  %3480 = vmatprep.subr.bf16.mxu0 %v3685_v63 }
  0x96   :  { %v1037_v44 = vsel %vm1010_vm3, %v1034_v35, %v1036_v7  ;;  %v1344_v24 = vsel %vm1289_vm4, %v1339_v41, %v1343_v25  ;;  %v4309_v35 = vld [vmem:[%s5105_s0 + $0x20] sm:$0xff]  }
  0x97   :  { %v1888_v41 = vrot.slane %v4309_v35, 2 }
  0x98   :  { %3437 = vmatpush3.bf16.msra.mxu1 %v3684_v62  ;;  %3481 = vmatpush3.bf16.msra.mxu0 %v3685_v63  ;;  %v1604_v62 = vrot.slane %v3705_v59, 6  ;;  %v4284_v63 = vld [vmem:[%s5105_s0 + $0x8] sm:$0xff]  }
  0x99   :  { %3510 = vmatprep.subr.bf16.mxu1 %v4243_v6  ;;  %3554 = vmatprep.subr.bf16.mxu0 %v4248_v19  ;;  %v1605_v4 = vrot.slane %v4284_v63, 6  ;;  %v1883_v5 = vrot.slane %v4284_v63, 2 }
  0x9a   :  { %3367 = vmatmul.mubr.bf16.gmra.mxu1 %v1031_v51  ;;  %3411 = vmatmul.mubr.bf16.gmra.mxu0 %v1332_v50  ;;  %v1039_v51 = vsel %vm1010_vm3, %v1036_v7, %v1038_v56  ;;  %v1353_v50 = vsel %vm1289_vm4, %v1343_v25, %v1352_v8  ;;  %v3690_v8 = vld [vmem:[%s5104_s2 + $0x1e8] sm:$0xff]  }
  0x9b   :  { %3370 = vmatprep.mubr.bf16.mxu1 %v1033_v22  ;;  %3414 = vmatprep.mubr.bf16.mxu0 %v1336_v28  ;;  %v1606_v33 = vsel %vm1603_vm5, %v1604_v62, %v1605_v4  ;;  %v1885_v55 = vsel %vm1882_vm6, %v1883_v5, %v1884_v3  ;;  %v1607_v22 = vrot.slane %v4291_v2, 6  ;;  %v4302_v28 = vld [vmem:[%s5105_s0 + $0x18] sm:$0xff]  }
  0x9c   :  { %v1886_v23 = vrot.slane %v4302_v28, 2  ;;  %v1609_v31 = vrot.slane %v4302_v28, 6 }
  0x9d   :  { %v1608_v7 = vsel %vm1603_vm5, %v1605_v4, %v1607_v22 }
  0x9e   :  { %v1887_v25 = vsel %vm1882_vm6, %v1884_v3, %v1886_v23 }
  0xa2   :  { %3371 = vmatmul.mubr.bf16.gmra.mxu1 %v1035_v34  ;;  %3415 = vmatmul.mubr.bf16.gmra.mxu0 %v1340_v26  ;;  %v1610_v34 = vsel %vm1603_vm5, %v1607_v22, %v1609_v31  ;;  %v1889_v26 = vsel %vm1882_vm6, %v1886_v23, %v1888_v41  ;;  %v1617_v22 = vrot.slane %v3961_v38, 6  ;;  %v1896_v23 = vrot.slane %v4204_v10, 2 }
  0xa3   :  { %3374 = vmatprep.mubr.bf16.mxu1 %v1037_v44  ;;  %3418 = vmatprep.mubr.bf16.mxu0 %v1344_v24  ;;  %v1611_v44 = vrot.slane %v4309_v35, 6  ;;  %v4328_v24 = vld [vmem:[%s5105_s0 + $0x28] sm:$0xff]  }
  0xa4   :  { %v1890_v56 = vrot.slane %v4328_v24, 2  ;;  %v1613_v59 = vrot.slane %v4328_v24, 6 }
  0xa5   :  { %v1612_v62 = vsel %vm1603_vm5, %v1609_v31, %v1611_v44  ;;  %v3694_v31 = vld [vmem:[%s5104_s2 + $0x1d8] sm:$0xff]  }
  0xa6   :  { %v1891_v4 = vsel %vm1882_vm6, %v1888_v41, %v1890_v56  ;;  %v1614_v5 = vsel %vm1603_vm5, %v1611_v44, %v1613_v59  ;;  %v3695_v41 = vld [vmem:[%s5104_s2 + $0x218] sm:$0xff]   ;;  %v1621_v44 = vrot.slane %v4210_v42, 6 }
  0xaa   :  { %3375 = vmatmul.mubr.bf16.gmra.mxu1 %v1039_v51  ;;  %3419 = vmatmul.mubr.bf16.gmra.mxu0 %v1353_v50  ;;  %v3692_v51 = vld [vmem:[%s5104_s2 + $0x1e0] sm:$0xff]  }
  0xab   :  { %3438 = vmatprep.mubr.bf16.mxu1 %v1606_v33  ;;  %3482 = vmatprep.mubr.bf16.mxu0 %v1885_v55  ;;  %v3693_v50 = vld [vmem:[%s5104_s2 + $0x220] sm:$0xff]   ;;  %v1615_v33 = vrot.slane %v3937_v13, 6  ;;  %v1894_v55 = vrot.slane %v3961_v38, 2 }
  0xad   :  { %v1897_v38 = vsel %vm1882_vm6, %v1894_v55, %v1896_v23 }
  0xb2   :  { %3439 = vmatmul.mubr.bf16.vlgmr.msra.gmra.mxu1 %v1608_v7  ;;  %3483 = vmatmul.mubr.bf16.vlgmr.msra.gmra.mxu0 %v1887_v25  ;;  %v1618_v25 = vsel %vm1603_vm5, %v1615_v33, %v1617_v22 }
  0xb3   :  { %3511 = vmatpush3.bf16.msra.mxu1 %v4243_v6  ;;  %3555 = vmatpush3.bf16.msra.mxu0 %v4248_v19  ;;  %v1892_v6 = vrot.slane %v3937_v13, 2  ;;  %v3691_v19 = vld [vmem:[%s5104_s2 + $0x228] sm:$0xff]   ;;  %v1616_v13 = vsel %vm1603_vm5, %v1613_v59, %v1615_v33 }
  0xb4   :  { %3442 = vmatprep.mubr.bf16.mxu1 %v1610_v34  ;;  %3486 = vmatprep.mubr.bf16.mxu0 %v1889_v26  ;;  %v3696_v34 = vld [vmem:[%s5104_s2 + $0x1d0] sm:$0xff]   ;;  %v3699_v59 = vld [vmem:[%s5104_s2 + $0x208] sm:$0xff]  }
  0xb5   :  { %3512 = vmatprep.subr.bf16.mxu1 %v3688_v11  ;;  %3556 = vmatprep.subr.bf16.mxu0 %v3689_v48  ;;  %v1893_v3 = vsel %vm1882_vm6, %v1890_v56, %v1892_v6  ;;  %v1895_v7 = vsel %vm1882_vm6, %v1892_v6, %v1894_v55  ;;  %v3697_v26 = vld [vmem:[%s5104_s2 + $0x210] sm:$0xff]   ;;  %v1900_v56 = vrot.slane %v4236_v1, 2 }
  0xb7   :  { %3513 = vmatpush3.bf16.msra.mxu1 %v3688_v11  ;;  %3557 = vmatpush3.bf16.msra.mxu0 %v3689_v48  ;;  %v1619_v11 = vrot.slane %v4204_v10, 6  ;;  %v1898_v48 = vrot.slane %v4210_v42, 2 }
  0xb8   :  { %3514 = vmatprep.subr.bf16.mxu1 %v3690_v8  ;;  %3558 = vmatprep.subr.bf16.mxu0 %v3691_v19 }
  0xb9   :  { %v1620_v6 = vsel %vm1603_vm5, %v1617_v22, %v1619_v11  ;;  %v4400_v22 = vld [vmem:[%s5105_s0 + $0x60] sm:$0xff]  }
  0xba   :  { %3443 = vmatmul.mubr.bf16.gmra.mxu1 %v1612_v62  ;;  %3487 = vmatmul.mubr.bf16.gmra.mxu0 %v1891_v4  ;;  %v1622_v62 = vsel %vm1603_vm5, %v1619_v11, %v1621_v44  ;;  %v1901_v4 = vsel %vm1882_vm6, %v1898_v48, %v1900_v56 }
  0xbb   :  { %3446 = vmatprep.mubr.bf16.mxu1 %v1614_v5  ;;  %3490 = vmatprep.mubr.bf16.mxu0 %v1893_v3  ;;  %v3700_v5 = vld [vmem:[%s5104_s2 + $0x1c0] sm:$0xff]  }
  0xbc   :  { %3515 = vmatpush3.bf16.msra.mxu1 %v3690_v8  ;;  %3559 = vmatpush3.bf16.msra.mxu0 %v3691_v19  ;;  %v3698_v8 = vld [vmem:[%s5104_s2 + $0x1c8] sm:$0xff]   ;;  %v1899_v19 = vsel %vm1882_vm6, %v1896_v23, %v1898_v48  ;;  %v3701_v3 = vld [vmem:[%s5104_s2 + $0x200] sm:$0xff]   ;;  %v1904_v23 = vrot.slane %v4400_v22, 2 }
  0xbd   :  { %3516 = vmatprep.subr.bf16.mxu1 %v3692_v51  ;;  %3560 = vmatprep.subr.bf16.mxu0 %v3693_v50 }
  0xc0   :  { %3517 = vmatpush3.bf16.msra.mxu1 %v3692_v51  ;;  %3561 = vmatpush3.bf16.msra.mxu0 %v3693_v50  ;;  %v1623_v51 = vrot.slane %v4236_v1, 6  ;;  %v4393_v50 = vld [vmem:[%s5105_s0 + $0x58] sm:$0xff]  }
  0xc1   :  { %3518 = vmatprep.subr.bf16.mxu1 %v3694_v31  ;;  %3562 = vmatprep.subr.bf16.mxu0 %v3695_v41  ;;  %v1902_v33 = vrot.slane %v4393_v50, 2  ;;  %v1625_v55 = vrot.slane %v4393_v50, 6 }
  0xc2   :  { %3447 = vmatmul.mubr.bf16.gmra.mxu1 %v1616_v13  ;;  %3491 = vmatmul.mubr.bf16.gmra.mxu0 %v1895_v7 }
  0xc3   :  { %3450 = vmatprep.mubr.bf16.mxu1 %v1618_v25  ;;  %3494 = vmatprep.mubr.bf16.mxu0 %v1897_v38  ;;  %v1626_v13 = vsel %vm1603_vm5, %v1623_v51, %v1625_v55  ;;  %v1905_v7 = vsel %vm1882_vm6, %v1902_v33, %v1904_v23  ;;  %v1627_v25 = vrot.slane %v4400_v22, 6  ;;  %v1906_v38 = vrot.slane %v3940_v17, 2 }
  0xc4   :  { %3519 = vmatpush3.bf16.msra.mxu1 %v3694_v31  ;;  %3563 = vmatpush3.bf16.msra.mxu0 %v3695_v41  ;;  %v1624_v31 = vsel %vm1603_vm5, %v1621_v44, %v1623_v51  ;;  %v1903_v41 = vsel %vm1882_vm6, %v1900_v56, %v1902_v33  ;;  %v2466_v51 = vrot.slane %v4291_v2, 3 }
  0xc5   :  { %3520 = vmatprep.subr.bf16.mxu1 %v3696_v34  ;;  %3564 = vmatprep.subr.bf16.mxu0 %v3697_v26  ;;  %v1628_v11 = vsel %vm1603_vm5, %v1625_v55, %v1627_v25  ;;  %v1907_v48 = vsel %vm1882_vm6, %v1904_v23, %v1906_v38  ;;  %v2171_v55 = vrot.slane %v3915_v60, 2  ;;  %v2172_v23 = vrot.slane %v3885_v46, 3 }
  0xc6   :  { %v2470_v60 = vrot.slane %v4309_v35, 3 }
  0xc8   :  { %3521 = vmatpush3.bf16.msra.mxu1 %v3696_v34  ;;  %3565 = vmatpush3.bf16.msra.mxu0 %v3697_v26  ;;  %v1629_v34 = vrot.slane %v3940_v17, 6  ;;  %v1908_v26 = vrot.slane %v4257_v20, 2 }
  0xc9   :  { %3522 = vmatprep.subr.bf16.mxu1 %v3698_v8  ;;  %3566 = vmatprep.subr.bf16.mxu0 %v3699_v59 }
  0xca   :  { %3451 = vmatmul.mubr.bf16.gmra.mxu1 %v1620_v6  ;;  %3495 = vmatmul.mubr.bf16.gmra.mxu0 %v1899_v19  ;;  %v1630_v44 = vsel %vm1603_vm5, %v1627_v25, %v1629_v34  ;;  %v1909_v56 = vsel %vm1882_vm6, %v1906_v38, %v1908_v26  ;;  %v2163_v6 = vrot.slane %v3859_v36, 2  ;;  %v2164_v19 = vrot.slane %v3828_v27, 3 }
  0xcb   :  { %3454 = vmatprep.mubr.bf16.mxu1 %v1622_v62  ;;  %3498 = vmatprep.mubr.bf16.mxu0 %v1901_v4  ;;  %v1631_v62 = vrot.slane %v4257_v20, 6  ;;  %v2168_v27 = vrot.slane %v3868_v39, 3 }
  0xcc   :  { %3523 = vmatpush3.bf16.msra.mxu1 %v3698_v8  ;;  %3567 = vmatpush3.bf16.msra.mxu0 %v3699_v59  ;;  %v2160_v8 = vrot.slane %v3834_v29, 2  ;;  %v2161_v59 = vrot.slane %v3778_v9, 3  ;;  %v2167_v29 = vrot.slane %v3888_v47, 2  ;;  %v2468_v47 = vrot.slane %v4302_v28, 3 }
  0xcd   :  { %3524 = vmatprep.subr.bf16.mxu1 %v3700_v5  ;;  %3568 = vmatprep.subr.bf16.mxu0 %v3701_v3  ;;  %v1632_v9 = vsel %vm1603_vm5, %v1629_v34, %v1631_v62  ;;  %v2175_v34 = vrot.slane %v3966_v43, 2  ;;  %v2472_v43 = vrot.slane %v4328_v24, 3  ;;  %v2183_v24 = vrot.slane %v4001_v12, 2  ;;  %v3714_v12 = vld [vmem:[%s5105_s0 + $0x38] sm:$0xff]  }
  0xce   :  { %v2162_v4 = vor.u32 %v2161_v59, %v2160_v8  ;;  %v2169_v2 = vor.u32 %v2168_v27, %v2167_v29  ;;  %v2469_v38 = vsel %vm2464_vm8, %v2466_v51, %v2468_v47  ;;  %v2471_v35 = vsel %vm2464_vm8, %v2468_v47, %v2470_v60 }
  0xd0   :  { %3525 = vmatpush3.bf16.msra.mxu1 %v3700_v5  ;;  %3569 = vmatpush3.bf16.msra.mxu0 %v3701_v3  ;;  %v2165_v5 = vor.u32 %v2164_v19, %v2163_v6  ;;  %v2465_v3 = vrot.slane %v4284_v63, 3 }
  0xd2   :  { %3455 = vmatmul.mubr.bf16.gmra.mxu1 %v1624_v31  ;;  %3499 = vmatmul.mubr.bf16.gmra.mxu0 %v1903_v41  ;;  %v2166_v36 = vsel %vm2159_vm7, %v2162_v4, %v2165_v5  ;;  %v2467_v33 = vsel %vm2464_vm8, %v2465_v3, %v2466_v51  ;;  %v2170_v25 = vsel %vm2159_vm7, %v2165_v5, %v2169_v2 }
  0xd3   :  { %3458 = vmatprep.mubr.bf16.mxu1 %v1626_v13  ;;  %3502 = vmatprep.mubr.bf16.mxu0 %v1905_v7  ;;  %v2173_v13 = vor.u32 %v2172_v23, %v2171_v55  ;;  %v2473_v51 = vsel %vm2464_vm8, %v2470_v60, %v2472_v43  ;;  %v2187_v55 = vrot.slane %v3797_v15, 2  ;;  %v2188_v23 = vrot.slane %v3794_v14, 3 }
  0xd4   :  { %v2478_v14 = vrot.slane %v4204_v10, 3  ;;  %v2196_v10 = vrot.slane %v3845_v32, 3  ;;  %v2200_v32 = vrot.slane %v3871_v40, 3 }
  0xd5   :  { %v2189_v15 = vor.u32 %v2188_v23, %v2187_v55 }
  0xda   :  { %3459 = vmatmul.mubr.bf16.gmra.mxu1 %v1628_v11  ;;  %3503 = vmatmul.mubr.bf16.gmra.mxu0 %v1907_v48  ;;  %v2174_v48 = vsel %vm2159_vm7, %v2169_v2, %v2173_v13 }
  0xdb   :  { %3462 = vmatprep.mubr.bf16.mxu1 %v1630_v44  ;;  %3506 = vmatprep.mubr.bf16.mxu0 %v1909_v56  ;;  %v2179_v44 = vrot.slane %v3975_v52, 2  ;;  %v2180_v56 = vrot.slane %v3969_v45, 3  ;;  %v3713_v45 = vld [vmem:[%s5105_s0 + $0x30] sm:$0xff]  }
  0xdc   :  { %v2474_v52 = vrot.slane %v3713_v45, 3  ;;  %v2195_v45 = vrot.slane %v3862_v37, 2  ;;  %v2199_v37 = vrot.slane %v3908_v57, 2 }
  0xdd   :  { %v2181_v62 = vor.u32 %v2180_v56, %v2179_v44  ;;  %v2192_v44 = vrot.slane %v3800_v16, 3 }
  0xde   :  { %v2201_v40 = vor.u32 %v2200_v32, %v2199_v37  ;;  %v2211_v37 = vrot.slane %v1346_v49, 2  ;;  %v2488_v49 = vrot.slane %v3940_v17, 3 }
  0xe2   :  { %v4429_v31 = vpop.f32.mrf.mxu0  ;;  %v4431_v63 = vpop.f32.mrf.mxu1  ;;  %3463 = vmatmul.mubr.bf16.gmra.mxu1 %v1632_v9  ;;  %3507 = vmatmul.mubr.bf16.gmra.mxu0 %v1908_v26  ;;  %v2176_v26 = vrot.slane %v3918_v61, 3  ;;  %v2184_v9 = vrot.slane %v3983_v54, 3 }
  0xe3   :  { %3526 = vmatprep.mubr.bf16.mxu1 %v2166_v36  ;;  %3570 = vmatprep.mubr.bf16.mxu0 %v2467_v33  ;;  %v2475_v33 = vsel %vm2464_vm8, %v2472_v43, %v2474_v52 }
  0xe4   :  { %v4434_v39 = vpop.f32.mrf.mxu0  ;;  %v4436_v41 = vpop.f32.mrf.mxu1  ;;  %v2177_v61 = vor.u32 %v2176_v26, %v2175_v34  ;;  %v2185_v54 = vor.u32 %v2184_v9, %v2183_v24 }
  0xe6   :  { %v4439_v7 = vpop.f32.mrf.mxu0  ;;  %v4441_v46 = vpop.f32.mrf.mxu1  ;;  %v2178_v3 = vsel %vm2159_vm7, %v2173_v13, %v2177_v61  ;;  %v2182_v36 = vsel %vm2159_vm7, %v2177_v61, %v2181_v62  ;;  %v2476_v13 = vrot.slane %v3714_v12, 3  ;;  %v2186_v26 = vsel %vm2159_vm7, %v2181_v62, %v2185_v54 }
  0xe7   :  { %v2190_v61 = vsel %vm2159_vm7, %v2185_v54, %v2189_v15  ;;  %v2204_v54 = vrot.slane %v3911_v58, 3 }
  0xe8   :  { %v4447_v28 = vpop.f32.mrf.mxu0  ;;  %v4449_v11 = vpop.f32.mrf.mxu1  ;;  %v2479_v43 = vsel %vm2464_vm8, %v2476_v13, %v2478_v14 }
  0xea   :  { %v4455_v8 = vpop.f32.mrf.mxu0  ;;  %3527 = vmatmul.mubr.bf16.vlgmr.msra.gmra.mxu1 %v2170_v25  ;;  %3571 = vmatmul.mubr.bf16.vlgmr.msra.gmra.mxu0 %v2469_v38  ;;  %v4457_v59 = vpop.f32.mrf.mxu1 }
  0xeb   :  { %3530 = vmatprep.mubr.bf16.mxu1 %v2174_v48  ;;  %3574 = vmatprep.mubr.bf16.mxu0 %v2471_v35  ;;  %v2477_v48 = vsel %vm2464_vm8, %v2474_v52, %v2476_v13  ;;  %v2191_v35 = vrot.slane %v3837_v30, 2  ;;  %v2480_v30 = vrot.slane %v4210_v42, 3  ;;  %v2197_v52 = vor.u32 %v2196_v10, %v2195_v45 }
  0xec   :  { %v4460_v6 = vpop.f32.mrf.mxu0  ;;  %v4462_v19 = vpop.f32.mrf.mxu1  ;;  %v2484_v13 = vrot.slane %v4393_v50, 3  ;;  %v2207_v45 = vrot.slane %v3980_v53, 2  ;;  %v2208_v10 = vrot.slane %v3949_v21, 3 }
  0xed   :  { %v2193_v62 = vor.u32 %v2192_v44, %v2191_v35 }
  0xee   :  { %v4467_v4 = vpop.f32.mrf.mxu0  ;;  %v4469_v5 = vpop.f32.mrf.mxu1 }
  0xef   :  { %v2194_v9 = vsel %vm2159_vm7, %v2189_v15, %v2193_v62  ;;  %v2198_v42 = vsel %vm2159_vm7, %v2193_v62, %v2197_v52 }
  0xf0   :  { %v4475_v29 = vpop.f32.mrf.mxu0  ;;  %v4477_v27 = vpop.f32.mrf.mxu1 }
  0xf2   :  { %v4483_v2 = vpop.f32.mrf.mxu0  ;;  %3531 = vmatmul.mubr.bf16.gmra.mxu1 %v2178_v3  ;;  %3575 = vmatmul.mubr.bf16.gmra.mxu0 %v2473_v51  ;;  %v4485_v47 = vpop.f32.mrf.mxu1  ;;  %v2482_v51 = vrot.slane %v4236_v1, 3  ;;  %v2203_v1 = vrot.slane %v3927_v0, 2 }
  0xf3   :  { %3534 = vmatprep.mubr.bf16.mxu1 %v2182_v36  ;;  %3578 = vmatprep.mubr.bf16.mxu0 %v2475_v33  ;;  %v2481_v36 = vsel %vm2464_vm8, %v2478_v14, %v2480_v30 }
  0xf4   :  { %v4490_v60 = vpop.f32.mrf.mxu0  ;;  %v4492_v25 = vpop.f32.mrf.mxu1  ;;  %v2483_v23 = vsel %vm2464_vm8, %v2480_v30, %v2482_v51 }
  0xf6   :  { %v4495_v38 = vpop.f32.mrf.mxu0  ;;  %v3245_v34 = vpop.f32.mrf.mxu1 }
  0xf8   :  { %v4501_v56 = vpop.f32.mrf.mxu0  ;;  %v4519_v33 = vpop.f32.mrf.mxu1 }
  0xfa   :  { %v4507_v3 = vpop.f32.mrf.mxu0  ;;  %3535 = vmatmul.mubr.bf16.gmra.mxu1 %v2186_v26  ;;  %3579 = vmatmul.mubr.bf16.gmra.mxu0 %v2477_v48  ;;  %v2205_v26 = vor.u32 %v2204_v54, %v2203_v1  ;;  %v2486_v48 = vrot.slane %v4400_v22, 3  ;;  %v2490_v1 = vrot.slane %v4257_v20, 3 }
  0xfb   :  { %3538 = vmatprep.mubr.bf16.mxu1 %v2190_v61  ;;  %3582 = vmatprep.mubr.bf16.mxu0 %v2479_v43  ;;  %v2202_v61 = vsel %vm2159_vm7, %v2197_v52, %v2201_v40  ;;  %v2485_v43 = vsel %vm2464_vm8, %v2482_v51, %v2484_v13  ;;  %v2212_v52 = vrot.slane %v1349_v18, 3 }
  0xfc   :  { %v4510_v16 = vpop.f32.mrf.mxu0  ;;  %v2206_v30 = vsel %vm2159_vm7, %v2201_v40, %v2205_v26  ;;  %v2491_v20 = vsel %vm2464_vm8, %v2488_v49, %v2490_v1 }
  0xfd   :  { %v2213_v18 = vor.u32 %v2212_v52, %v2211_v37 }
  0xfe   :  { %v4513_v24 = vpop.f32.mrf.mxu0 }
 0x100   :  { %v4521_v55 = vpop.f32.mrf.mxu0 }
 0x102   :  { %v3264_v12 = vpop.f32.mrf.mxu1  ;;  %v3308_v57 = vpop.f32.mrf.mxu0  ;;  %3539 = vmatmul.mubr.bf16.gmra.mxu1 %v2194_v9  ;;  %3583 = vmatmul.mubr.bf16.gmra.mxu0 %v2481_v36  ;;  %v2209_v36 = vor.u32 %v2208_v10, %v2207_v45 }
 0x103   :  { %v615_v15 = vadd.f32 %v3264_v12, %v4429_v31  ;;  %3542 = vmatprep.mubr.bf16.mxu1 %v2198_v42  ;;  %3586 = vmatprep.mubr.bf16.mxu0 %v2483_v23 }
 0x104   :  { %v606_v14 = vpop.f32.mrf.mxu1  ;;  %v857_v34 = vpop.f32.mrf.mxu0 }
 0x105   :  { %v4530_v35 = vadd.f32 %v3308_v57, %v615_v15  ;;  %v607_v58 = vadd.f32 %v606_v14, %v4434_v39  ;;  %v2487_v39 = vsel %vm2464_vm8, %v2484_v13, %v2486_v48  ;;  %v2210_v13 = vsel %vm2159_vm7, %v2205_v26, %v2209_v36 }
 0x106   :  { %v3265_v0 = vpop.f32.mrf.mxu1  ;;  %v3309_v44 = vpop.f32.mrf.mxu0  ;;  %v2489_v15 = vsel %vm2464_vm8, %v2486_v48, %v2488_v49 }
 0x107   :  { %v4535_v50 = vadd.f32 %v857_v34, %v607_v58  ;;  %v618_v31 = vadd.f32 %v3265_v0, %v4439_v7  ;;  %v2214_v34 = vsel %vm2159_vm7, %v2209_v36, %v2213_v18 }
 0x108   :  { %v609_v62 = vpop.f32.mrf.mxu1  ;;  %v860_v22 = vpop.f32.mrf.mxu0 }
 0x109   :  { %v4546_v51 = vadd.f32 %v3309_v44, %v618_v31  ;;  %v610_v7 = vadd.f32 %v609_v62, %v4447_v28 }
 0x10a   :  { %v3268_v32 = vpop.f32.mrf.mxu1  ;;  %v3312_v53 = vpop.f32.mrf.mxu0  ;;  %3543 = vmatmul.mubr.bf16.gmra.mxu1 %v2202_v61  ;;  %3587 = vmatmul.mubr.bf16.gmra.mxu0 %v2485_v43 }
 0x10b   :  { %v4549_v21 = vadd.f32 %v860_v22, %v610_v7  ;;  %v631_v9 = vadd.f32 %v3268_v32, %v4455_v8  ;;  %3546 = vmatprep.mubr.bf16.mxu1 %v2206_v30  ;;  %3590 = vmatprep.mubr.bf16.mxu0 %v2487_v39 }
 0x10c   :  { %v622_v42 = vpop.f32.mrf.mxu1  ;;  %v873_v23 = vpop.f32.mrf.mxu0 }
 0x10d   :  { %v4554_v54 = vadd.f32 %v3312_v53, %v631_v9  ;;  %v623_v28 = vadd.f32 %v622_v42, %v4460_v6 }
 0x10e   :  { %v3269_v12 = vpop.f32.mrf.mxu1  ;;  %v3313_v57 = vpop.f32.mrf.mxu0 }
 0x10f   :  { %v4557_v40 = vadd.f32 %v873_v23, %v623_v28  ;;  %v634_v8 = vadd.f32 %v3269_v12, %v4467_v4 }
 0x110   :  { %v625_v17 = vpop.f32.mrf.mxu1  ;;  %v876_v14 = vpop.f32.mrf.mxu0 }
 0x111   :  { %v4564_v58 = vadd.f32 %v3313_v57, %v634_v8  ;;  %v626_v6 = vadd.f32 %v625_v17, %v4475_v29 }
 0x112   :  { %v3272_v0 = vpop.f32.mrf.mxu1  ;;  %v3316_v44 = vpop.f32.mrf.mxu0  ;;  %3547 = vmatmul.mubr.bf16.gmra.mxu1 %v2210_v13  ;;  %3591 = vmatmul.mubr.bf16.gmra.mxu0 %v2489_v15 }
 0x113   :  { %v4567_v61 = vadd.f32 %v876_v14, %v626_v6  ;;  %v647_v4 = vadd.f32 %v3272_v0, %v4483_v2  ;;  %3550 = vmatprep.mubr.bf16.mxu1 %v2214_v34  ;;  %3594 = vmatprep.mubr.bf16.mxu0 %v2491_v20 }
 0x114   :  { %v638_v26 = vpop.f32.mrf.mxu1  ;;  %v889_v48 = vpop.f32.mrf.mxu0 }
 0x115   :  { %v4570_v43 = vadd.f32 %v3316_v44, %v647_v4  ;;  %v639_v31 = vadd.f32 %v638_v26, %v4490_v60 }
 0x116   :  { %v3273_v45 = vpop.f32.mrf.mxu1  ;;  %v3317_v10 = vpop.f32.mrf.mxu0 }
 0x117   :  { %v4573_v62 = vadd.f32 %v889_v48, %v639_v31  ;;  %v650_v29 = vadd.f32 %v3273_v45, %v4495_v38 }
 0x118   :  { %v641_v22 = vpop.f32.mrf.mxu1  ;;  %v892_v30 = vpop.f32.mrf.mxu0 }
 0x119   :  { %v4576_v39 = vadd.f32 %v3317_v10, %v650_v29  ;;  %v642_v2 = vadd.f32 %v641_v22, %v4501_v56 }
 0x11a   :  { %v3276_v37 = vpop.f32.mrf.mxu1  ;;  %v3320_v52 = vpop.f32.mrf.mxu0  ;;  %3551 = vmatmul.mubr.bf16.gmra.mxu1 %v2213_v18  ;;  %3595 = vmatmul.mubr.bf16.gmra.mxu0 %v2490_v1 }
 0x11b   :  { %v4579_v7 = vadd.f32 %v892_v30, %v642_v2  ;;  %v663_v60 = vadd.f32 %v3276_v37, %v4507_v3 }
 0x11c   :  { %v654_v32 = vpop.f32.mrf.mxu1  ;;  %v905_v53 = vpop.f32.mrf.mxu0 }
 0x11d   :  { %v4582_v9 = vadd.f32 %v3320_v52, %v663_v60  ;;  %v655_v38 = vadd.f32 %v654_v32, %v4510_v16 }
 0x11e   :  { %v3277_v36 = vpop.f32.mrf.mxu1  ;;  %v3321_v49 = vpop.f32.mrf.mxu0 }
 0x11f   :  { %v4585_v42 = vadd.f32 %v905_v53, %v655_v38  ;;  %v666_v56 = vadd.f32 %v3277_v36, %v4513_v24 }
 0x120   :  { %v657_v23 = vpop.f32.mrf.mxu1  ;;  %v908_v28 = vpop.f32.mrf.mxu0 }
 0x121   :  { %v4588_v18 = vadd.f32 %v3321_v49, %v666_v56  ;;  %v658_v1 = vadd.f32 %v657_v23, %v4521_v55 }
 0x122   :  { %v3280_v12 = vpop.f32.mrf.mxu1  ;;  %v3324_v3 = vpop.f32.mrf.mxu0 }
 0x123   :  { %v4591_v57 = vadd.f32 %v908_v28, %v658_v1  ;;  %v679_v8 = vadd.f32 %v3280_v12, %v4431_v63 }
 0x124   :  { %v670_v13 = vpop.f32.mrf.mxu1  ;;  %v921_v16 = vpop.f32.mrf.mxu0 }
 0x125   :  { %v4594_v15 = vadd.f32 %v3324_v3, %v679_v8  ;;  %v671_v17 = vadd.f32 %v670_v13, %v4436_v41 }
 0x126   :  { %v3281_v14 = vpop.f32.mrf.mxu1  ;;  %v3325_v24 = vpop.f32.mrf.mxu0 }
 0x127   :  { %v4597_v34 = vadd.f32 %v921_v16, %v671_v17  ;;  %v682_v20 = vadd.f32 %v3281_v14, %v4441_v46 }
 0x128   :  { %v673_v6 = vpop.f32.mrf.mxu1  ;;  %v924_v55 = vpop.f32.mrf.mxu0 }
 0x129   :  { %v4600_v0 = vadd.f32 %v3325_v24, %v682_v20  ;;  %v674_v44 = vadd.f32 %v673_v6, %v4449_v11 }
 0x12a   :  { %v3284_v4 = vpop.f32.mrf.mxu1  ;;  %v3328_v63 = vpop.f32.mrf.mxu0 }
 0x12b   :  { %v4603_v26 = vadd.f32 %v924_v55, %v674_v44  ;;  %v695_v48 = vadd.f32 %v3284_v4, %v4457_v59 }
 0x12c   :  { %v686_v31 = vpop.f32.mrf.mxu1  ;;  %v937_v41 = vpop.f32.mrf.mxu0 }
 0x12d   :  { %v4606_v45 = vadd.f32 %v3328_v63, %v695_v48  ;;  %v687_v10 = vadd.f32 %v686_v31, %v4462_v19 }
 0x12e   :  { %v3285_v29 = vpop.f32.mrf.mxu1  ;;  %v3329_v46 = vpop.f32.mrf.mxu0 }
 0x12f   :  { %v4609_v22 = vadd.f32 %v937_v41, %v687_v10  ;;  %v698_v30 = vadd.f32 %v3285_v29, %v4469_v5 }
 0x130   :  { %v689_v2 = vpop.f32.mrf.mxu1  ;;  %v940_v11 = vpop.f32.mrf.mxu0 }
 0x131   :  { %v4612_v37 = vadd.f32 %v3329_v46, %v698_v30  ;;  %v690_v52 = vadd.f32 %v689_v2, %v4477_v27 }
 0x132   :  { %v3288_v60 = vpop.f32.mrf.mxu1  ;;  %v3332_v59 = vpop.f32.mrf.mxu0 }
 0x133   :  { %v4615_v32 = vadd.f32 %v940_v11, %v690_v52  ;;  %v711_v53 = vadd.f32 %v3288_v60, %v4485_v47 }
 0x134   :  { %v702_v38 = vpop.f32.mrf.mxu1  ;;  %v953_v19 = vpop.f32.mrf.mxu0 }
 0x135   :  { %v4618_v36 = vadd.f32 %v3332_v59, %v711_v53  ;;  %v703_v49 = vadd.f32 %v702_v38, %v4492_v25 }
 0x136   :  { %v3289_v56 = vpop.f32.mrf.mxu1  ;;  %v3333_v5 = vpop.f32.mrf.mxu0 }
 0x137   :  { %v4621_v23 = vadd.f32 %v953_v19, %v703_v49 }
 0x138   :  { %v705_v28 = vpop.f32.mrf.mxu1  ;;  %v956_v1 = vpop.f32.mrf.mxu0 }
 0x139   :  { %v706_v27 = vadd.f32 %v705_v28, %v4519_v33 }
 0x13a   :  { %v3352_v12 = vpop.f32.mrf.mxu1  ;;  %v3396_v3 = vpop.f32.mrf.mxu0 }
 0x13b   :  { %v4624_v8 = vadd.f32 %v956_v1, %v706_v27  ;;  %v1248_v47 = vadd.f32 %v3352_v12, %v4530_v35 }
 0x13c   :  { %v1136_v13 = vpop.f32.mrf.mxu1  ;;  %v1450_v16 = vpop.f32.mrf.mxu0 }
 0x13d   :  { %v4627_v17 = vadd.f32 %v3396_v3, %v1248_v47  ;;  %v1246_v25 = vadd.f32 %v1136_v13, %v4535_v50 }
 0x13e   :  { %v3353_v14 = vpop.f32.mrf.mxu1  ;;  %v3397_v24 = vpop.f32.mrf.mxu0 }
 0x13f   :  { %v4630_v20 = vadd.f32 %v1450_v16, %v1246_v25  ;;  %v1249_v6 = vadd.f32 %v3353_v14, %v4546_v51 }
 0x140   :  { %v1139_v55 = vpop.f32.mrf.mxu1  ;;  %v1453_v33 = vpop.f32.mrf.mxu0 }
 0x141   :  { %v4633_v44 = vadd.f32 %v3397_v24, %v1249_v6  ;;  %v1247_v4 = vadd.f32 %v1139_v55, %v4549_v21 }
 0x142   :  { %v3356_v63 = vpop.f32.mrf.mxu1  ;;  %v3400_v35 = vpop.f32.mrf.mxu0 }
 0x143   :  { %v4636_v48 = vadd.f32 %v1453_v33, %v1247_v4  ;;  %v1252_v31 = vadd.f32 %v3356_v63, %v4554_v54 }
 0x144   :  { %v1152_v41 = vpop.f32.mrf.mxu1  ;;  %v1466_v50 = vpop.f32.mrf.mxu0 }
 0x145   :  { %v4639_v10 = vadd.f32 %v3400_v35, %v1252_v31  ;;  %v1250_v29 = vadd.f32 %v1152_v41, %v4557_v40 }
 0x146   :  { %v3357_v46 = vpop.f32.mrf.mxu1  ;;  %v3401_v51 = vpop.f32.mrf.mxu0 }
 0x147   :  { %v4642_v30 = vadd.f32 %v1466_v50, %v1250_v29  ;;  %v1253_v2 = vadd.f32 %v3357_v46, %v4564_v58 }
 0x148   :  { %v1155_v11 = vpop.f32.mrf.mxu1  ;;  %v1469_v21 = vpop.f32.mrf.mxu0 }
 0x149   :  { %v4645_v52 = vadd.f32 %v3401_v51, %v1253_v2  ;;  %v1251_v60 = vadd.f32 %v1155_v11, %v4567_v61 }
 0x14a   :  { %v3360_v59 = vpop.f32.mrf.mxu1  ;;  %v3404_v54 = vpop.f32.mrf.mxu0 }
 0x14b   :  { %v4648_v53 = vadd.f32 %v1469_v21, %v1251_v60  ;;  %v1256_v38 = vadd.f32 %v3360_v59, %v4570_v43 }
 0x14c   :  { %v1168_v19 = vpop.f32.mrf.mxu1  ;;  %v1482_v40 = vpop.f32.mrf.mxu0 }
 0x14d   :  { %v4651_v49 = vadd.f32 %v3404_v54, %v1256_v38  ;;  %v1254_v56 = vadd.f32 %v1168_v19, %v4573_v62 }
 0x14e   :  { %v3361_v5 = vpop.f32.mrf.mxu1  ;;  %v3405_v58 = vpop.f32.mrf.mxu0 }
 0x14f   :  { %v4654_v28 = vadd.f32 %v1482_v40, %v1254_v56  ;;  %v1257_v1 = vadd.f32 %v3361_v5, %v4576_v39 }
 0x150   :  { %v1171_v27 = vpop.f32.mrf.mxu1  ;;  %v1485_v61 = vpop.f32.mrf.mxu0 }
 0x151   :  { %v4657_v12 = vadd.f32 %v3405_v58, %v1257_v1  ;;  %v1255_v3 = vadd.f32 %v1171_v27, %v4579_v7 }
 0x152   :  { %v3364_v47 = vpop.f32.mrf.mxu1  ;;  %v3408_v43 = vpop.f32.mrf.mxu0 }
 0x153   :  { %v4660_v13 = vadd.f32 %v1485_v61, %v1255_v3  ;;  %v1260_v16 = vadd.f32 %v3364_v47, %v4582_v9 }
 0x154   :  { %v1184_v25 = vpop.f32.mrf.mxu1  ;;  %v1498_v62 = vpop.f32.mrf.mxu0 }
 0x155   :  { %v4663_v14 = vadd.f32 %v3408_v43, %v1260_v16  ;;  %v1258_v24 = vadd.f32 %v1184_v25, %v4585_v42 }
 0x156   :  { %v3365_v6 = vpop.f32.mrf.mxu1  ;;  %v3409_v39 = vpop.f32.mrf.mxu0 }
 0x157   :  { %v4666_v55 = vadd.f32 %v1498_v62, %v1258_v24  ;;  %v1261_v33 = vadd.f32 %v3365_v6, %v4588_v18 }
 0x158   :  { %v1187_v4 = vpop.f32.mrf.mxu1  ;;  %v1501_v7 = vpop.f32.mrf.mxu0 }
 0x159   :  { %v4669_v63 = vadd.f32 %v3409_v39, %v1261_v33  ;;  %v1259_v35 = vadd.f32 %v1187_v4, %v4591_v57 }
 0x15a   :  { %v3368_v31 = vpop.f32.mrf.mxu1  ;;  %v3412_v9 = vpop.f32.mrf.mxu0 }
 0x15b   :  { %v4672_v41 = vadd.f32 %v1501_v7, %v1259_v35  ;;  %v1264_v50 = vadd.f32 %v3368_v31, %v4594_v15 }
 0x15c   :  { %v1200_v29 = vpop.f32.mrf.mxu1  ;;  %v1514_v42 = vpop.f32.mrf.mxu0 }
 0x15d   :  { %v4675_v46 = vadd.f32 %v3412_v9, %v1264_v50  ;;  %v1262_v51 = vadd.f32 %v1200_v29, %v4597_v34 }
 0x15e   :  { %v3369_v2 = vpop.f32.mrf.mxu1  ;;  %v3413_v18 = vpop.f32.mrf.mxu0 }
 0x15f   :  { %v4678_v11 = vadd.f32 %v1514_v42, %v1262_v51  ;;  %v1265_v21 = vadd.f32 %v3369_v2, %v4600_v0 }
 0x160   :  { %v1203_v60 = vpop.f32.mrf.mxu1  ;;  %v1517_v57 = vpop.f32.mrf.mxu0 }
 0x161   :  { %5111 = vst [vmem:[#allocation2_spill] sm:$0xff] %v4678_v11  ;;  %v4681_v59 = vadd.f32 %v3413_v18, %v1265_v21  ;;  %v1263_v54 = vadd.f32 %v1203_v60, %v4603_v26 }
 0x162   :  { %v3372_v38 = vpop.f32.mrf.mxu1  ;;  %v3416_v15 = vpop.f32.mrf.mxu0 }
 0x163   :  { %5112 = vst [vmem:[#allocation3_spill] sm:$0xff] %v4681_v59  ;;  %v4684_v19 = vadd.f32 %v1517_v57, %v1263_v54  ;;  %v1268_v40 = vadd.f32 %v3372_v38, %v4606_v45 }
 0x164   :  { %v1216_v56 = vpop.f32.mrf.mxu1  ;;  %v1530_v34 = vpop.f32.mrf.mxu0 }
 0x165   :  { %5113 = vst [vmem:[#allocation4_spill] sm:$0xff] %v4684_v19  ;;  %v4687_v5 = vadd.f32 %v3416_v15, %v1268_v40  ;;  %v1266_v58 = vadd.f32 %v1216_v56, %v4609_v22 }
 0x166   :  { %v3373_v1 = vpop.f32.mrf.mxu1  ;;  %v3417_v0 = vpop.f32.mrf.mxu0 }
 0x167   :  { %5114 = vst [vmem:[#allocation5_spill] sm:$0xff] %v4687_v5  ;;  %v4690_v27 = vadd.f32 %v1530_v34, %v1266_v58  ;;  %v1269_v61 = vadd.f32 %v3373_v1, %v4612_v37 }
 0x168   :  { %v1219_v3 = vpop.f32.mrf.mxu1  ;;  %v1533_v26 = vpop.f32.mrf.mxu0 }
 0x169   :  { %5115 = vst [vmem:[#allocation6_spill] sm:$0xff] %v4690_v27  ;;  %v4693_v47 = vadd.f32 %v3417_v0, %v1269_v61  ;;  %v1267_v43 = vadd.f32 %v1219_v3, %v4615_v32 }
 0x16a   :  { %v3376_v16 = vpop.f32.mrf.mxu1  ;;  %v3420_v45 = vpop.f32.mrf.mxu0 }
 0x16b   :  { %5116 = vst [vmem:[#allocation7_spill] sm:$0xff] %v4693_v47  ;;  %v4696_v25 = vadd.f32 %v1533_v26, %v1267_v43  ;;  %v1272_v62 = vadd.f32 %v3376_v16, %v4618_v36 }
 0x16c   :  { %v1232_v24 = vpop.f32.mrf.mxu1  ;;  %v1546_v22 = vpop.f32.mrf.mxu0 }
 0x16d   :  { %5117 = vst [vmem:[#allocation8_spill] sm:$0xff] %v4696_v25  ;;  %v4699_v6 = vadd.f32 %v3420_v45, %v1272_v62  ;;  %v1270_v39 = vadd.f32 %v1232_v24, %v4621_v23 }
 0x16e   :  { %v3377_v33 = vpop.f32.mrf.mxu1  ;;  %v3421_v37 = vpop.f32.mrf.mxu0 }
 0x16f   :  { %5118 = vst [vmem:[#allocation9_spill] sm:$0xff] %v4699_v6  ;;  %v4702_v4 = vadd.f32 %v1546_v22, %v1270_v39 }
 0x170   :  { %v1235_v7 = vpop.f32.mrf.mxu1  ;;  %v1549_v35 = vpop.f32.mrf.mxu0 }
 0x171   :  { %5119 = vst [vmem:[#allocation10_spill] sm:$0xff] %v4702_v4  ;;  %v1271_v32 = vadd.f32 %v1235_v7, %v4624_v8 }
 0x172   :  { %v3440_v31 = vpop.f32.mrf.mxu1  ;;  %v3484_v9 = vpop.f32.mrf.mxu0 }
 0x173   :  { %v4705_v50 = vadd.f32 %v1549_v35, %v1271_v32 }
 0x174   :  { %v1729_v29 = vpop.f32.mrf.mxu1  ;;  %v2006_v36 = vpop.f32.mrf.mxu0 }
 0x175   :  { %5120 = vst [vmem:[#allocation11_spill] sm:$0xff] %v4705_v50 }
 0x176   :  { %v3441_v42 = vpop.f32.mrf.mxu1  ;;  %v4707_v51 = vpop.f32.mrf.mxu0 }
 0x178   :  { %v1732_v2 = vpop.f32.mrf.mxu1  ;;  %v4709_v18 = vpop.f32.mrf.mxu0 }
 0x17a   :  { %v4711_v23 = vpop.f32.mrf.mxu1  ;;  %v4713_v21 = vpop.f32.mrf.mxu0 }
 0x17c   :  { %v4715_v60 = vpop.f32.mrf.mxu1  ;;  %v4717_v57 = vpop.f32.mrf.mxu0 }
 0x17e   :  { %v4719_v8 = vpop.f32.mrf.mxu1  ;;  %v4721_v54 = vpop.f32.mrf.mxu0 }
 0x180   :  { %v4723_v38 = vpop.f32.mrf.mxu1  ;;  %v4725_v15 = vpop.f32.mrf.mxu0 }
 0x182   :  { %v4727_v40 = vpop.f32.mrf.mxu1  ;;  %v4729_v56 = vpop.f32.mrf.mxu0 }
 0x184   :  { %v4731_v34 = vpop.f32.mrf.mxu1  ;;  %v4733_v58 = vpop.f32.mrf.mxu0 }
 0x186   :  { %v4735_v1 = vpop.f32.mrf.mxu1  ;;  %v4737_v0 = vpop.f32.mrf.mxu0 }
 0x188   :  { %v4739_v61 = vpop.f32.mrf.mxu1  ;;  %v4741_v3 = vpop.f32.mrf.mxu0 }
 0x18a   :  { %v4743_v26 = vpop.f32.mrf.mxu1  ;;  %v4745_v43 = vpop.f32.mrf.mxu0 }
 0x18c   :  { %v4747_v16 = vpop.f32.mrf.mxu1  ;;  %v4749_v45 = vpop.f32.mrf.mxu0 }
 0x18e   :  { %v4751_v62 = vpop.f32.mrf.mxu1  ;;  %v4753_v24 = vpop.f32.mrf.mxu0 }
 0x190   :  { %v4755_v22 = vpop.f32.mrf.mxu1  ;;  %v4757_v39 = vpop.f32.mrf.mxu0 }
 0x192   :  { %v4759_v33 = vpop.f32.mrf.mxu1  ;;  %v4761_v37 = vpop.f32.mrf.mxu0 }
 0x193   :  { %5121 = vst [vmem:[#allocation12_spill] sm:$0xff] %v4761_v37 }
 0x194   :  { %v4763_v7 = vpop.f32.mrf.mxu1  ;;  %v4765_v35 = vpop.f32.mrf.mxu0 }
 0x195   :  { %5122 = vst [vmem:[#allocation13_spill] sm:$0xff] %v4763_v7  ;;  %5123 = vst [vmem:[#allocation14_spill] sm:$0xff] %v4765_v35 }
 0x196   :  { %v4767_v32 = vpop.f32.mrf.mxu1  ;;  %v4769_v50 = vpop.f32.mrf.mxu0 }
 0x197   :  { %5124 = vst [vmem:[#allocation15_spill] sm:$0xff] %v4767_v32  ;;  %5125 = vst [vmem:[#allocation16_spill] sm:$0xff] %v4769_v50 }
 0x198   :  { %v4771_v4 = vpop.f32.mrf.mxu1  ;;  %v4773_v6 = vpop.f32.mrf.mxu0 }
 0x199   :  { %5126 = vst [vmem:[#allocation17_spill] sm:$0xff] %v4771_v4  ;;  %5127 = vst [vmem:[#allocation18_spill] sm:$0xff] %v4773_v6 }
 0x19a   :  { %v4775_v25 = vpop.f32.mrf.mxu1  ;;  %v4777_v47 = vpop.f32.mrf.mxu0 }
 0x19b   :  { %5128 = vst [vmem:[#allocation19_spill] sm:$0xff] %v4775_v25  ;;  %5129 = vst [vmem:[#allocation20_spill] sm:$0xff] %v4777_v47  ;;  %v1841_v47 = vadd.f32 %v3440_v31, %v4627_v17  ;;  %v4810_v17 = vld [vmem:[%s5107_s3] ss:$0 sm:$0xff] }
 0x19c   :  { %v4779_v27 = vpop.f32.mrf.mxu1  ;;  %v4781_v5 = vpop.f32.mrf.mxu0 }
 0x19d   :  { %5130 = vst [vmem:[#allocation21_spill] sm:$0xff] %v4779_v27  ;;  %5131 = vst [vmem:[#allocation22_spill] sm:$0xff] %v4781_v5 }
 0x19e   :  { %v4783_v19 = vpop.f32.mrf.mxu1  ;;  %v4785_v59 = vpop.f32.mrf.mxu0 }
 0x19f   :  { %5132 = vst [vmem:[#allocation23_spill] sm:$0xff] %v4783_v19  ;;  %5133 = vst [vmem:[#allocation24_spill] sm:$0xff] %v4785_v59  ;;  %v1839_v19 = vadd.f32 %v1729_v29, %v4630_v20 }
 0x1a0   :  { %v4787_v35 = vpop.f32.mrf.mxu1  ;;  %v4789_v32 = vpop.f32.mrf.mxu0 }
 0x1a1   :  { %5134 = vst [vmem:[#allocation25_spill] sm:$0xff] %v4787_v35  ;;  %5135 = vst [vmem:[#allocation26_spill] sm:$0xff] %v4789_v32  ;;  %v2118_v35 = vadd.f32 %v3484_v9, %v1841_v47  ;;  %v1842_v32 = vadd.f32 %v3441_v42, %v4633_v44  ;;  %v1845_v44 = vadd.f32 %v4711_v23, %v4639_v10  ;;  %v2795_v10 = vld [vmem:[%s5109_s5 + $0x10] sm:$0xff] }
 0x1a2   :  { %v4791_v50 = vpop.f32.mrf.mxu1  ;;  %v4793_v4 = vpop.f32.mrf.mxu0 }
 0x1a3   :  { %5136 = vst [vmem:[#allocation27_spill] sm:$0xff] %v4791_v50  ;;  %5137 = vst [vmem:[#allocation28_spill] sm:$0xff] %v4793_v4  ;;  %v2116_v4 = vadd.f32 %v2006_v36, %v1839_v19  ;;  %v4818_v19 = vld [vmem:[%s5108_s4] ss:$0 sm:$0xff] }
 0x1a4   :  { %v4795_v6 = vpop.f32.mrf.mxu1  ;;  %v4797_v25 = vpop.f32.mrf.mxu0 }
 0x1a5   :  { %5138 = vst [vmem:[#allocation29_spill] sm:$0xff] %v4795_v6  ;;  %v1840_v6 = vadd.f32 %v1732_v2, %v4636_v48 }
 0x1a6   :  { %v3465_v27 = vpop.f32.mrf.mxu1  ;;  %v3509_v5 = vpop.f32.mrf.mxu0 }
 0x1a7   :  { %v2119_v27 = vadd.f32 %v4707_v51, %v1842_v32  ;;  %v2117_v9 = vadd.f32 %v4709_v18, %v1840_v6 }
 0x1a8   :  { %v4801_v37 = vpop.f32.mrf.mxu1  ;;  %v4803_v59 = vpop.f32.mrf.mxu0 }
 0x1aa   :  { %v3528_v50 = vpop.f32.mrf.mxu1  ;;  %v3572_v7 = vpop.f32.mrf.mxu0 }
 0x1ab   :  { %v2423_v11 = vadd.f32 %v3528_v50, %v2118_v35  ;;  %v2122_v35 = vadd.f32 %v4713_v21, %v1845_v44  ;;  %v1849_v21 = vadd.f32 %v4727_v40, %v4651_v49  ;;  %v2794_v49 = vld [vmem:[%s5109_s5 + $0x8] sm:$0xff] }
 0x1ac   :  { %v2311_v5 = vpop.f32.mrf.mxu1  ;;  %v2588_v20 = vpop.f32.mrf.mxu0 }
 0x1ad   :  { %v2700_v31 = vadd.f32 %v3572_v7, %v2423_v11  ;;  %v2421_v29 = vadd.f32 %v2311_v5, %v2116_v4  ;;  %v1843_v11 = vadd.f32 %v4715_v60, %v4642_v30  ;;  %v1846_v4 = vadd.f32 %v4719_v8, %v4645_v52  ;;  %v2793_v52 = vld [vmem:[%s5109_s5] sm:$0xff] }
 0x1ae   :  { %v3529_v48 = vpop.f32.mrf.mxu1  ;;  %v3573_v47 = vpop.f32.mrf.mxu0  ;;  %v1844_v30 = vadd.f32 %v4723_v38, %v4648_v53  ;;  %v2796_v53 = vld [vmem:[%s5109_s5 + $0x18] sm:$0xff] }
 0x1af   :  { %v2734_v50 = vmul.f32 %v4810_v17, %v2700_v31  ;;  %v2698_v36 = vadd.f32 %v2588_v20, %v2421_v29  ;;  %v2424_v42 = vadd.f32 %v3529_v48, %v2119_v27  ;;  %v2120_v31 = vadd.f32 %v4717_v57, %v1843_v11 }
 0x1b0   :  { %v2314_v51 = vpop.f32.mrf.mxu1  ;;  %v2591_v2 = vpop.f32.mrf.mxu0  ;;  %v2123_v29 = vadd.f32 %v4721_v54, %v1846_v4  ;;  %v2121_v57 = vadd.f32 %v4725_v15, %v1844_v30  ;;  %v1847_v54 = vadd.f32 %v4731_v34, %v4654_v28  ;;  %v1850_v28 = vadd.f32 %v4735_v1, %v4657_v12 }
 0x1b1   :  { %v2768_v23 = vadd.f32 %v4818_v19, %v2734_v50  ;;  %v2732_v6 = vmul.f32 %v4810_v17, %v2698_v36  ;;  %v2701_v18 = vadd.f32 %v3573_v47, %v2424_v42  ;;  %v2422_v7 = vadd.f32 %v2314_v51, %v2117_v9 }
 0x1b2   :  { %v3532_v60 = vpop.f32.mrf.mxu1  ;;  %v3576_v8 = vpop.f32.mrf.mxu0  ;;  %v1848_v12 = vadd.f32 %v4739_v61, %v4660_v13  ;;  %v2127_v13 = vadd.f32 %v4737_v0, %v1850_v28  ;;  %v1853_v61 = vadd.f32 %v4743_v26, %v4663_v14  ;;  %v1851_v26 = vadd.f32 %v4747_v16, %v4666_v55  ;;  %v2803_v16 = vld [vmem:[%s5109_s5 + $0x50] sm:$0xff] }
 0x1b3   :  { %v2822_v32 = vadd.f32 %v2795_v10, %v2768_v23  ;;  %v2766_v5 = vadd.f32 %v4818_v19, %v2732_v6  ;;  %v2735_v20 = vmul.f32 %v4810_v17, %v2701_v18  ;;  %v2699_v27 = vadd.f32 %v2591_v2, %v2422_v7 }
 0x1b4   :  { %v2427_v38 = vadd.f32 %v3532_v60, %v2122_v35  ;;  %v2327_v44 = vpop.f32.mrf.mxu1  ;;  %v2604_v48 = vpop.f32.mrf.mxu0  ;;  %v2126_v23 = vadd.f32 %v4729_v56, %v1849_v21  ;;  %v2125_v14 = vadd.f32 %v4741_v3, %v1848_v12  ;;  %v1854_v3 = vadd.f32 %v4751_v62, %v4669_v63 }
 0x1b5   :  { %v2849_v47 = vmax.f32 %v2822_v32, 0.0  ;;  %v2820_v9 = vadd.f32 %v2793_v52, %v2766_v5  ;;  %v2769_v50 = vadd.f32 %v4818_v19, %v2735_v20  ;;  %v2733_v36 = vmul.f32 %v4810_v17, %v2699_v27  ;;  %v2799_v52 = vld [vmem:[%s5109_s5 + $0x30] sm:$0xff] }
 0x1b6   :  { %v2704_v40 = vadd.f32 %v3576_v8, %v2427_v38  ;;  %v2425_v42 = vadd.f32 %v2327_v44, %v2120_v31  ;;  %v3533_v11 = vpop.f32.mrf.mxu1  ;;  %v3577_v4 = vpop.f32.mrf.mxu0  ;;  %v2124_v8 = vadd.f32 %v4733_v58, %v1847_v54  ;;  %v2797_v31 = vld [vmem:[%s5109_s5 + $0x20] sm:$0xff]  ;;  %v2800_v44 = vld [vmem:[%s5109_s5 + $0x38] sm:$0xff]  ;;  %v2128_v63 = vadd.f32 %v4749_v45, %v1851_v26  ;;  %v5143_v26 = vld [vmem:[#allocation15_spill] sm:$0xff] }
 0x1b7   :  { %2876 = vst [vmem:[%s5110_s6 + $0x10] sm:$0xff] %v2849_v47  ;;  %v2847_v10 = vmax.f32 %v2820_v9, 0.0  ;;  %v2823_v51 = vadd.f32 %v2796_v53, %v2769_v50  ;;  %v2767_v2 = vadd.f32 %v4818_v19, %v2733_v36  ;;  %v2428_v15 = vadd.f32 %v3533_v11, %v2123_v29 }
 0x1b8   :  { %v2738_v34 = vmul.f32 %v4810_v17, %v2704_v40  ;;  %v2702_v6 = vadd.f32 %v2604_v48, %v2425_v42  ;;  %v2330_v18 = vpop.f32.mrf.mxu1  ;;  %v2607_v7 = vpop.f32.mrf.mxu0  ;;  %v1852_v62 = vadd.f32 %v4755_v22, %v4672_v41  ;;  %v1857_v12 = vadd.f32 %v4759_v33, %v4675_v46  ;;  %v5139_v46 = vld [vmem:[#allocation2_spill] sm:$0xff]  ;;  %v5140_v33 = vld [vmem:[#allocation13_spill] sm:$0xff] }
 0x1b9   :  { %2874 = vst [vmem:[%s5110_s6] sm:$0xff] %v2847_v10  ;;  %v2850_v35 = vmax.f32 %v2823_v51, 0.0  ;;  %v2821_v30 = vadd.f32 %v2794_v49, %v2767_v2  ;;  %v2705_v60 = vadd.f32 %v3577_v4, %v2428_v15  ;;  %v2426_v56 = vadd.f32 %v2330_v18, %v2121_v57  ;;  %v2798_v49 = vld [vmem:[%s5109_s5 + $0x28] sm:$0xff] }
 0x1ba   :  { %v2772_v1 = vadd.f32 %v4818_v19, %v2738_v34  ;;  %v2736_v32 = vmul.f32 %v4810_v17, %v2702_v6  ;;  %v3536_v5 = vpop.f32.mrf.mxu1  ;;  %v3580_v20 = vpop.f32.mrf.mxu0  ;;  %v2130_v2 = vadd.f32 %v4745_v43, %v1853_v61 }
 0x1bb   :  { %2877 = vst [vmem:[%s5110_s6 + $0x18] sm:$0xff] %v2850_v35  ;;  %v2848_v27 = vmax.f32 %v2821_v30, 0.0  ;;  %v2739_v58 = vmul.f32 %v4810_v17, %v2705_v60  ;;  %v2703_v29 = vadd.f32 %v2607_v7, %v2426_v56  ;;  %v2431_v21 = vadd.f32 %v3536_v5, %v2126_v23  ;;  %v2801_v7 = vld [vmem:[%s5109_s5 + $0x40] sm:$0xff] }
 0x1bc   :  { %v2826_v53 = vadd.f32 %v2799_v52, %v2772_v1  ;;  %v2770_v38 = vadd.f32 %v4818_v19, %v2736_v32  ;;  %v2343_v48 = vpop.f32.mrf.mxu1  ;;  %v2620_v47 = vpop.f32.mrf.mxu0 }
 0x1bd   :  { %2875 = vst [vmem:[%s5110_s6 + $0x8] sm:$0xff] %v2848_v27  ;;  %v2773_v9 = vadd.f32 %v4818_v19, %v2739_v58  ;;  %v2737_v0 = vmul.f32 %v4810_v17, %v2703_v29  ;;  %v2708_v50 = vadd.f32 %v3580_v20, %v2431_v21  ;;  %v2429_v36 = vadd.f32 %v2343_v48, %v2124_v8  ;;  %v2804_v58 = vld [vmem:[%s5109_s5 + $0x58] sm:$0xff] }
 0x1be   :  { %v2853_v57 = vmax.f32 %v2826_v53, 0.0  ;;  %v2824_v54 = vadd.f32 %v2797_v31, %v2770_v38  ;;  %v3537_v40 = vpop.f32.mrf.mxu1  ;;  %v3581_v42 = vpop.f32.mrf.mxu0  ;;  %v2131_v8 = vadd.f32 %v4753_v24, %v1854_v3  ;;  %v2129_v21 = vadd.f32 %v4757_v39, %v1852_v62  ;;  %v5144_v3 = vld [vmem:[#allocation14_spill] sm:$0xff] }
 0x1bf   :  { %v2827_v11 = vadd.f32 %v2800_v44, %v2773_v9  ;;  %v2771_v4 = vadd.f32 %v4818_v19, %v2737_v0  ;;  %v2742_v10 = vmul.f32 %v4810_v17, %v2708_v50  ;;  %v2706_v51 = vadd.f32 %v2620_v47, %v2429_v36  ;;  %v2802_v47 = vld [vmem:[%s5109_s5 + $0x48] sm:$0xff]  ;;  %v5141_v50 = vld [vmem:[#allocation12_spill] sm:$0xff] }
 0x1c0   :  { %2880 = vst [vmem:[%s5110_s6 + $0x30] sm:$0xff] %v2853_v57  ;;  %v2851_v55 = vmax.f32 %v2824_v54, 0.0  ;;  %v2432_v15 = vadd.f32 %v3537_v40, %v2127_v13  ;;  %v2346_v23 = vpop.f32.mrf.mxu1  ;;  %v2623_v28 = vpop.f32.mrf.mxu0  ;;  %v1855_v13 = vadd.f32 %v5140_v33, %v5139_v46  ;;  %v2134_v36 = vadd.f32 %v5141_v50, %v1857_v12  ;;  %v2807_v40 = vld [vmem:[%s5109_s5 + $0x70] sm:$0xff]  ;;  %v2806_v46 = vld [vmem:[%s5109_s5 + $0x68] sm:$0xff] }
 0x1c1   :  { %v2854_v34 = vmax.f32 %v2827_v11, 0.0  ;;  %v2825_v6 = vadd.f32 %v2798_v49, %v2771_v4  ;;  %v2776_v18 = vadd.f32 %v4818_v19, %v2742_v10  ;;  %v2740_v43 = vmul.f32 %v4810_v17, %v2706_v51 }
 0x1c2   :  { %2878 = vst [vmem:[%s5110_s6 + $0x20] sm:$0xff] %v2851_v55  ;;  %v2709_v35 = vadd.f32 %v3581_v42, %v2432_v15  ;;  %v2430_v30 = vadd.f32 %v2346_v23, %v2125_v14  ;;  %v3540_v52 = vpop.f32.mrf.mxu1  ;;  %v3584_v60 = vpop.f32.mrf.mxu0  ;;  %v5142_v14 = vld [vmem:[#allocation3_spill] sm:$0xff]  ;;  %v2132_v55 = vadd.f32 %v5144_v3, %v1855_v13  ;;  %v5146_v15 = vld [vmem:[#allocation17_spill] sm:$0xff] }
 0x1c3   :  { %2881 = vst [vmem:[%s5110_s6 + $0x38] sm:$0xff] %v2854_v34  ;;  %v2852_v45 = vmax.f32 %v2825_v6, 0.0  ;;  %v2830_v56 = vadd.f32 %v2803_v16, %v2776_v18  ;;  %v2774_v41 = vadd.f32 %v4818_v19, %v2740_v43  ;;  %v2435_v22 = vadd.f32 %v3540_v52, %v2130_v2  ;;  %v5145_v16 = vld [vmem:[#allocation4_spill] sm:$0xff]  ;;  %v2805_v6 = vld [vmem:[%s5109_s5 + $0x60] sm:$0xff] }
 0x1c4   :  { %v2743_v1 = vmul.f32 %v4810_v17, %v2709_v35  ;;  %v2707_v32 = vadd.f32 %v2623_v28, %v2430_v30  ;;  %v2359_v5 = vpop.f32.mrf.mxu1  ;;  %v2636_v20 = vpop.f32.mrf.mxu0  ;;  %v1858_v57 = vadd.f32 %v5143_v26, %v5142_v14  ;;  %v1856_v23 = vadd.f32 %v5146_v15, %v5145_v16  ;;  %v5147_v30 = vld [vmem:[#allocation16_spill] sm:$0xff] }
 0x1c5   :  { %2879 = vst [vmem:[%s5110_s6 + $0x28] sm:$0xff] %v2852_v45  ;;  %v2857_v27 = vmax.f32 %v2830_v56, 0.0  ;;  %v2828_v31 = vadd.f32 %v2801_v7, %v2774_v41  ;;  %v2712_v29 = vadd.f32 %v3584_v60, %v2435_v22  ;;  %v2433_v24 = vadd.f32 %v2359_v5, %v2128_v63  ;;  %v5148_v60 = vld [vmem:[#allocation5_spill] sm:$0xff]  ;;  %v5149_v45 = vld [vmem:[#allocation19_spill] sm:$0xff] }
 0x1c6   :  { %v2777_v61 = vadd.f32 %v4818_v19, %v2743_v1  ;;  %v2741_v53 = vmul.f32 %v4810_v17, %v2707_v32  ;;  %v3541_v38 = vpop.f32.mrf.mxu1  ;;  %v3585_v44 = vpop.f32.mrf.mxu0  ;;  %v2135_v52 = vadd.f32 %v5147_v30, %v1858_v57  ;;  %v1861_v56 = vadd.f32 %v5149_v45, %v5148_v60  ;;  %v2808_v22 = vld [vmem:[%s5109_s5 + $0x78] sm:$0xff] }
 0x1c7   :  { %2884 = vst [vmem:[%s5110_s6 + $0x50] sm:$0xff] %v2857_v27  ;;  %v2855_v48 = vmax.f32 %v2828_v31, 0.0  ;;  %v2746_v39 = vmul.f32 %v4810_v17, %v2712_v29  ;;  %v2710_v9 = vadd.f32 %v2636_v20, %v2433_v24  ;;  %v2436_v0 = vadd.f32 %v3541_v38, %v2131_v8  ;;  %v5150_v31 = vld [vmem:[#allocation18_spill] sm:$0xff]  ;;  %v5152_v24 = vld [vmem:[#allocation21_spill] sm:$0xff] }
 0x1c8   :  { %v2831_v54 = vadd.f32 %v2804_v58, %v2777_v61  ;;  %v2775_v49 = vadd.f32 %v4818_v19, %v2741_v53  ;;  %v2362_v42 = vpop.f32.mrf.mxu1  ;;  %v2639_v11 = vpop.f32.mrf.mxu0  ;;  %v2133_v58 = vadd.f32 %v5150_v31, %v1856_v23  ;;  %v5151_v29 = vld [vmem:[#allocation6_spill] sm:$0xff]  ;;  %v2812_v60 = vld [vmem:[%s5109_s5 + $0x98] sm:$0xff] }
 0x1c9   :  { %2882 = vst [vmem:[%s5110_s6 + $0x40] sm:$0xff] %v2855_v48  ;;  %v2780_v4 = vadd.f32 %v4818_v19, %v2746_v39  ;;  %v2744_v10 = vmul.f32 %v4810_v17, %v2710_v9  ;;  %v2713_v51 = vadd.f32 %v3585_v44, %v2436_v0  ;;  %v2434_v2 = vadd.f32 %v2362_v42, %v2129_v21  ;;  %v5153_v39 = vld [vmem:[#allocation20_spill] sm:$0xff]  ;;  %v5154_v42 = vld [vmem:[#allocation22_spill] sm:$0xff] }
 0x1ca   :  { %v2858_v28 = vmax.f32 %v2831_v54, 0.0  ;;  %v2829_v34 = vadd.f32 %v2802_v47, %v2775_v49  ;;  %v3544_v18 = vpop.f32.mrf.mxu1  ;;  %v3588_v43 = vpop.f32.mrf.mxu0  ;;  %v1859_v21 = vadd.f32 %v5152_v24, %v5151_v29  ;;  %v2138_v9 = vadd.f32 %v5153_v39, %v1861_v56  ;;  %v2811_v54 = vld [vmem:[%s5109_s5 + $0x90] sm:$0xff]  ;;  %v2809_v23 = vld [vmem:[%s5109_s5 + $0x80] sm:$0xff]  ;;  %v2810_v29 = vld [vmem:[%s5109_s5 + $0x88] sm:$0xff] }
 0x1cb   :  { %v2834_v63 = vadd.f32 %v2807_v40, %v2780_v4  ;;  %v2778_v62 = vadd.f32 %v4818_v19, %v2744_v10  ;;  %v2747_v7 = vmul.f32 %v4810_v17, %v2713_v51  ;;  %v2711_v35 = vadd.f32 %v2639_v11, %v2434_v2  ;;  %v5155_v4 = vld [vmem:[#allocation7_spill] sm:$0xff]  ;;  %v2815_v39 = vld [vmem:[%s5109_s5 + $0xb0] sm:$0xff] }
 0x1cc   :  { %2885 = vst [vmem:[%s5110_s6 + $0x58] sm:$0xff] %v2858_v28  ;;  %v2856_v41 = vmax.f32 %v2829_v34, 0.0  ;;  %v2439_v8 = vadd.f32 %v3544_v18, %v2134_v36  ;;  %v2375_v12 = vpop.f32.mrf.mxu1  ;;  %v2652_v1 = vpop.f32.mrf.mxu0  ;;  %v2136_v11 = vadd.f32 %v5154_v42, %v1859_v21  ;;  %v5156_v10 = vld [vmem:[#allocation23_spill] sm:$0xff]  ;;  %v5157_v18 = vld [vmem:[#allocation8_spill] sm:$0xff]  ;;  %v2813_v42 = vld [vmem:[%s5109_s5 + $0xa0] sm:$0xff] }
 0x1cd   :  { %v2861_v32 = vmax.f32 %v2834_v63, 0.0  ;;  %v2832_v5 = vadd.f32 %v2805_v6, %v2778_v62  ;;  %v2781_v20 = vadd.f32 %v4818_v19, %v2747_v7  ;;  %v2745_v27 = vmul.f32 %v4810_v17, %v2711_v35  ;;  %v5159_v62 = vld [vmem:[#allocation9_spill] sm:$0xff]  ;;  %v5160_v7 = vld [vmem:[#allocation27_spill] sm:$0xff] }
 0x1ce   :  { %2883 = vst [vmem:[%s5110_s6 + $0x48] sm:$0xff] %v2856_v41  ;;  %v2716_v33 = vadd.f32 %v3588_v43, %v2439_v8  ;;  %v2437_v13 = vadd.f32 %v2375_v12, %v2132_v55  ;;  %v3545_v61 = vpop.f32.mrf.mxu1  ;;  %v3589_v53 = vpop.f32.mrf.mxu0  ;;  %v1862_v51 = vadd.f32 %v5156_v10, %v5155_v4  ;;  %v5158_v43 = vld [vmem:[#allocation25_spill] sm:$0xff]  ;;  %v1865_v35 = vadd.f32 %v5160_v7, %v5159_v62 }
 0x1cf   :  { %2888 = vst [vmem:[%s5110_s6 + $0x70] sm:$0xff] %v2861_v32  ;;  %v2859_v38 = vmax.f32 %v2832_v5, 0.0  ;;  %v2835_v44 = vadd.f32 %v2808_v22, %v2781_v20  ;;  %v2779_v48 = vadd.f32 %v4818_v19, %v2745_v27  ;;  %v2440_v47 = vadd.f32 %v3545_v61, %v2135_v52  ;;  %v5162_v5 = vld [vmem:[#allocation10_spill] sm:$0xff]  ;;  %v5163_v20 = vld [vmem:[#allocation29_spill] sm:$0xff] }
 0x1d0   :  { %v2750_v0 = vmul.f32 %v4810_v17, %v2716_v33  ;;  %v2714_v50 = vadd.f32 %v2652_v1, %v2437_v13  ;;  %v2378_v36 = vpop.f32.mrf.mxu1  ;;  %v2655_v14 = vpop.f32.mrf.mxu0  ;;  %v1860_v63 = vadd.f32 %v5158_v43, %v5157_v18  ;;  %v5161_v1 = vld [vmem:[#allocation24_spill] sm:$0xff]  ;;  %v1863_v27 = vadd.f32 %v5163_v20, %v5162_v5 }
 0x1d1   :  { %2886 = vst [vmem:[%s5110_s6 + $0x60] sm:$0xff] %v2859_v38  ;;  %v2862_v26 = vmax.f32 %v2835_v44, 0.0  ;;  %v2833_v57 = vadd.f32 %v2806_v46, %v2779_v48  ;;  %v2717_v49 = vadd.f32 %v3589_v53, %v2440_v47  ;;  %v2438_v40 = vadd.f32 %v2378_v36, %v2133_v58  ;;  %v5164_v53 = vld [vmem:[#allocation26_spill] sm:$0xff]  ;;  %v5165_v44 = vld [vmem:[#allocation28_spill] sm:$0xff] }
 0x1d2   :  { %v2784_v2 = vadd.f32 %v4818_v19, %v2750_v0  ;;  %v2748_v3 = vmul.f32 %v4810_v17, %v2714_v50  ;;  %v3548_v55 = vpop.f32.mrf.mxu1  ;;  %v3592_v16 = vpop.f32.mrf.mxu0  ;;  %v2139_v32 = vadd.f32 %v5161_v1, %v1862_v51  ;;  %v2137_v38 = vadd.f32 %v5164_v53, %v1860_v63 }
 0x1d3   :  { %2889 = vst [vmem:[%s5110_s6 + $0x78] sm:$0xff] %v2862_v26  ;;  %v2860_v15 = vmax.f32 %v2833_v57, 0.0  ;;  %v2751_v28 = vmul.f32 %v4810_v17, %v2717_v49  ;;  %v2715_v34 = vadd.f32 %v2655_v14, %v2438_v40  ;;  %v2443_v6 = vadd.f32 %v3548_v55, %v2138_v9  ;;  %v5166_v49 = vld [vmem:[#allocation11_spill] sm:$0xff] }
 0x1d4   :  { %v2838_v30 = vadd.f32 %v2811_v54, %v2784_v2  ;;  %v2782_v52 = vadd.f32 %v4818_v19, %v2748_v3  ;;  %v2391_v45 = vpop.f32.mrf.mxu1  ;;  %v2668_v56 = vpop.f32.mrf.mxu0  ;;  %v2142_v48 = vadd.f32 %v5165_v44, %v1865_v35  ;;  %v2140_v54 = vadd.f32 %v4797_v25, %v1863_v27  ;;  %v2817_v27 = vld [vmem:[%s5109_s5 + $0xc0] sm:$0xff] }
 0x1d5   :  { %2887 = vst [vmem:[%s5110_s6 + $0x68] sm:$0xff] %v2860_v15  ;;  %v2785_v41 = vadd.f32 %v4818_v19, %v2751_v28  ;;  %v2749_v22 = vmul.f32 %v4810_v17, %v2715_v34  ;;  %v2720_v8 = vadd.f32 %v3592_v16, %v2443_v6  ;;  %v2441_v12 = vadd.f32 %v2391_v45, %v2136_v11  ;;  %v2816_v6 = vld [vmem:[%s5109_s5 + $0xb8] sm:$0xff] }
 0x1d6   :  { %v2865_v31 = vmax.f32 %v2838_v30, 0.0  ;;  %v2836_v58 = vadd.f32 %v2809_v23, %v2782_v52  ;;  %v3549_v24 = vpop.f32.mrf.mxu1  ;;  %v3593_v21 = vpop.f32.mrf.mxu0  ;;  %v1864_v40 = vadd.f32 %v4801_v37, %v5166_v49 }
 0x1d7   :  { %v2839_v46 = vadd.f32 %v2812_v60, %v2785_v41  ;;  %v2783_v33 = vadd.f32 %v4818_v19, %v2749_v22  ;;  %v2754_v13 = vmul.f32 %v4810_v17, %v2720_v8  ;;  %v2718_v61 = vadd.f32 %v2668_v56, %v2441_v12  ;;  %v2814_v60 = vld [vmem:[%s5109_s5 + $0xa8] sm:$0xff]  ;;  %v2819_v8 = vld [vmem:[%s5109_s5 + $0xd0] sm:$0xff] }
 0x1d8   :  { %2892 = vst [vmem:[%s5110_s6 + $0x90] sm:$0xff] %v2865_v31  ;;  %v2863_v47 = vmax.f32 %v2836_v58, 0.0  ;;  %v2444_v9 = vadd.f32 %v3549_v24, %v2139_v32  ;;  %v2394_v0 = vpop.f32.mrf.mxu1  ;;  %v2671_v50 = vpop.f32.mrf.mxu0  ;;  %v2141_v30 = vadd.f32 %v4803_v59, %v1864_v40 }
 0x1d9   :  { %v2866_v36 = vmax.f32 %v2839_v46, 0.0  ;;  %v2837_v14 = vadd.f32 %v2810_v29, %v2783_v33  ;;  %v2788_v26 = vadd.f32 %v4818_v19, %v2754_v13  ;;  %v2752_v57 = vmul.f32 %v4810_v17, %v2718_v61  ;;  %v2818_v61 = vld [vmem:[%s5109_s5 + $0xc8] sm:$0xff] }
 0x1da   :  { %2890 = vst [vmem:[%s5110_s6 + $0x80] sm:$0xff] %v2863_v47  ;;  %v2721_v11 = vadd.f32 %v3593_v21, %v2444_v9  ;;  %v2442_v4 = vadd.f32 %v2394_v0, %v2137_v38  ;;  %v3552_v10 = vpop.f32.mrf.mxu1  ;;  %v3596_v51 = vpop.f32.mrf.mxu0 }
 0x1db   :  { %2893 = vst [vmem:[%s5110_s6 + $0x98] sm:$0xff] %v2866_v36  ;;  %v2864_v25 = vmax.f32 %v2837_v14, 0.0  ;;  %v2842_v2 = vadd.f32 %v2815_v39, %v2788_v26  ;;  %v2786_v37 = vadd.f32 %v4818_v19, %v2752_v57  ;;  %v2447_v3 = vadd.f32 %v3552_v10, %v2142_v48 }
 0x1dc   :  { %v2755_v55 = vmul.f32 %v4810_v17, %v2721_v11  ;;  %v2719_v16 = vadd.f32 %v2671_v50, %v2442_v4  ;;  %v2407_v15 = vpop.f32.mrf.mxu1  ;;  %v2684_v23 = vpop.f32.mrf.mxu0 }
 0x1dd   :  { %2891 = vst [vmem:[%s5110_s6 + $0x88] sm:$0xff] %v2864_v25  ;;  %v2869_v28 = vmax.f32 %v2842_v2, 0.0  ;;  %v2840_v34 = vadd.f32 %v2813_v42, %v2786_v37  ;;  %v2724_v18 = vadd.f32 %v3596_v51, %v2447_v3  ;;  %v2445_v43 = vadd.f32 %v2407_v15, %v2140_v54 }
 0x1de   :  { %v2789_v63 = vadd.f32 %v4818_v19, %v2755_v55  ;;  %v2753_v62 = vmul.f32 %v4810_v17, %v2719_v16  ;;  %v3553_v7 = vpop.f32.mrf.mxu1  ;;  %v3597_v35 = vpop.f32.mrf.mxu0 }
 0x1df   :  { %2896 = vst [vmem:[%s5110_s6 + $0xb0] sm:$0xff] %v2869_v28  ;;  %v2867_v52 = vmax.f32 %v2840_v34, 0.0  ;;  %v2758_v45 = vmul.f32 %v4810_v17, %v2724_v18  ;;  %v2722_v56 = vadd.f32 %v2684_v23, %v2445_v43 }
 0x1e0   :  { %v2843_v41 = vadd.f32 %v2816_v6, %v2789_v63  ;;  %v2787_v22 = vadd.f32 %v4818_v19, %v2753_v62  ;;  %v2410_v59 = vpop.f32.mrf.mxu1  ;;  %v2687_v31 = vpop.f32.mrf.mxu0 }
 0x1e1   :  { %2894 = vst [vmem:[%s5110_s6 + $0xa0] sm:$0xff] %v2867_v52  ;;  %v2792_v12 = vadd.f32 %v4818_v19, %v2758_v45  ;;  %v2756_v1 = vmul.f32 %v4810_v17, %v2722_v56  ;;  %v2446_v32 = vadd.f32 %v2410_v59, %v2141_v30 }
 0x1e2   :  { %v2870_v5 = vmax.f32 %v2843_v41, 0.0  ;;  %v2841_v20 = vadd.f32 %v2814_v60, %v2787_v22 }
 0x1e3   :  { %v2846_v58 = vadd.f32 %v2819_v8, %v2792_v12  ;;  %v2790_v29 = vadd.f32 %v4818_v19, %v2756_v1  ;;  %v2723_v24 = vadd.f32 %v2687_v31, %v2446_v32 }
 0x1e4   :  { %2897 = vst [vmem:[%s5110_s6 + $0xb8] sm:$0xff] %v2870_v5  ;;  %v2868_v21 = vmax.f32 %v2841_v20, 0.0 }
 0x1e5   :  { %v2873_v46 = vmax.f32 %v2846_v58, 0.0  ;;  %v2844_v33 = vadd.f32 %v2817_v27, %v2790_v29  ;;  %v2757_v13 = vmul.f32 %v4810_v17, %v2723_v24 }
 0x1e6   :  { %2895 = vst [vmem:[%s5110_s6 + $0xa8] sm:$0xff] %v2868_v21 }
 0x1e7   :  { %2900 = vst [vmem:[%s5110_s6 + $0xd0] sm:$0xff] %v2873_v46  ;;  %v2871_v53 = vmax.f32 %v2844_v33, 0.0  ;;  %v2791_v38 = vadd.f32 %v4818_v19, %v2757_v13 }
 0x1e9   :  { %2898 = vst [vmem:[%s5110_s6 + $0xc0] sm:$0xff] %v2871_v53  ;;  %v2845_v17 = vadd.f32 %v2818_v61, %v2791_v38 }
 0x1eb   :  { %v2872_v44 = vmax.f32 %v2845_v17, 0.0 }
 0x1ed   :  { %2899 = vst [vmem:[%s5110_s6 + $0xc8] sm:$0xff] %v2872_v44 }

</bundles_post_ra>
